<compile_context>
chip_gen: v7x
topology: tpu7x:2x2x1
jax: 0.10.0
libtpu: 0.0.40
codegen_flags: <defaults>
</compile_context>

<pallas_src>
import math

import numpy as np
import jax
import jax.numpy as jnp
from jax.experimental import pallas as pl
from jax.experimental.pallas import tpu as pltpu

_BN_EPS = 1e-5
_NEG_FILL = -10.0

# MXU operand dtype: bf16 on TPU; f32 fallback elsewhere (CPU DotThunk has no bf16 dot).
_ON_TPU = jax.default_backend() == "tpu"
_CDTYPE = jnp.bfloat16 if _ON_TPU else jnp.float32


def _vmem_budget_bytes():
    """~75% of physical VMEM: 48 MiB on v7x (64 MiB/TC), 96 MiB on v5e/v6e (128 MiB)."""
    if not _ON_TPU:
        return 48 * 1024 * 1024
    try:
        cap = int(pltpu.get_tpu_info().vmem_capacity_bytes)
    except Exception:
        cap = 64 * 1024 * 1024
    return max(32 * 1024 * 1024, min(cap * 3 // 4, 96 * 1024 * 1024))


_VMEM_LIMIT = _vmem_budget_bytes()
_FUSED_ROWS_PREF = 2048 if _VMEM_LIMIT >= 80 * 1024 * 1024 else 1024
_STATS_ROWS_PREF = 4096


# ------------------------------ small helpers --------------------------------

def _pick_tile(n, preferred, align):
    """Largest tile <= preferred that divides n and is a multiple of `align`.
    Falls back to the full extent (always a legal single block)."""
    if n <= preferred:
        return n
    t = (preferred // align) * align
    while t >= align:
        if n % t == 0:
            return t
        t -= align
    return n


def _conv_to_patch_toeplitz(w, ph, pw):
    """w: (C_out, C_in, kh, kw), 'same'-padded conv applied within a (ph, pw) patch.
    Returns dense (C_in*P, C_out*P) matrix T with row (c_in, i_in*pw+j_in) and column
    (c_out, i_out*pw+j_out) so that out_flat = x_flat @ T."""
    C_out, C_in, kh, kw = w.shape
    P = ph * pw
    w = np.asarray(w, dtype=np.float32)
    T = np.zeros((C_in, P, C_out, P), dtype=np.float32)
    for io in range(ph):
        for jo in range(pw):
            po = io * pw + jo
            for di in range(kh):
                for dj in range(kw):
                    ii = io + di - kh // 2
                    jj = jo + dj - kw // 2
                    if 0 <= ii < ph and 0 <= jj < pw:
                        T[:, ii * pw + jj, :, po] += w[:, :, di, dj].T
    return T.reshape(C_in * P, C_out * P)


def _attention_constants(N_L, N_V, P):
    """Constant 0/1 matrices that express the attention reductions as MXU dots."""
    C2 = N_L * N_V
    eye_v = np.eye(N_V, dtype=np.float32)
    pool_c = np.repeat(np.eye(C2, dtype=np.float32), P, axis=0)        # (C2*P, C2): sum over p
    pool_v = np.tile(eye_v, (N_L, 1))                                  # (C2, N_V): sum over labels
    w_exp = np.tile(np.repeat(eye_v, P, axis=1), (1, N_L))             # (N_V, C2*P): broadcast w over (l,p)
    pool_lp = np.kron(np.eye(N_L, dtype=np.float32),
                      np.tile(np.eye(P, dtype=np.float32), (N_V, 1)))  # (C2*P, N_L*P): sum over heads
    return pool_c, pool_v, w_exp, pool_lp


# ----------------------------- Pallas kernels --------------------------------

def _layer_stack(x, mats, biases, n, cdtype):
    """First n (conv -> BN-folded -> ReLU) template layers on a (TM, C*P) tile."""
    h = x
    for i in range(n):
        z = jnp.dot(h, mats[i][...], preferred_element_type=jnp.float32) + biases[i][...]
        h = jnp.maximum(z, 0.0).astype(cdtype)
    return h


def _make_stats_kernel(j, cdtype):
    """Column-wise sum / sum-of-squares of layer j's pre-activation, accumulated over
    the (reduction) row-tile grid axis into two resident (1, C*P) outputs."""

    def kernel(*refs):
        x_ref = refs[0]
        mats = refs[1:2 + j]              # j BN-folded prefix layers + layer j (unfolded)
        biases = refs[2 + j:3 + 2 * j]
        sum_ref, sq_ref = refs[-2], refs[-1]

        h = _layer_stack(x_ref[...], mats, biases, j, cdtype)
        z = jnp.dot(h, mats[j][...], preferred_element_type=jnp.float32) + biases[j][...]

        @pl.when(pl.program_id(0) == 0)
        def _():
            sum_ref[...] = jnp.zeros_like(sum_ref)
            sq_ref[...] = jnp.zeros_like(sq_ref)

        sum_ref[...] += jnp.sum(z, axis=0, keepdims=True)
        sq_ref[...] += jnp.sum(z * z, axis=0, keepdims=True)

    return kernel


def _make_fused_kernel(n_layers, cdtype):
    """Fused PatchTemplate stack + relation weighting + attention for one row tile."""

    def kernel(*refs):
        x_ref, cols_ref = refs[0], refs[1]
        mats = refs[2:2 + n_layers]
        biases = refs[2 + n_layers:2 + 2 * n_layers]
        base = 2 + 2 * n_layers
        rm_rexp_ref, pool_c_ref, pool_v_ref, w_exp_ref, pool_lp_ref = refs[base:base + 5]
        out_ref = refs[base + 5]

        # ---- PatchTemplate Conv3d(1,k,k) stack as patch-Toeplitz matmuls ----
        h = _layer_stack(x_ref[...], mats, biases, n_layers - 1, cdtype)
        z = jnp.dot(h, mats[n_layers - 1][...],
                    preferred_element_type=jnp.float32) + biases[n_layers - 1][...]
        # z: (TM, N_L*N_V*P), columns ordered (label, head, pixel)  == V(x)

        # ---- relation weighting + attention over heads ----
        zc = z.astype(cdtype)
        c = jnp.dot(zc, pool_c_ref[...], preferred_element_type=jnp.float32)       # (TM, L*V)
        rexp = jnp.dot(cols_ref[...], rm_rexp_ref[...],
                       preferred_element_type=jnp.float32)                          # (TM, L*V) = r bcast over heads
        a = jnp.dot(c * rexp, pool_v_ref[...], preferred_element_type=jnp.float32)  # (TM, V)

        # softmax over heads plus an appended zero logit (numerically stable)
        m = jnp.maximum(jnp.max(a, axis=-1, keepdims=True), 0.0)
        e = jnp.exp(a - m)                                                          # (TM, V)
        e0 = jnp.exp(-m)                                                            # (TM, 1)
        inv = 1.0 / (jnp.sum(e, axis=-1, keepdims=True) + e0)
        w = e * inv
        w0 = e0 * inv

        wexp = jnp.dot(w.astype(cdtype), w_exp_ref[...],
                       preferred_element_type=jnp.float32)                          # (TM, L*V*P)
        y = jnp.dot((wexp * z).astype(cdtype), pool_lp_ref[...],
                    preferred_element_type=jnp.float32)                             # (TM, L*P)
        # extra head carries the constant -10 value everywhere
        out_ref[...] = y + _NEG_FILL * w0

    return kernel


# -------------------------------- the model ----------------------------------

class IterPatchSpRelNetPallas:
    def __init__(self, image_size, num_labels, in_channels=1, kernel_size=(3, 3),
                 num_heads=4, num_relations=2, patch_size=(8, 8),
                 template_channels_by_depth=None, template_kernels_by_depth=None,
                 key=None):
        H, W = image_size
        ph, pw = patch_size
        assert H % ph == 0 and W % pw == 0
        self.image_size = image_size
        self.patch_size = patch_size
        self.C_in = in_channels
        self.N_L = num_labels
        self.N_V = num_heads
        self.N_r = num_relations
        self.rel_kernel_size = kernel_size
        d0, d1 = H // ph, W // pw
        self.d = (d0, d1)
        self.N_T = d0 * d1
        self.N_P = ph * pw
        P = self.N_P

        if template_channels_by_depth is None:
            template_channels_by_depth = [in_channels, 8, num_labels * num_heads]
        if template_kernels_by_depth is None:
            template_kernels_by_depth = [3, 3]
        assert template_channels_by_depth[0] == in_channels
        assert template_channels_by_depth[-1] == num_labels * num_heads
        assert len(template_kernels_by_depth) == len(template_channels_by_depth) - 1
        self.n_layers = len(template_kernels_by_depth)
        self.channels = list(template_channels_by_depth)

        if key is None:
            key = jax.random.PRNGKey(0)
        keys = jax.random.split(key, 2 * self.n_layers + 1)

        # PatchTemplate Conv3d(1,k,k) layers -> dense patch-Toeplitz matrices.
        # f32 masters (used for the BN fold) + compute-dtype copies for the kernels.
        self.tpl_mats_f32 = []
        self.tpl_mats_c = []
        self.tpl_biases = []
        for i, k in enumerate(template_kernels_by_depth):
            cin = template_channels_by_depth[i]
            cout = template_channels_by_depth[i + 1]
            fan_in = cin * k * k
            w = jax.random.normal(keys[2 * i], (cout, cin, k, k),
                                  jnp.float32) / math.sqrt(fan_in)
            b = jax.random.normal(keys[2 * i + 1], (cout,), jnp.float32) * 0.01
            t = _conv_to_patch_toeplitz(np.array(w), ph, pw)
            self.tpl_mats_f32.append(jnp.asarray(t, jnp.float32))
            self.tpl_mats_c.append(jnp.asarray(t, _CDTYPE))
            self.tpl_biases.append(
                jnp.asarray(np.repeat(np.array(b), P)[None, :], jnp.float32))

        # r_m: Conv2d(N_L -> N_r*N_L, kernel_size, bias=False); center tap of each
        # label's self-connection zeroed; the sum over relations AND the broadcast over
        # heads are folded into one (K, N_L*N_V) matrix used inside the fused kernel.
        kh, kw = kernel_size
        cout = self.N_r * self.N_L
        fan_in = self.N_L * kh * kw
        w = np.array(jax.random.normal(keys[-1], (cout, self.N_L, kh, kw),
                                       jnp.float32) / math.sqrt(fan_in))
        for i in range(self.N_L):
            w[i::self.N_L, i, kh // 2, kw // 2] = 0.0
        w_folded = w.reshape(self.N_r, self.N_L, self.N_L, kh, kw).sum(axis=0)
        w_flat = w_folded.reshape(self.N_L, self.N_L * kh * kw)          # (N_L, K)
        self.K_rel = self.N_L * kh * kw
        self.rm_rexp = jnp.asarray(np.repeat(w_flat, self.N_V, axis=0).T,
                                   jnp.float32)                          # (K, N_L*N_V)

        # Constant 0/1 matrices for the fused attention epilogue (big ones in bf16).
        pool_c, pool_v, w_exp, pool_lp = _attention_constants(self.N_L, self.N_V, P)
        self.pool_c = jnp.asarray(pool_c, _CDTYPE)
        self.pool_v = jnp.asarray(pool_v, jnp.float32)
        self.w_exp = jnp.asarray(w_exp, _CDTYPE)
        self.pool_lp = jnp.asarray(pool_lp, _CDTYPE)

    # ---- r(Y_0) inputs: AvgPool2d(patch) + im2col taps, rows (batch, token) ----
    def _relation_cols(self, Y_0, B):
        d0, d1 = self.d
        ph, pw = self.patch_size
        kh, kw = self.rel_kernel_size
        N_L = self.N_L
        M = B * self.N_T

        y_down = Y_0.reshape(B, N_L, d0, ph, d1, pw).mean(axis=(3, 5))   # (B,N_L,d0,d1)
        ypad = jnp.pad(y_down, ((0, 0), (0, 0),
                                (kh // 2, kh // 2), (kw // 2, kw // 2)))
        taps = [ypad[:, :, di:di + d0, dj:dj + d1]
                for di in range(kh) for dj in range(kw)]
        cols = jnp.stack(taps, axis=2).reshape(B, N_L, kh * kw, d0, d1)
        cols_rows = cols.transpose(0, 3, 4, 1, 2).reshape(M, N_L * kh * kw)
        return cols_rows.astype(jnp.float32)                             # (M, K)

    def forward(self, X, Y_0):
        B = X.shape[0]
        ph, pw = self.patch_size
        d0, d1 = self.d
        N_T, N_L, N_V, P = self.N_T, self.N_L, self.N_V, self.N_P
        n_layers = self.n_layers
        cdtype = _CDTYPE
        M = B * N_T
        k_in = self.C_in * P
        out_width = N_L * P

        X = X.astype(jnp.float32)
        Y_0 = Y_0.astype(jnp.float32)

        # ---- relation-map im2col (rows ordered (batch, token); cols (label_in, tap)) ----
        cols_rows = self._relation_cols(Y_0, B)                          # (M, K) f32

        # ---- tokenize X: rows (batch, token), cols (channel, pixel); pre-cast ----
        x_tok = X.reshape(B, self.C_in, d0, ph, d1, pw).transpose(0, 2, 4, 1, 3, 5)
        x_tok = x_tok.reshape(M, k_in).astype(cdtype)

        # ---- two-pass BatchNorm: stats kernels, then fold scale/shift into weights ----
        folded_mats, folded_biases = [], []
        tm_s = _pick_tile(M, preferred=_STATS_ROWS_PREF, align=8)
        for j in range(n_layers - 1):
            c_out = self.channels[j + 1]
            width = c_out * P
            mats_args = folded_mats[:j] + [self.tpl_mats_c[j]]
            bias_args = folded_biases[:j] + [self.tpl_biases[j]]
            in_specs = [pl.BlockSpec((tm_s, k_in), lambda i: (i, 0))]
            args = [x_tok]
            for arr in mats_args + bias_args:
                in_specs.append(pl.BlockSpec(arr.shape, lambda i: (0, 0)))
                args.append(arr)

            s1, s2 = pl.pallas_call(
                _make_stats_kernel(j, cdtype),
                out_shape=(jax.ShapeDtypeStruct((1, width), jnp.float32),
                           jax.ShapeDtypeStruct((1, width), jnp.float32)),
                grid=(M // tm_s,),
                in_specs=in_specs,
                out_specs=(pl.BlockSpec((1, width), lambda i: (0, 0)),
                           pl.BlockSpec((1, width), lambda i: (0, 0))),
                compiler_params=pltpu.CompilerParams(
                    dimension_semantics=("arbitrary",),
                    vmem_limit_bytes=_VMEM_LIMIT),
            )(*args)

            count = float(M * P)                     # BN3d stats over (B, N_T, ph, pw)
            mean = s1.reshape(c_out, P).sum(axis=1) / count
            ex2 = s2.reshape(c_out, P).sum(axis=1) / count
            var = jnp.maximum(ex2 - mean * mean, 0.0)           # biased (PyTorch train mode)
            scale = jax.lax.rsqrt(var + _BN_EPS)                # gamma = 1
            shift = -mean * scale                               # beta  = 0
            scale_col = jnp.repeat(scale, P)[None, :]
            shift_col = jnp.repeat(shift, P)[None, :]
            folded_mats.append((self.tpl_mats_f32[j] * scale_col).astype(cdtype))
            folded_biases.append(self.tpl_biases[j] * scale_col + shift_col)
        folded_mats.append(self.tpl_mats_c[-1])                 # last layer: no BN
        folded_biases.append(self.tpl_biases[-1])

        # ---- fused pass: template stack + relation weighting + attention ----
        tm = _pick_tile(M, preferred=_FUSED_ROWS_PREF, align=8)
        grid = (M // tm,)
        consts = [self.rm_rexp, self.pool_c, self.pool_v, self.w_exp, self.pool_lp]
        in_specs = [pl.BlockSpec((tm, k_in), lambda i: (i, 0)),
                    pl.BlockSpec((tm, self.K_rel), lambda i: (i, 0))]
        args = [x_tok, cols_rows]
        for arr in folded_mats + folded_biases + consts:
            in_specs.append(pl.BlockSpec(arr.shape, lambda i: (0, 0)))
            args.append(arr)

        C2 = N_L * N_V
        c2p = C2 * P
        flops = 2 * M * (sum(self.channels[i] * P * self.channels[i + 1] * P
                             for i in range(n_layers))
                         + c2p * C2 + self.K_rel * C2 + C2 * N_V
                         + N_V * c2p + c2p * out_width)
        bytes_accessed = (int(x_tok.size) * x_tok.dtype.itemsize
                          + int(cols_rows.size) * 4 + M * out_width * 4
                          + sum(int(np.prod(a.shape)) * a.dtype.itemsize
                                for a in folded_mats + consts))

        y_flat = pl.pallas_call(
            _make_fused_kernel(n_layers, cdtype),
            out_shape=jax.ShapeDtypeStruct((M, out_width), jnp.float32),
            grid=grid,
            in_specs=in_specs,
            out_specs=pl.BlockSpec((tm, out_width), lambda i: (i, 0)),
            compiler_params=pltpu.CompilerParams(
                dimension_semantics=("parallel",),
                vmem_limit_bytes=_VMEM_LIMIT),
            cost_estimate=pl.CostEstimate(
                flops=int(flops),
                transcendentals=int(M * (N_V + 1)),
                bytes_accessed=int(bytes_accessed)),
        )(*args)

        # ---- untokenize (B*N_T, N_L*P) -> (B, N_L, H, W) ----
        y = y_flat.reshape(B, d0, d1, N_L, ph, pw).transpose(0, 3, 1, 4, 2, 5)
        return y.reshape(B, N_L, d0 * ph, d1 * pw)


# ----------------------------------- main -------------------------------------

if __name__ == "__main__":
    key = jax.random.PRNGKey(0)
    kx, ky, kp = jax.random.split(key, 3)

    B, C_in = 2, 1
    image_size = (16, 16)
    N_L, N_V = 3, 4

    net = IterPatchSpRelNetPallas(
        image_size=image_size,
        num_labels=N_L,
        in_channels=C_in,
        kernel_size=(3, 3),
        num_heads=N_V,
        num_relations=2,
        patch_size=(8, 8),
        template_channels_by_depth=[C_in, 8, N_L * N_V],
        template_kernels_by_depth=[3, 3],
        key=kp,
    )

    X = jax.random.normal(kx, (B, C_in, *image_size), jnp.float32)
    Y_0 = jax.random.normal(ky, (B, N_L, *image_size), jnp.float32)

    Y = jax.jit(net.forward)(X, Y_0)
    Y = jax.block_until_ready(Y)
    assert Y.shape == (B, N_L, *image_size), Y.shape
    assert bool(jnp.all(jnp.isfinite(Y)))
    print("KERNEL_OK")
</pallas_src>

<mosaic_0001>
module attributes {stable_mosaic.version = 11 : i64} {
  func.func @kernel(%arg0: i32, %arg1: memref<8x64xf32, #tpu.memory_space<vmem>>, %arg2: memref<64x512xf32, #tpu.memory_space<vmem>>, %arg3: memref<1x512xf32, #tpu.memory_space<vmem>>, %arg4: memref<1x512xf32, #tpu.memory_space<vmem>>, %arg5: memref<1x512xf32, #tpu.memory_space<vmem>>) attributes {dimension_semantics = [#tpu.dimension_semantics<arbitrary>], iteration_bounds = array<i64: 1>, scalar_prefetch = 0 : i64, scratch_operands = 0 : i64, tpu.core_type = #tpu.core_type<tc>, window_params = [{transform_indices = @transform_0, window_bounds = array<i64: 8, 64>}, {pipeline_mode = #tpu.pipeline_mode<synchronous>, transform_indices = @transform_1, window_bounds = array<i64: 64, 512>}, {pipeline_mode = #tpu.pipeline_mode<synchronous>, transform_indices = @transform_2, window_bounds = array<i64: 1, 512>}, {pipeline_mode = #tpu.pipeline_mode<synchronous>, transform_indices = @transform_3, window_bounds = array<i64: 1, 512>}, {pipeline_mode = #tpu.pipeline_mode<synchronous>, transform_indices = @transform_4, window_bounds = array<i64: 1, 512>}]} {
    %c0 = arith.constant 0 : index
    %c0_0 = arith.constant 0 : index
    %0 = vector.load %arg1[%c0, %c0_0] : memref<8x64xf32, #tpu.memory_space<vmem>>, vector<8x64xf32>
    %c0_1 = arith.constant 0 : index
    %c0_2 = arith.constant 0 : index
    %1 = vector.load %arg2[%c0_1, %c0_2] : memref<64x512xf32, #tpu.memory_space<vmem>>, vector<64x512xf32>
    %cst = arith.constant dense<0.000000e+00> : vector<8x512xf32>
    %2 = tpu.matmul %0, %1, %cst {dimension_numbers = #tpu.dot_dimension_numbers<[1], [0], [0], [1], [0, 0, 1, 1], [], []>} : vector<8x64xf32>, vector<64x512xf32>, vector<8x512xf32> -> vector<8x512xf32>
    %c0_3 = arith.constant 0 : index
    %c0_4 = arith.constant 0 : index
    %3 = vector.load %arg3[%c0_3, %c0_4] : memref<1x512xf32, #tpu.memory_space<vmem>>, vector<1x512xf32>
    %4 = vector.broadcast %3 : vector<1x512xf32> to vector<8x512xf32>
    %5 = arith.addf %2, %4 : vector<8x512xf32>
    %c0_i32 = arith.constant 0 : i32
    %6 = arith.cmpi eq, %arg0, %c0_i32 : i32
    %7 = arith.extui %6 : i1 to i32
    %c0_i32_5 = arith.constant 0 : i32
    %8 = arith.cmpi ne, %7, %c0_i32_5 : i32
    scf.if %8 {
      %cst_16 = arith.constant 0.000000e+00 : f32
      %20 = vector.broadcast %cst_16 : f32 to vector<1x512xf32>
      %c0_17 = arith.constant 0 : index
      %c0_18 = arith.constant 0 : index
      %21 = vector.load %arg4[%c0_17, %c0_18] : memref<1x512xf32, #tpu.memory_space<vmem>>, vector<1x512xf32>
      tpu.vector_store %arg4[%c0_17, %c0_18], %20 {strides = array<i32>} : memref<1x512xf32, #tpu.memory_space<vmem>>, vector<1x512xf32>,
      %cst_19 = arith.constant 0.000000e+00 : f32
      %22 = vector.broadcast %cst_19 : f32 to vector<1x512xf32>
      %c0_20 = arith.constant 0 : index
      %c0_21 = arith.constant 0 : index
      %23 = vector.load %arg5[%c0_20, %c0_21] : memref<1x512xf32, #tpu.memory_space<vmem>>, vector<1x512xf32>
      tpu.vector_store %arg5[%c0_20, %c0_21], %22 {strides = array<i32>} : memref<1x512xf32, #tpu.memory_space<vmem>>, vector<1x512xf32>,
    } else {
    }
    %c0_6 = arith.constant 0 : index
    %c0_7 = arith.constant 0 : index
    %9 = vector.load %arg4[%c0_6, %c0_7] : memref<1x512xf32, #tpu.memory_space<vmem>>, vector<1x512xf32>
    %cst_8 = arith.constant dense<0.000000e+00> : vector<512xf32>
    %10 = vector.multi_reduction <add>, %5, %cst_8 [0] : vector<8x512xf32> to vector<512xf32>
    %11 = vector.shape_cast %10 : vector<512xf32> to vector<1x512xf32>
    %12 = arith.addf %9, %11 : vector<1x512xf32>
    %c0_9 = arith.constant 0 : index
    %c0_10 = arith.constant 0 : index
    %13 = vector.load %arg4[%c0_9, %c0_10] : memref<1x512xf32, #tpu.memory_space<vmem>>, vector<1x512xf32>
    tpu.vector_store %arg4[%c0_9, %c0_10], %12 {strides = array<i32>} : memref<1x512xf32, #tpu.memory_space<vmem>>, vector<1x512xf32>,
    %c0_11 = arith.constant 0 : index
    %c0_12 = arith.constant 0 : index
    %14 = vector.load %arg5[%c0_11, %c0_12] : memref<1x512xf32, #tpu.memory_space<vmem>>, vector<1x512xf32>
    %15 = arith.mulf %5, %5 : vector<8x512xf32>
    %cst_13 = arith.constant dense<0.000000e+00> : vector<512xf32>
    %16 = vector.multi_reduction <add>, %15, %cst_13 [0] : vector<8x512xf32> to vector<512xf32>
    %17 = vector.shape_cast %16 : vector<512xf32> to vector<1x512xf32>
    %18 = arith.addf %14, %17 : vector<1x512xf32>
    %c0_14 = arith.constant 0 : index
    %c0_15 = arith.constant 0 : index
    %19 = vector.load %arg5[%c0_14, %c0_15] : memref<1x512xf32, #tpu.memory_space<vmem>>, vector<1x512xf32>
    tpu.vector_store %arg5[%c0_14, %c0_15], %18 {strides = array<i32>} : memref<1x512xf32, #tpu.memory_space<vmem>>, vector<1x512xf32>,
    return
  }
  func.func @transform_0(%arg0: i32) -> (i32, i32) {
    %c0_i32 = arith.constant 0 : i32
    %c0_i32_0 = arith.constant 0 : i32
    return %arg0, %c0_i32 : i32, i32
  }
  func.func @transform_1(%arg0: i32) -> (i32, i32) {
    %c0_i32 = arith.constant 0 : i32
    %c0_i32_0 = arith.constant 0 : i32
    %c0_i32_1 = arith.constant 0 : i32
    return %c0_i32, %c0_i32_0 : i32, i32
  }
  func.func @transform_2(%arg0: i32) -> (i32, i32) {
    %c0_i32 = arith.constant 0 : i32
    %c0_i32_0 = arith.constant 0 : i32
    %c0_i32_1 = arith.constant 0 : i32
    return %c0_i32, %c0_i32_0 : i32, i32
  }
  func.func @transform_3(%arg0: i32) -> (i32, i32) {
    %c0_i32 = arith.constant 0 : i32
    %c0_i32_0 = arith.constant 0 : i32
    %c0_i32_1 = arith.constant 0 : i32
    return %c0_i32, %c0_i32_0 : i32, i32
  }
  func.func @transform_4(%arg0: i32) -> (i32, i32) {
    %c0_i32 = arith.constant 0 : i32
    %c0_i32_0 = arith.constant 0 : i32
    %c0_i32_1 = arith.constant 0 : i32
    return %c0_i32, %c0_i32_0 : i32, i32
  }
}

module attributes {stable_mosaic.version = 11 : i64} {
  func.func @kernel(%arg0: i32, %arg1: memref<8x64xf32, #tpu.memory_space<vmem>>, %arg2: memref<8x27xf32, #tpu.memory_space<vmem>>, %arg3: memref<64x512xf32, #tpu.memory_space<vmem>>, %arg4: memref<512x768xf32, #tpu.memory_space<vmem>>, %arg5: memref<1x512xf32, #tpu.memory_space<vmem>>, %arg6: memref<1x768xf32, #tpu.memory_space<vmem>>, %arg7: memref<27x12xf32, #tpu.memory_space<vmem>>, %arg8: memref<768x12xf32, #tpu.memory_space<vmem>>, %arg9: memref<12x4xf32, #tpu.memory_space<vmem>>, %arg10: memref<4x768xf32, #tpu.memory_space<vmem>>, %arg11: memref<768x192xf32, #tpu.memory_space<vmem>>, %arg12: memref<8x192xf32, #tpu.memory_space<vmem>>) attributes {dimension_semantics = [#tpu.dimension_semantics<parallel>], iteration_bounds = array<i64: 1>, scalar_prefetch = 0 : i64, scratch_operands = 0 : i64, tpu.core_type = #tpu.core_type<tc>, window_params = [{transform_indices = @transform_0, window_bounds = array<i64: 8, 64>}, {transform_indices = @transform_1, window_bounds = array<i64: 8, 27>}, {pipeline_mode = #tpu.pipeline_mode<synchronous>, transform_indices = @transform_2, window_bounds = array<i64: 64, 512>}, {pipeline_mode = #tpu.pipeline_mode<synchronous>, transform_indices = @transform_3, window_bounds = array<i64: 512, 768>}, {pipeline_mode = #tpu.pipeline_mode<synchronous>, transform_indices = @transform_4, window_bounds = array<i64: 1, 512>}, {pipeline_mode = #tpu.pipeline_mode<synchronous>, transform_indices = @transform_5, window_bounds = array<i64: 1, 768>}, {pipeline_mode = #tpu.pipeline_mode<synchronous>, transform_indices = @transform_6, window_bounds = array<i64: 27, 12>}, {pipeline_mode = #tpu.pipeline_mode<synchronous>, transform_indices = @transform_7, window_bounds = array<i64: 768, 12>}, {pipeline_mode = #tpu.pipeline_mode<synchronous>, transform_indices = @transform_8, window_bounds = array<i64: 12, 4>}, {pipeline_mode = #tpu.pipeline_mode<synchronous>, transform_indices = @transform_9, window_bounds = array<i64: 4, 768>}, {pipeline_mode = #tpu.pipeline_mode<synchronous>, transform_indices = @transform_10, window_bounds = array<i64: 768, 192>}, {transform_indices = @transform_11, window_bounds = array<i64: 8, 192>}]} {
    %c0 = arith.constant 0 : index
    %c0_0 = arith.constant 0 : index
    %0 = vector.load %arg1[%c0, %c0_0] : memref<8x64xf32, #tpu.memory_space<vmem>>, vector<8x64xf32>
    %c0_1 = arith.constant 0 : index
    %c0_2 = arith.constant 0 : index
    %1 = vector.load %arg3[%c0_1, %c0_2] : memref<64x512xf32, #tpu.memory_space<vmem>>, vector<64x512xf32>
    %cst = arith.constant dense<0.000000e+00> : vector<8x512xf32>
    %2 = tpu.matmul %0, %1, %cst {dimension_numbers = #tpu.dot_dimension_numbers<[1], [0], [0], [1], [0, 0, 1, 1], [], []>} : vector<8x64xf32>, vector<64x512xf32>, vector<8x512xf32> -> vector<8x512xf32>
    %c0_3 = arith.constant 0 : index
    %c0_4 = arith.constant 0 : index
    %3 = vector.load %arg5[%c0_3, %c0_4] : memref<1x512xf32, #tpu.memory_space<vmem>>, vector<1x512xf32>
    %4 = vector.broadcast %3 : vector<1x512xf32> to vector<8x512xf32>
    %5 = arith.addf %2, %4 : vector<8x512xf32>
    %cst_5 = arith.constant 0.000000e+00 : f32
    %6 = vector.broadcast %cst_5 : f32 to vector<8x512xf32>
    %7 = arith.maximumf %5, %6 : vector<8x512xf32>
    %c0_6 = arith.constant 0 : index
    %c0_7 = arith.constant 0 : index
    %8 = vector.load %arg4[%c0_6, %c0_7] : memref<512x768xf32, #tpu.memory_space<vmem>>, vector<512x768xf32>
    %cst_8 = arith.constant dense<0.000000e+00> : vector<8x768xf32>
    %9 = tpu.matmul %7, %8, %cst_8 {dimension_numbers = #tpu.dot_dimension_numbers<[1], [0], [0], [1], [0, 0, 1, 1], [], []>} : vector<8x512xf32>, vector<512x768xf32>, vector<8x768xf32> -> vector<8x768xf32>
    %c0_9 = arith.constant 0 : index
    %c0_10 = arith.constant 0 : index
    %10 = vector.load %arg6[%c0_9, %c0_10] : memref<1x768xf32, #tpu.memory_space<vmem>>, vector<1x768xf32>
    %11 = vector.broadcast %10 : vector<1x768xf32> to vector<8x768xf32>
    %12 = arith.addf %9, %11 : vector<8x768xf32>
    %c0_11 = arith.constant 0 : index
    %c0_12 = arith.constant 0 : index
    %13 = vector.load %arg8[%c0_11, %c0_12] : memref<768x12xf32, #tpu.memory_space<vmem>>, vector<768x12xf32>
    %cst_13 = arith.constant dense<0.000000e+00> : vector<8x12xf32>
    %14 = tpu.matmul %12, %13, %cst_13 {dimension_numbers = #tpu.dot_dimension_numbers<[1], [0], [0], [1], [0, 0, 1, 1], [], []>} : vector<8x768xf32>, vector<768x12xf32>, vector<8x12xf32> -> vector<8x12xf32>
    %c0_14 = arith.constant 0 : index
    %c0_15 = arith.constant 0 : index
    %15 = vector.load %arg2[%c0_14, %c0_15] : memref<8x27xf32, #tpu.memory_space<vmem>>, vector<8x27xf32>
    %c0_16 = arith.constant 0 : index
    %c0_17 = arith.constant 0 : index
    %16 = vector.load %arg7[%c0_16, %c0_17] : memref<27x12xf32, #tpu.memory_space<vmem>>, vector<27x12xf32>
    %cst_18 = arith.constant dense<0.000000e+00> : vector<8x12xf32>
    %17 = tpu.matmul %15, %16, %cst_18 {dimension_numbers = #tpu.dot_dimension_numbers<[1], [0], [0], [1], [0, 0, 1, 1], [], []>} : vector<8x27xf32>, vector<27x12xf32>, vector<8x12xf32> -> vector<8x12xf32>
    %18 = arith.mulf %14, %17 : vector<8x12xf32>
    %c0_19 = arith.constant 0 : index
    %c0_20 = arith.constant 0 : index
    %19 = vector.load %arg9[%c0_19, %c0_20] : memref<12x4xf32, #tpu.memory_space<vmem>>, vector<12x4xf32>
    %cst_21 = arith.constant dense<0.000000e+00> : vector<8x4xf32>
    %20 = tpu.matmul %18, %19, %cst_21 {dimension_numbers = #tpu.dot_dimension_numbers<[1], [0], [0], [1], [0, 0, 1, 1], [], []>} : vector<8x12xf32>, vector<12x4xf32>, vector<8x4xf32> -> vector<8x4xf32>
    %cst_22 = arith.constant dense<0xFF800000> : vector<8xf32>
    %21 = vector.multi_reduction <maximumf>, %20, %cst_22 [1] : vector<8x4xf32> to vector<8xf32>
    %22 = vector.shape_cast %21 : vector<8xf32> to vector<8x1xf32>
    %cst_23 = arith.constant 0.000000e+00 : f32
    %23 = vector.broadcast %cst_23 : f32 to vector<8x1xf32>
    %24 = arith.maximumf %22, %23 : vector<8x1xf32>
    %25 = vector.broadcast %24 : vector<8x1xf32> to vector<8x4xf32>
    %26 = arith.subf %20, %25 : vector<8x4xf32>
    %27 = math.exp %26 : vector<8x4xf32>
    %cst_24 = arith.constant 0.000000e+00 : f32
    %28 = vector.broadcast %cst_24 : f32 to vector<8x1xf32>
    %29 = arith.subf %28, %24 : vector<8x1xf32>
    %30 = math.exp %29 : vector<8x1xf32>
    %cst_25 = arith.constant dense<0.000000e+00> : vector<8xf32>
    %31 = vector.multi_reduction <add>, %27, %cst_25 [1] : vector<8x4xf32> to vector<8xf32>
    %32 = vector.shape_cast %31 : vector<8xf32> to vector<8x1xf32>
    %33 = arith.addf %32, %30 : vector<8x1xf32>
    %cst_26 = arith.constant 1.000000e+00 : f32
    %34 = vector.broadcast %cst_26 : f32 to vector<8x1xf32>
    %35 = arith.divf %34, %33 : vector<8x1xf32>
    %36 = vector.broadcast %35 : vector<8x1xf32> to vector<8x4xf32>
    %37 = arith.mulf %27, %36 : vector<8x4xf32>
    %38 = arith.mulf %30, %35 : vector<8x1xf32>
    %c0_27 = arith.constant 0 : index
    %c0_28 = arith.constant 0 : index
    %39 = vector.load %arg10[%c0_27, %c0_28] : memref<4x768xf32, #tpu.memory_space<vmem>>, vector<4x768xf32>
    %cst_29 = arith.constant dense<0.000000e+00> : vector<8x768xf32>
    %40 = tpu.matmul %37, %39, %cst_29 {dimension_numbers = #tpu.dot_dimension_numbers<[1], [0], [0], [1], [0, 0, 1, 1], [], []>} : vector<8x4xf32>, vector<4x768xf32>, vector<8x768xf32> -> vector<8x768xf32>
    %41 = arith.mulf %40, %12 : vector<8x768xf32>
    %c0_30 = arith.constant 0 : index
    %c0_31 = arith.constant 0 : index
    %42 = vector.load %arg11[%c0_30, %c0_31] : memref<768x192xf32, #tpu.memory_space<vmem>>, vector<768x192xf32>
    %cst_32 = arith.constant dense<0.000000e+00> : vector<8x192xf32>
    %43 = tpu.matmul %41, %42, %cst_32 {dimension_numbers = #tpu.dot_dimension_numbers<[1], [0], [0], [1], [0, 0, 1, 1], [], []>} : vector<8x768xf32>, vector<768x192xf32>, vector<8x192xf32> -> vector<8x192xf32>
    %cst_33 = arith.constant -1.000000e+01 : f32
    %44 = vector.broadcast %cst_33 : f32 to vector<8x1xf32>
    %45 = arith.mulf %44, %38 : vector<8x1xf32>
    %46 = vector.broadcast %45 : vector<8x1xf32> to vector<8x192xf32>
    %47 = arith.addf %43, %46 : vector<8x192xf32>
    %c0_34 = arith.constant 0 : index
    %c0_35 = arith.constant 0 : index
    %48 = vector.load %arg12[%c0_34, %c0_35] : memref<8x192xf32, #tpu.memory_space<vmem>>, vector<8x192xf32>
    tpu.vector_store %arg12[%c0_34, %c0_35], %47 {strides = array<i32>} : memref<8x192xf32, #tpu.memory_space<vmem>>, vector<8x192xf32>,
    return
  }
  func.func @transform_0(%arg0: i32) -> (i32, i32) {
    %c0_i32 = arith.constant 0 : i32
    %c0_i32_0 = arith.constant 0 : i32
    return %arg0, %c0_i32 : i32, i32
  }
  func.func @transform_1(%arg0: i32) -> (i32, i32) {
    %c0_i32 = arith.constant 0 : i32
    %c0_i32_0 = arith.constant 0 : i32
    return %arg0, %c0_i32 : i32, i32
  }
  func.func @transform_2(%arg0: i32) -> (i32, i32) {
    %c0_i32 = arith.constant 0 : i32
    %c0_i32_0 = arith.constant 0 : i32
    %c0_i32_1 = arith.constant 0 : i32
    return %c0_i32, %c0_i32_0 : i32, i32
  }
  func.func @transform_3(%arg0: i32) -> (i32, i32) {
    %c0_i32 = arith.constant 0 : i32
    %c0_i32_0 = arith.constant 0 : i32
    %c0_i32_1 = arith.constant 0 : i32
    return %c0_i32, %c0_i32_0 : i32, i32
  }
  func.func @transform_4(%arg0: i32) -> (i32, i32) {
    %c0_i32 = arith.constant 0 : i32
    %c0_i32_0 = arith.constant 0 : i32
    %c0_i32_1 = arith.constant 0 : i32
    return %c0_i32, %c0_i32_0 : i32, i32
  }
  func.func @transform_5(%arg0: i32) -> (i32, i32) {
    %c0_i32 = arith.constant 0 : i32
    %c0_i32_0 = arith.constant 0 : i32
    %c0_i32_1 = arith.constant 0 : i32
    return %c0_i32, %c0_i32_0 : i32, i32
  }
  func.func @transform_6(%arg0: i32) -> (i32, i32) {
    %c0_i32 = arith.constant 0 : i32
    %c0_i32_0 = arith.constant 0 : i32
    %c0_i32_1 = arith.constant 0 : i32
    return %c0_i32, %c0_i32_0 : i32, i32
  }
  func.func @transform_7(%arg0: i32) -> (i32, i32) {
    %c0_i32 = arith.constant 0 : i32
    %c0_i32_0 = arith.constant 0 : i32
    %c0_i32_1 = arith.constant 0 : i32
    return %c0_i32, %c0_i32_0 : i32, i32
  }
  func.func @transform_8(%arg0: i32) -> (i32, i32) {
    %c0_i32 = arith.constant 0 : i32
    %c0_i32_0 = arith.constant 0 : i32
    %c0_i32_1 = arith.constant 0 : i32
    return %c0_i32, %c0_i32_0 : i32, i32
  }
  func.func @transform_9(%arg0: i32) -> (i32, i32) {
    %c0_i32 = arith.constant 0 : i32
    %c0_i32_0 = arith.constant 0 : i32
    %c0_i32_1 = arith.constant 0 : i32
    return %c0_i32, %c0_i32_0 : i32, i32
  }
  func.func @transform_10(%arg0: i32) -> (i32, i32) {
    %c0_i32 = arith.constant 0 : i32
    %c0_i32_0 = arith.constant 0 : i32
    %c0_i32_1 = arith.constant 0 : i32
    return %c0_i32, %c0_i32_0 : i32, i32
  }
  func.func @transform_11(%arg0: i32) -> (i32, i32) {
    %c0_i32 = arith.constant 0 : i32
    %c0_i32_0 = arith.constant 0 : i32
    return %arg0, %c0_i32 : i32, i32
  }
}

</mosaic_0001>

<bundles_post_ra>
// kernel: mul.10
= control target key start
LH: loop header
LB: loop body
LE: loop exit
PB: predicated region body
PF: predicated region fallthrough
CT: control target
= control target key end

     0   :  { %vm3_vm0 = vcmask 523264   ;;  %s19_s8 = smov 64   ;;  %vm9_vm1 = vcmask 1048064   ;;  %s39_s0 = inlined_call_operand.vmem [shape: f32[8,64], index: 0, kind: input, shape index: {}]   ;;  %s40_s1 = inlined_call_operand.vmem [shape: f32[512], index: 1, kind: output, shape index: {}]  }
   0x1   :  { %v17_v0 = vld [vmem:[%s39_s0 + $0x1] ss:$2 sm:$0xf]   ;;  %v2_v1 = vld [vmem:[%s39_s0] ss:$2 sm:$0xf]  }
   0x2   :  { %7 = vrot.lane.b32.xlu0 %v17_v0, %s19_s8  ;;  %4 = vst.msk [vmem:[#allocation0] sm:$0xf] %vm3_vm0, %v2_v1  }
  0x74   :  { %v8_v2 = vpop.permute.xlu0 %7  }
  0x75   :  { %10 = vst.msk [vmem:[#allocation0] sm:$0xf] %vm9_vm1, %v8_v2  }
  0x7c   :  { %v14_v3 = vld [vmem:[#allocation0] sm:$0xf] }
  0x7d   :  { %16 = vst [vmem:[%s40_s1] sm:$0xf] %v14_v3 }

// kernel: forward.2
= control target key start
LH: loop header
LB: loop body
LE: loop exit
PB: predicated region body
PF: predicated region fallthrough
CT: control target
= control target key end

     0   :  { %10 = vsyncpa [#allocation3], 0  ;;  %s569_s0 = inlined_call_operand.vmem [shape: f32[8,64], index: 0, kind: input, shape index: {}]   ;;  %s570_s1 = inlined_call_operand.hbm [shape: f32[64,512], index: 1, kind: input, shape index: {}]   ;;  %s571_s2 = inlined_call_operand.hbm [shape: f32[1,512], index: 2, kind: input, shape index: {}]   ;;  %s572_s3 = inlined_call_operand.vmem [shape: f32[1,512], index: 3, kind: output, shape index: {0}]   ;;  %s573_s4 = inlined_call_operand.vmem [shape: f32[1,512], index: 4, kind: output, shape index: {1}]  }
   0x1   :  { %11 = vsyncpa [#allocation5], 0  ;;  %s471_s15 = smov [#allocation2]   ;;  %s423_s19 = scalar_lea.hbm %s570_s1, 4096 }
   0x2   :  { %s19_s16 = sshll.u32 %s471_s15, 4  ;;  %p424_p0 = scmp.ne.s32.totalorder %s570_s1, %s423_s19  ;;  %s20_s16 = int_to_ptr.vmem [resolvable:$true] %s19_s16 }
   0x3   :  { %p427_p1 = scmp.lt.u32.totalorder %s423_s19, %s570_s1 }
   0x5   :  { %p429_p2 = pnand %p427_p1, %p424_p0 }
   0x7   :  { %432 = shalt.err (!%p429_p2)
}
   0x8   :  { %s433_s24 = scalar_lea.vmem %s20_s16, 4096  ;;  %p438_p4 = scmp.lt.s32.totalorder %s20_s16, %s20_s16 }
   0x9   :  { %p434_p3 = scmp.ne.s32.totalorder %s20_s16, %s433_s24  ;;  %p439_p5 = scmp.lt.s32.totalorder %s433_s24, %s433_s24 }
   0xb   :  { %p440_p6 = por %p439_p5, %p438_p4 }
   0xd   :  { %p441_p7 = pnand %p440_p6, %p434_p3 }
   0xf   :  { %444 = shalt.err (!%p441_p7)
}
  0x10   :  { %s472_s25 = smov 512   ;;  %s473_s26 = smov 32  }
  0x11   :  { %25 = dma.hbm_to_vmem [thread:$0]  %s570_s1, 4096, %s20_s16, [#allocation3], %s472_s25, %s472_s25, %s473_s26  }
  0x12   :  { %s474_s29 = smov [#allocation4]   ;;  %s445_s7 = scalar_lea.hbm %s571_s2, 64 }
  0x13   :  { %s32_s30 = sshll.u32 %s474_s29, 4  ;;  %p446_p8 = scmp.ne.s32.totalorder %s571_s2, %s445_s7  ;;  %s33_s30 = int_to_ptr.vmem [resolvable:$true] %s32_s30 }
  0x14   :  { %p449_p9 = scmp.lt.u32.totalorder %s445_s7, %s571_s2 }
  0x16   :  { %p451_p10 = pnand %p449_p9, %p446_p8 }
  0x18   :  { %454 = shalt.err (!%p451_p10)
}
  0x19   :  { %s455_s12 = scalar_lea.vmem %s33_s30, 64  ;;  %p460_p12 = scmp.lt.s32.totalorder %s33_s30, %s33_s30 }
  0x1a   :  { %p456_p11 = scmp.ne.s32.totalorder %s33_s30, %s455_s12  ;;  %p461_p13 = scmp.lt.s32.totalorder %s455_s12, %s455_s12 }
  0x1c   :  { %p462_p0 = por %p461_p13, %p460_p12 }
  0x1e   :  { %p463_p1 = pnand %p462_p0, %p456_p11 }
  0x20   :  { %466 = shalt.err (!%p463_p1)
}
  0x21   :  { %35 = dma.hbm_to_vmem [thread:$0]  %s571_s2, 64, %s33_s30, [#allocation5]  }
  0x22   :  { %467 = dma.done.wait [#allocation3], 4096  }
  0x23   :  { %468 = vsyncadd [#allocation3], 4294963200 }
  0x24   :  { %469 = dma.done.wait [#allocation5], 64  }
  0x25   :  { %470 = vsyncadd [#allocation5], 4294967232  ;;  %v77_v0 = vlaneseq  ;;  %v475_v1 = vmov 0.0   ;;  %v44_v3 = vld [vmem:[#allocation2 + $0x8] sm:$0xff]  ;;  %v46_v5 = vld [vmem:[#allocation2 + $0x18] sm:$0xff]  ;;  %vm97_vm1 = vcmask 523264  }
  0x26   :  { %165 = vmatprep.mubr.f32.mxu0 %v475_v1  ;;  %236 = vmatprep.mubr.f32.mxu1 %v475_v1  ;;  %v48_v4 = vld [vmem:[#allocation2 + $0x28] sm:$0xff]  ;;  %v50_v7 = vld [vmem:[#allocation2 + $0x38] sm:$0xff]  ;;  %v43_v8 = vld [vmem:[#allocation2] sm:$0xff]  ;;  %v476_v57 = vmov 1966171168  }
  0x27   :  { %vm527_vm0 = vcmp.lt.s32.totalorder %v77_v0, 512  ;;  %v385_v6 = vpack.c.bf16 %v48_v4, %v44_v3  ;;  %v47_v9 = vld [vmem:[#allocation2 + $0x20] sm:$0xff]  ;;  %v401_v10 = vpack.c.bf16 %v50_v7, %v46_v5  ;;  %v45_v12 = vld [vmem:[#allocation2 + $0x10] sm:$0xff]  ;;  %v52_v14 = vld [vmem:[#allocation2 + $0x48] sm:$0xff]  ;;  %v78_v52 = vshrl.u32 %v77_v0, 7 }
  0x28   :  { %251 = vst.msk [vmem:[%s572_s3] sm:$0xf] %vm527_vm0, %v475_v1  ;;  %252 = vst.msk [vmem:[%s573_s4] sm:$0xf] %vm527_vm0, %v475_v1  ;;  %v387_v11 = vpack.c.bf16 %v47_v9, %v43_v8  ;;  %v49_v13 = vld [vmem:[#allocation2 + $0x30] sm:$0xff]  ;;  %v56_v16 = vld [vmem:[#allocation2 + $0x68] sm:$0xff]  ;;  %v285_v58 = vunpack.c.l.s4 %v476_v57 }
  0x29   :  { %386 = vmatprep.subr.bf16.mxu0 %v385_v6  ;;  %v403_v15 = vpack.c.bf16 %v49_v13, %v45_v12  ;;  %v54_v17 = vld [vmem:[#allocation2 + $0x58] sm:$0xff]  ;;  %402 = vmatprep.subr.bf16.mxu1 %v401_v10  ;;  %v389_v19 = vpack.c.bf16 %v56_v16, %v52_v14  ;;  %v51_v21 = vld [vmem:[#allocation2 + $0x40] sm:$0xff]  ;;  %v53_v23 = vld [vmem:[#allocation2 + $0x50] sm:$0xff]  ;;  %v79_v53 = vsub.s32 0, %v78_v52  ;;  %v87_v55 = vsub.s32 2, %v78_v52 }
  0x2a   :  { %v58_v18 = vld [vmem:[#allocation2 + $0x78] sm:$0xff]  ;;  %388 = vmatpush1.bf16.msra.mxu0 %v387_v11  ;;  %v55_v22 = vld [vmem:[#allocation2 + $0x60] sm:$0xff]  ;;  %v57_v25 = vld [vmem:[#allocation2 + $0x70] sm:$0xff]  ;;  %v83_v56 = vsub.s32 1, %v78_v52  ;;  %v91_v59 = vsub.s32 3, %v78_v52  ;;  %v286_v63 = vunpack.c.0.s8 %v285_v58 }
  0x2b   :  { %v405_v20 = vpack.c.bf16 %v58_v18, %v54_v17  ;;  %404 = vmatpush1.bf16.msra.mxu1 %v403_v15  ;;  %v391_v24 = vpack.c.bf16 %v55_v22, %v51_v21  ;;  %v60_v26 = vld [vmem:[#allocation2 + $0x88] sm:$0xff]  ;;  %390 = vmatprep.subr.bf16.mxu0 %v389_v19  ;;  %v407_v28 = vpack.c.bf16 %v57_v25, %v53_v23  ;;  %v62_v30 = vld [vmem:[#allocation2 + $0x98] sm:$0xff]  ;;  %v59_v32 = vld [vmem:[#allocation2 + $0x80] sm:$0xff] }
  0x2c   :  { %v64_v27 = vld [vmem:[#allocation2 + $0xa8] sm:$0xff]  ;;  %v66_v31 = vld [vmem:[#allocation2 + $0xb8] sm:$0xff]  ;;  %v63_v34 = vld [vmem:[#allocation2 + $0xa0] sm:$0xff]  ;;  %v545_v0 = vsub.s32 %v286_v63, %v78_v52 }
  0x2d   :  { %406 = vmatprep.subr.bf16.mxu1 %v405_v20  ;;  %v393_v29 = vpack.c.bf16 %v64_v27, %v60_v26  ;;  %v409_v33 = vpack.c.bf16 %v66_v31, %v62_v30  ;;  %v61_v35 = vld [vmem:[#allocation2 + $0x90] sm:$0xff]  ;;  %v395_v37 = vpack.c.bf16 %v63_v34, %v59_v32  ;;  %v68_v38 = vld [vmem:[#allocation2 + $0xc8] sm:$0xff]  ;;  %v70_v40 = vld [vmem:[#allocation2 + $0xd8] sm:$0xff] }
  0x2e   :  { %v65_v36 = vld [vmem:[#allocation2 + $0xb0] sm:$0xff]  ;;  %392 = vmatpush1.bf16.msra.mxu0 %v391_v24  ;;  %v72_v39 = vld [vmem:[#allocation2 + $0xe8] sm:$0xff]  ;;  %v74_v43 = vld [vmem:[#allocation2 + $0xf8] sm:$0xff] }
  0x2f   :  { %408 = vmatpush1.bf16.msra.mxu1 %v407_v28  ;;  %394 = vmatprep.subr.bf16.mxu0 %v393_v29  ;;  %v411_v41 = vpack.c.bf16 %v65_v36, %v61_v35  ;;  %v397_v42 = vpack.c.bf16 %v72_v39, %v68_v38  ;;  %v67_v44 = vld [vmem:[#allocation2 + $0xc0] sm:$0xff]  ;;  %v413_v46 = vpack.c.bf16 %v74_v43, %v70_v40  ;;  %v69_v47 = vld [vmem:[#allocation2 + $0xd0] sm:$0xff]  ;;  %v42_v51 = vld [vmem:[%s569_s0] sm:$0xff] }
  0x30   :  { %v71_v45 = vld [vmem:[#allocation2 + $0xe0] sm:$0xff]  ;;  %410 = vmatprep.subr.bf16.mxu1 %v409_v33  ;;  %v73_v48 = vld [vmem:[#allocation2 + $0xf0] sm:$0xff] }
  0x31   :  { %v399_v49 = vpack.c.bf16 %v71_v45, %v67_v44  ;;  %v415_v50 = vpack.c.bf16 %v73_v48, %v69_v47  ;;  %v75_v54 = vld [vmem:[#allocation4] sm:$0xf] }
  0x32   :  { %396 = vmatpush1.bf16.msra.mxu0 %v395_v37  ;;  %v80_v60 = vrot.slane %v75_v54, %v79_v53  ;;  %v88_v61 = vrot.slane %v75_v54, %v87_v55  ;;  %v84_v62 = vrot.slane %v75_v54, %v83_v56  ;;  %v92_v1 = vrot.slane %v75_v54, %v91_v59 }
  0x33   :  { %412 = vmatpush1.bf16.msra.mxu1 %v411_v41  ;;  %398 = vmatprep.subr.bf16.mxu0 %v397_v42 }
  0x34   :  { %414 = vmatprep.subr.bf16.mxu1 %v413_v46 }
  0x36   :  { %400 = vmatpush1.bf16.msra.mxu0 %v399_v49 }
  0x37   :  { %416 = vmatpush1.bf16.msra.mxu1 %v415_v50 }
  0x39   :  { %383 = vmatmul.mubr.msk.f32.vlgmr.msra.gmra.mrb[0].mxu0 %vm97_vm1, %v42_v51 }
  0x3a   :  { %384 = vmatmul.mubr.msk.f32.vlgmr.msra.gmra.mrb[0].mxu1 %vm97_vm1, %v42_v51 }
 0x10c   :  { %v167_v3 = vpop.f32.mrb[0].mxu0 }
 0x10d   :  { %v168_v4 = vadd.f32 %v167_v3, %v80_v60  ;;  %v238_v5 = vpop.f32.mrb[0].mxu1  ;;  %v169_v6 = vpop.f32.mrb[1].mxu0 }
 0x10e   :  { %v239_v7 = vadd.f32 %v238_v5, %v88_v61  ;;  %v170_v8 = vadd.f32 %v169_v6, %v84_v62  ;;  %v240_v9 = vpop.f32.mrb[1].mxu1 }
 0x10f   :  { %v254_v10 = vrot.slane %v168_v4, 4  ;;  %v314_v11 = vmul.f32 %v168_v4, %v168_v4  ;;  %v241_v12 = vadd.f32 %v240_v9, %v92_v1 }
 0x110   :  { %v266_v13 = vrot.slane %v239_v7, 4  ;;  %v316_v14 = vmul.f32 %v239_v7, %v239_v7  ;;  %v260_v15 = vrot.slane %v170_v8, 4  ;;  %v315_v16 = vmul.f32 %v170_v8, %v170_v8 }
 0x111   :  { %v255_v17 = vadd.f32 %v254_v10, %v168_v4  ;;  %v318_v18 = vrot.slane %v314_v11, 4  ;;  %v272_v19 = vrot.slane %v241_v12, 4  ;;  %v317_v20 = vmul.f32 %v241_v12, %v241_v12  ;;  %v253_v10 = vld [vmem:[%s572_s3] sm:$0xf] }
 0x112   :  { %v267_v21 = vadd.f32 %v266_v13, %v239_v7  ;;  %v330_v22 = vrot.slane %v316_v14, 4  ;;  %v261_v23 = vadd.f32 %v260_v15, %v170_v8  ;;  %v324_v24 = vrot.slane %v315_v16, 4  ;;  %v313_v13 = vld [vmem:[%s573_s4] sm:$0xf] }
 0x113   :  { %v256_v25 = vrot.slane %v255_v17, 2  ;;  %v319_v26 = vadd.f32 %v318_v18, %v314_v11  ;;  %v273_v27 = vadd.f32 %v272_v19, %v241_v12  ;;  %v336_v28 = vrot.slane %v317_v20, 4 }
 0x114   :  { %v268_v29 = vrot.slane %v267_v21, 2  ;;  %v331_v30 = vadd.f32 %v330_v22, %v316_v14  ;;  %v262_v31 = vrot.slane %v261_v23, 2  ;;  %v325_v32 = vadd.f32 %v324_v24, %v315_v16 }
 0x115   :  { %v257_v33 = vadd.f32 %v256_v25, %v255_v17  ;;  %v320_v34 = vrot.slane %v319_v26, 2  ;;  %v274_v35 = vrot.slane %v273_v27, 2  ;;  %v337_v36 = vadd.f32 %v336_v28, %v317_v20 }
 0x116   :  { %v269_v37 = vadd.f32 %v268_v29, %v267_v21  ;;  %v332_v38 = vrot.slane %v331_v30, 2  ;;  %v263_v39 = vadd.f32 %v262_v31, %v261_v23  ;;  %v326_v40 = vrot.slane %v325_v32, 2 }
 0x117   :  { %v258_v41 = vrot.slane %v257_v33, 1  ;;  %v321_v42 = vadd.f32 %v320_v34, %v319_v26  ;;  %v275_v43 = vadd.f32 %v274_v35, %v273_v27  ;;  %v338_v44 = vrot.slane %v337_v36, 2 }
 0x118   :  { %v270_v45 = vrot.slane %v269_v37, 1  ;;  %v333_v46 = vadd.f32 %v332_v38, %v331_v30  ;;  %v264_v47 = vrot.slane %v263_v39, 1  ;;  %v327_v48 = vadd.f32 %v326_v40, %v325_v32 }
 0x119   :  { %v259_v49 = vadd.f32 %v258_v41, %v257_v33  ;;  %v322_v50 = vrot.slane %v321_v42, 1  ;;  %v276_v51 = vrot.slane %v275_v43, 1  ;;  %v339_v52 = vadd.f32 %v338_v44, %v337_v36 }
 0x11a   :  { %v271_v53 = vadd.f32 %v270_v45, %v269_v37  ;;  %v334_v54 = vrot.slane %v333_v46, 1  ;;  %v265_v55 = vadd.f32 %v264_v47, %v263_v39  ;;  %v328_v56 = vrot.slane %v327_v48, 1 }
 0x11b   :  { %v323_v57 = vadd.f32 %v322_v50, %v321_v42  ;;  %v277_v58 = vadd.f32 %v276_v51, %v275_v43  ;;  %v340_v59 = vrot.slane %v339_v52, 1 }
 0x11c   :  { %v335_v60 = vadd.f32 %v334_v54, %v333_v46  ;;  %v282_v61 = vcombine.low %v259_v49, %v265_v55  ;;  %v329_v62 = vadd.f32 %v328_v56, %v327_v48 }
 0x11d   :  { %v283_v63 = vcombine.low %v271_v53, %v277_v58  ;;  %v341_v1 = vadd.f32 %v340_v59, %v339_v52 }
 0x11e   :  { %v290_v3 = vrot.slane %v282_v61, %v545_v0  ;;  %v346_v4 = vcombine.low %v323_v57, %v329_v62 }
 0x11f   :  { %v297_v5 = vrot.slane %v283_v63, %v545_v0  ;;  %v347_v6 = vcombine.low %v335_v60, %v341_v1 }
 0x120   :  { %v354_v7 = vrot.slane %v346_v4, %v545_v0 }
 0x121   :  { %v298_v8 = vcombine.low %v290_v3, %v297_v5  ;;  %v361_v9 = vrot.slane %v347_v6, %v545_v0 }
 0x123   :  { %v305_v11 = vrot.slane %v298_v8, %v545_v0  ;;  %v362_v12 = vcombine.low %v354_v7, %v361_v9 }
 0x125   :  { %v307_v14 = vadd.f32 %v305_v11, %v253_v10  ;;  %v369_v15 = vrot.slane %v362_v12, %v545_v0 }
 0x127   :  { %312 = vst.msk [vmem:[%s572_s3] sm:$0xf] %vm527_vm0, %v307_v14  ;;  %v371_v16 = vadd.f32 %v369_v15, %v313_v13 }
 0x129   :  { %372 = vst.msk [vmem:[%s573_s4] sm:$0xf] %vm527_vm0, %v371_v16 }
 0x12a   :  { %381 = vsyncpa [#allocation3], 1 }
 0x12b   :  { %382 = vsyncpa [#allocation5], 1 }

// kernel: forward.3
= control target key start
LH: loop header
LB: loop body
LE: loop exit
PB: predicated region body
PF: predicated region fallthrough
CT: control target
= control target key end

     0   :  { %16 = vsyncpa [#allocation3], 0  ;;  %s4545_s0 = inlined_call_operand.vmem [shape: f32[8,64], index: 0, kind: input, shape index: {}]   ;;  %s4546_s1 = inlined_call_operand.vmem [shape: f32[8,27], index: 1, kind: input, shape index: {}]   ;;  %s4547_s2 = inlined_call_operand.vmem [shape: f32[64,512], index: 2, kind: input, shape index: {}]   ;;  %s4548_s3 = inlined_call_operand.hbm [shape: f32[512,768], index: 3, kind: input, shape index: {}]   ;;  %s4549_s4 = inlined_call_operand.vmem [shape: f32[1,512], index: 4, kind: input, shape index: {}]   ;;  %s4550_s5 = inlined_call_operand.hbm [shape: f32[1,768], index: 5, kind: input, shape index: {}]   ;;  %s4551_s6 = inlined_call_operand.hbm [shape: f32[27,12], index: 6, kind: input, shape index: {}]   ;;  %s4552_s7 = inlined_call_operand.vmem [shape: f32[768,12], index: 7, kind: input, shape index: {}]   ;;  %s4553_s8 = inlined_call_operand.hbm [shape: f32[12,4], index: 8, kind: input, shape index: {}]   ;;  %s4554_s9 = inlined_call_operand.hbm [shape: f32[4,768], index: 9, kind: input, shape index: {}]   ;;  %s4555_s10 = inlined_call_operand.vmem [shape: f32[768,192], index: 10, kind: input, shape index: {}]   ;;  %s4556_s11 = inlined_call_operand.vmem [shape: f32[8,192], index: 11, kind: output, shape index: {}]  }
   0x1   :  { %17 = vsyncpa [#allocation5], 0 }
   0x2   :  { %18 = vsyncpa [#allocation8], 0  ;;  %s3313_s17 = smov [#allocation4]   ;;  %s3197_s21 = scalar_lea.hbm %s4550_s5, 96 }
   0x3   :  { %s45_s18 = sshll.u32 %s3313_s17, 4  ;;  %p3198_p0 = scmp.ne.s32.totalorder %s4550_s5, %s3197_s21  ;;  %s46_s18 = int_to_ptr.vmem [resolvable:$true] %s45_s18 }
   0x4   :  { %p3201_p1 = scmp.lt.u32.totalorder %s3197_s21, %s4550_s5 }
   0x6   :  { %p3203_p2 = pnand %p3201_p1, %p3198_p0 }
   0x8   :  { %3206 = shalt.err (!%p3203_p2)
}
   0x9   :  { %s3207_s26 = scalar_lea.vmem %s46_s18, 96  ;;  %p3212_p4 = scmp.lt.s32.totalorder %s46_s18, %s46_s18 }
   0xa   :  { %p3208_p3 = scmp.ne.s32.totalorder %s46_s18, %s3207_s26  ;;  %p3213_p5 = scmp.lt.s32.totalorder %s3207_s26, %s3207_s26 }
   0xc   :  { %p3214_p6 = por %p3213_p5, %p3212_p4 }
   0xe   :  { %p3215_p7 = pnand %p3214_p6, %p3208_p3 }
  0x10   :  { %3218 = shalt.err (!%p3215_p7)
}
  0x11   :  { %48 = dma.hbm_to_vmem [thread:$0]  %s4550_s5, 96, %s46_s18, [#allocation5]  }
  0x12   :  { %s3314_s29 = smov [#allocation7]   ;;  %s3315_s12 = smov [#allocation2]  }
  0x13   :  { %s68_s30 = sshll.u32 %s3314_s29, 4  ;;  %s30_s13 = sshll.u32 %s3315_s12, 4  ;;  %s69_s30 = int_to_ptr.vmem [resolvable:$true] %s68_s30  ;;  %s31_s13 = int_to_ptr.vmem [resolvable:$true] %s30_s13 }
  0x14   :  { %s3219_s16 = scalar_lea.hbm %s4553_s8, 256 }
  0x15   :  { %p3220_p8 = scmp.ne.s32.totalorder %s4553_s8, %s3219_s16  ;;  %p3223_p9 = scmp.lt.u32.totalorder %s3219_s16, %s4553_s8 }
  0x17   :  { %p3225_p10 = pnand %p3223_p9, %p3220_p8 }
  0x19   :  { %3228 = shalt.err (!%p3225_p10)
}
  0x1a   :  { %s3229_s5 = scalar_lea.vmem %s69_s30, 256  ;;  %p3234_p12 = scmp.lt.s32.totalorder %s69_s30, %s69_s30 }
  0x1b   :  { %p3230_p11 = scmp.ne.s32.totalorder %s69_s30, %s3229_s5  ;;  %p3235_p13 = scmp.lt.s32.totalorder %s3229_s5, %s3229_s5 }
  0x1d   :  { %p3236_p0 = por %p3235_p13, %p3234_p12 }
  0x1f   :  { %p3237_p1 = pnand %p3236_p0, %p3230_p11 }
  0x21   :  { %3240 = shalt.err (!%p3237_p1)
}
  0x22   :  { %s3316_s18 = smov 128   ;;  %s3317_s22 = smov 8  }
  0x23   :  { %74 = dma.hbm_to_vmem [thread:$0]  %s4553_s8, 256, %s69_s30, [#allocation8], %s3316_s18, %s3316_s18, %s3317_s22  }
  0x24   :  { %s3241_s27 = scalar_lea.hbm %s4548_s3, 49152 }
  0x25   :  { %p3242_p2 = scmp.ne.s32.totalorder %s4548_s3, %s3241_s27  ;;  %p3245_p3 = scmp.lt.u32.totalorder %s3241_s27, %s4548_s3 }
  0x27   :  { %p3247_p4 = pnand %p3245_p3, %p3242_p2 }
  0x29   :  { %3250 = shalt.err (!%p3247_p4)
}
  0x2a   :  { %s3251_s15 = scalar_lea.vmem %s31_s13, 49152  ;;  %p3256_p6 = scmp.lt.s32.totalorder %s31_s13, %s31_s13 }
  0x2b   :  { %p3252_p5 = scmp.ne.s32.totalorder %s31_s13, %s3251_s15  ;;  %p3257_p7 = scmp.lt.s32.totalorder %s3251_s15, %s3251_s15 }
  0x2d   :  { %p3258_p8 = por %p3257_p7, %p3256_p6 }
  0x2f   :  { %p3259_p9 = pnand %p3258_p8, %p3252_p5 }
  0x31   :  { %3262 = shalt.err (!%p3259_p9)
}
  0x32   :  { %s3318_s8 = smov 768   ;;  %s3319_s30 = smov 48  }
  0x33   :  { %36 = dma.hbm_to_vmem [thread:$0]  %s4548_s3, 49152, %s31_s13, [#allocation3], %s3318_s8, %s3318_s8, %s3319_s30  }
  0x34   :  { %s3320_s19 = smov [#allocation6]   ;;  %s3321_s21 = smov [#allocation9]  }
  0x35   :  { %s54_s20 = sshll.u32 %s3320_s19, 4  ;;  %s81_s5 = sshll.u32 %s3321_s21, 4  ;;  %s55_s20 = int_to_ptr.vmem [resolvable:$true] %s54_s20  ;;  %s82_s5 = int_to_ptr.vmem [resolvable:$true] %s81_s5 }
  0x36   :  { %s3263_s25 = scalar_lea.hbm %s4551_s6, 512 }
  0x37   :  { %p3264_p10 = scmp.ne.s32.totalorder %s4551_s6, %s3263_s25  ;;  %p3267_p11 = scmp.lt.u32.totalorder %s3263_s25, %s4551_s6 }
  0x39   :  { %p3269_p12 = pnand %p3267_p11, %p3264_p10 }
  0x3b   :  { %3272 = shalt.err (!%p3269_p12)
}
  0x3c   :  { %s3273_s3 = scalar_lea.vmem %s55_s20, 512  ;;  %p3278_p0 = scmp.lt.s32.totalorder %s55_s20, %s55_s20 }
  0x3d   :  { %p3274_p13 = scmp.ne.s32.totalorder %s55_s20, %s3273_s3  ;;  %p3279_p1 = scmp.lt.s32.totalorder %s3273_s3, %s3273_s3 }
  0x3f   :  { %p3280_p2 = por %p3279_p1, %p3278_p0 }
  0x41   :  { %p3281_p3 = pnand %p3280_p2, %p3274_p13 }
  0x43   :  { %3284 = shalt.err (!%p3281_p3)
}
  0x44   :  { %60 = dma.hbm_to_vmem [thread:$0]  %s4551_s6, 512, %s55_s20, [#allocation5], %s3316_s18, %s3316_s18, %s3317_s22  }
  0x45   :  { %s3285_s8 = scalar_lea.hbm %s4554_s9, 384 }
  0x46   :  { %p3286_p4 = scmp.ne.s32.totalorder %s4554_s9, %s3285_s8  ;;  %p3289_p5 = scmp.lt.u32.totalorder %s3285_s8, %s4554_s9 }
  0x48   :  { %p3291_p6 = pnand %p3289_p5, %p3286_p4 }
  0x4a   :  { %3294 = shalt.err (!%p3291_p6)
}
  0x4b   :  { %s3295_s21 = scalar_lea.vmem %s82_s5, 384  ;;  %p3300_p8 = scmp.lt.s32.totalorder %s82_s5, %s82_s5 }
  0x4c   :  { %p3296_p7 = scmp.ne.s32.totalorder %s82_s5, %s3295_s21  ;;  %p3301_p9 = scmp.lt.s32.totalorder %s3295_s21, %s3295_s21 }
  0x4e   :  { %p3302_p10 = por %p3301_p9, %p3300_p8 }
  0x50   :  { %p3303_p11 = pnand %p3302_p10, %p3296_p7 }
  0x52   :  { %3306 = shalt.err (!%p3303_p11)
}
  0x53   :  { %84 = dma.hbm_to_vmem [thread:$0]  %s4554_s9, 384, %s82_s5, [#allocation8]  }
  0x54   :  { %3307 = dma.done.wait [#allocation3], 49152  }
  0x55   :  { %3308 = vsyncadd [#allocation3], 4294918144 }
  0x56   :  { %3309 = dma.done.wait [#allocation5], 608  }
  0x57   :  { %3310 = vsyncadd [#allocation5], 4294966688 }
  0x58   :  { %3311 = dma.done.wait [#allocation8], 640  }
  0x59   :  { %3312 = vsyncadd [#allocation8], 4294966656  ;;  %v3322_v0 = vmov 0.0   ;;  %v104_v1 = vld [vmem:[%s4547_s2 + $0x8] sm:$0xff]  ;;  %v103_v3 = vld [vmem:[%s4547_s2] sm:$0xff]  ;;  %vm157_vm0 = vcmask 523264  }
  0x5a   :  { %225 = vmatprep.mubr.f32.mxu0 %v3322_v0  ;;  %296 = vmatprep.mubr.f32.mxu1 %v3322_v0  ;;  %v108_v2 = vld [vmem:[%s4547_s2 + $0x28] sm:$0xff]  ;;  %v107_v5 = vld [vmem:[%s4547_s2 + $0x20] sm:$0xff]  ;;  %v106_v20 = vld [vmem:[%s4547_s2 + $0x18] sm:$0xff]  ;;  %vm1464_vm1 = vcmask 1042432   ;;  %vm3324_vm2 = vmmov 0   ;;  %vm3325_vm3 = vmmov 1  }
  0x5b   :  { %v2442_v4 = vpack.c.bf16 %v108_v2, %v104_v1  ;;  %v112_v6 = vld [vmem:[%s4547_s2 + $0x48] sm:$0xff]  ;;  %v2444_v8 = vpack.c.bf16 %v107_v5, %v103_v3  ;;  %v111_v10 = vld [vmem:[%s4547_s2 + $0x40] sm:$0xff]  ;;  %v110_v21 = vld [vmem:[%s4547_s2 + $0x38] sm:$0xff]  ;;  %vm1460_vm5 = vcmask 220160   ;;  %vm1545_vm6 = vcmask 1043456  }
  0x5c   :  { %v116_v7 = vld [vmem:[%s4547_s2 + $0x68] sm:$0xff]  ;;  %v115_v11 = vld [vmem:[%s4547_s2 + $0x60] sm:$0xff]  ;;  %v105_v22 = vld [vmem:[%s4547_s2 + $0x10] sm:$0xff]  ;;  %v2458_v24 = vpack.c.bf16 %v110_v21, %v106_v20  ;;  %vm1541_vm8 = vcmask 97280   ;;  %vm1619_vm9 = vcmask 31744  }
  0x5d   :  { %v2446_v9 = vpack.c.bf16 %v116_v7, %v112_v6  ;;  %v120_v12 = vld [vmem:[%s4547_s2 + $0x88] sm:$0xff]  ;;  %2443 = vmatprep.subr.bf16.mxu0 %v2442_v4  ;;  %v2448_v14 = vpack.c.bf16 %v115_v11, %v111_v10  ;;  %v119_v15 = vld [vmem:[%s4547_s2 + $0x80] sm:$0xff]  ;;  %v109_v23 = vld [vmem:[%s4547_s2 + $0x30] sm:$0xff] }
  0x5e   :  { %v124_v13 = vld [vmem:[%s4547_s2 + $0xa8] sm:$0xff]  ;;  %2445 = vmatpush1.bf16.msra.mxu0 %v2444_v8  ;;  %v123_v16 = vld [vmem:[%s4547_s2 + $0xa0] sm:$0xff]  ;;  %v2460_v25 = vpack.c.bf16 %v109_v23, %v105_v22  ;;  %v114_v26 = vld [vmem:[%s4547_s2 + $0x58] sm:$0xff]  ;;  %2459 = vmatprep.subr.bf16.mxu1 %v2458_v24 }
  0x5f   :  { %2447 = vmatprep.subr.bf16.mxu0 %v2446_v9  ;;  %v2450_v17 = vpack.c.bf16 %v124_v13, %v120_v12  ;;  %v128_v18 = vld [vmem:[%s4547_s2 + $0xc8] sm:$0xff]  ;;  %v118_v27 = vld [vmem:[%s4547_s2 + $0x78] sm:$0xff]  ;;  %v113_v28 = vld [vmem:[%s4547_s2 + $0x50] sm:$0xff]  ;;  %v2452_v29 = vpack.c.bf16 %v123_v16, %v119_v15 }
  0x60   :  { %v132_v19 = vld [vmem:[%s4547_s2 + $0xe8] sm:$0xff]  ;;  %v2462_v30 = vpack.c.bf16 %v118_v27, %v114_v26  ;;  %v117_v31 = vld [vmem:[%s4547_s2 + $0x70] sm:$0xff]  ;;  %v122_v32 = vld [vmem:[%s4547_s2 + $0x98] sm:$0xff]  ;;  %2461 = vmatpush1.bf16.msra.mxu1 %v2460_v25 }
  0x61   :  { %v126_v33 = vld [vmem:[%s4547_s2 + $0xb8] sm:$0xff]  ;;  %v2454_v34 = vpack.c.bf16 %v132_v19, %v128_v18  ;;  %v127_v35 = vld [vmem:[%s4547_s2 + $0xc0] sm:$0xff]  ;;  %v2464_v37 = vpack.c.bf16 %v117_v31, %v113_v28  ;;  %v121_v38 = vld [vmem:[%s4547_s2 + $0x90] sm:$0xff] }
  0x62   :  { %2449 = vmatpush1.bf16.msra.mxu0 %v2448_v14  ;;  %v131_v36 = vld [vmem:[%s4547_s2 + $0xe0] sm:$0xff]  ;;  %2463 = vmatprep.subr.bf16.mxu1 %v2462_v30  ;;  %v2466_v39 = vpack.c.bf16 %v126_v33, %v122_v32  ;;  %v125_v40 = vld [vmem:[%s4547_s2 + $0xb0] sm:$0xff]  ;;  %v130_v44 = vld [vmem:[%s4547_s2 + $0xd8] sm:$0xff] }
  0x63   :  { %2451 = vmatprep.subr.bf16.mxu0 %v2450_v17  ;;  %v308_v41 = vld [vmem:[#allocation2 + $0x8] sm:$0xff]  ;;  %v314_v42 = vld [vmem:[#allocation2 + $0x38] sm:$0xff]  ;;  %v2456_v43 = vpack.c.bf16 %v131_v36, %v127_v35  ;;  %v134_v45 = vld [vmem:[%s4547_s2 + $0xf8] sm:$0xff]  ;;  %v2468_v49 = vpack.c.bf16 %v125_v40, %v121_v38 }
  0x64   :  { %v2474_v46 = vpack.c.bf16 %v314_v42, %v308_v41  ;;  %v307_v47 = vld [vmem:[#allocation2] sm:$0xff]  ;;  %v313_v48 = vld [vmem:[#allocation2 + $0x30] sm:$0xff]  ;;  %2465 = vmatpush1.bf16.msra.mxu1 %v2464_v37  ;;  %v320_v50 = vld [vmem:[#allocation2 + $0x68] sm:$0xff]  ;;  %v2470_v52 = vpack.c.bf16 %v134_v45, %v130_v44 }
  0x65   :  { %v326_v51 = vld [vmem:[#allocation2 + $0x98] sm:$0xff]  ;;  %2467 = vmatprep.subr.bf16.mxu1 %v2466_v39  ;;  %v129_v53 = vld [vmem:[%s4547_s2 + $0xd0] sm:$0xff]  ;;  %v2476_v56 = vpack.c.bf16 %v313_v48, %v307_v47  ;;  %v319_v58 = vld [vmem:[#allocation2 + $0x60] sm:$0xff] }
  0x66   :  { %2453 = vmatpush1.bf16.msra.mxu0 %v2452_v29  ;;  %v133_v54 = vld [vmem:[%s4547_s2 + $0xf0] sm:$0xff]  ;;  %v102_v55 = vld [vmem:[%s4545_s0] sm:$0xff]  ;;  %v2478_v57 = vpack.c.bf16 %v326_v51, %v320_v50  ;;  %v325_v59 = vld [vmem:[#allocation2 + $0x90] sm:$0xff] }
  0x67   :  { %2455 = vmatprep.subr.bf16.mxu0 %v2454_v34  ;;  %v2472_v60 = vpack.c.bf16 %v133_v54, %v129_v53  ;;  %v332_v61 = vld [vmem:[#allocation2 + $0xc8] sm:$0xff]  ;;  %v338_v62 = vld [vmem:[#allocation2 + $0xf8] sm:$0xff]  ;;  %v2480_v63 = vpack.c.bf16 %v325_v59, %v319_v58  ;;  %v331_v2 = vld [vmem:[#allocation2 + $0xc0] sm:$0xff] }
  0x68   :  { %2469 = vmatpush1.bf16.msra.mxu1 %v2468_v49  ;;  %v2482_v1 = vpack.c.bf16 %v338_v62, %v332_v61  ;;  %v337_v3 = vld [vmem:[#allocation2 + $0xf0] sm:$0xff]  ;;  %v344_v4 = vld [vmem:[#allocation2 + $0x128] sm:$0xff]  ;;  %v350_v5 = vld [vmem:[#allocation2 + $0x158] sm:$0xff] }
  0x69   :  { %2471 = vmatprep.subr.bf16.mxu1 %v2470_v52  ;;  %v2484_v6 = vpack.c.bf16 %v337_v3, %v331_v2  ;;  %v2486_v7 = vpack.c.bf16 %v350_v5, %v344_v4  ;;  %v343_v8 = vld [vmem:[#allocation2 + $0x120] sm:$0xff]  ;;  %v349_v9 = vld [vmem:[#allocation2 + $0x150] sm:$0xff]  ;;  %v356_v10 = vld [vmem:[#allocation2 + $0x188] sm:$0xff] }
  0x6a   :  { %2457 = vmatpush1.bf16.msra.mxu0 %v2456_v43  ;;  %v362_v11 = vld [vmem:[#allocation2 + $0x1b8] sm:$0xff]  ;;  %v2488_v12 = vpack.c.bf16 %v349_v9, %v343_v8  ;;  %v355_v14 = vld [vmem:[#allocation2 + $0x180] sm:$0xff]  ;;  %v361_v15 = vld [vmem:[#allocation2 + $0x1b0] sm:$0xff] }
  0x6b   :  { %2475 = vmatprep.subr.bf16.mxu0 %v2474_v46  ;;  %v2490_v13 = vpack.c.bf16 %v362_v11, %v356_v10  ;;  %v368_v16 = vld [vmem:[#allocation2 + $0x1e8] sm:$0xff]  ;;  %v374_v17 = vld [vmem:[#allocation2 + $0x218] sm:$0xff]  ;;  %v2492_v18 = vpack.c.bf16 %v361_v15, %v355_v14  ;;  %v367_v20 = vld [vmem:[#allocation2 + $0x1e0] sm:$0xff] }
  0x6c   :  { %2473 = vmatpush1.bf16.msra.mxu1 %v2472_v60  ;;  %v2494_v19 = vpack.c.bf16 %v374_v17, %v368_v16  ;;  %v373_v21 = vld [vmem:[#allocation2 + $0x210] sm:$0xff]  ;;  %v380_v22 = vld [vmem:[#allocation2 + $0x248] sm:$0xff]  ;;  %v386_v23 = vld [vmem:[#allocation2 + $0x278] sm:$0xff] }
  0x6d   :  { %2296 = vmatmul.mubr.msk.f32.vlgmr.msra.gmra.mrb[0].mxu0 %vm157_vm0, %v102_v55  ;;  %v2496_v24 = vpack.c.bf16 %v373_v21, %v367_v20  ;;  %v2498_v25 = vpack.c.bf16 %v386_v23, %v380_v22  ;;  %v379_v26 = vld [vmem:[#allocation2 + $0x240] sm:$0xff]  ;;  %v385_v27 = vld [vmem:[#allocation2 + $0x270] sm:$0xff]  ;;  %v392_v28 = vld [vmem:[#allocation2 + $0x2a8] sm:$0xff] }
  0x6e   :  { %2477 = vmatpush1.bf16.msra.mxu0 %v2476_v56  ;;  %v398_v29 = vld [vmem:[#allocation2 + $0x2d8] sm:$0xff]  ;;  %v2500_v30 = vpack.c.bf16 %v385_v27, %v379_v26  ;;  %v391_v32 = vld [vmem:[#allocation2 + $0x2a0] sm:$0xff]  ;;  %v397_v33 = vld [vmem:[#allocation2 + $0x2d0] sm:$0xff] }
  0x6f   :  { %2479 = vmatprep.subr.bf16.mxu0 %v2478_v57  ;;  %2297 = vmatmul.mubr.msk.f32.vlgmr.msra.gmra.mrb[0].mxu1 %vm157_vm0, %v102_v55  ;;  %v2502_v31 = vpack.c.bf16 %v398_v29, %v392_v28  ;;  %v404_v34 = vld [vmem:[#allocation2 + $0x308] sm:$0xff]  ;;  %v410_v35 = vld [vmem:[#allocation2 + $0x338] sm:$0xff]  ;;  %v2504_v36 = vpack.c.bf16 %v397_v33, %v391_v32  ;;  %v403_v38 = vld [vmem:[#allocation2 + $0x300] sm:$0xff] }
  0x70   :  { %v2506_v37 = vpack.c.bf16 %v410_v35, %v404_v34  ;;  %v409_v39 = vld [vmem:[#allocation2 + $0x330] sm:$0xff]  ;;  %v416_v40 = vld [vmem:[#allocation2 + $0x368] sm:$0xff]  ;;  %v422_v41 = vld [vmem:[#allocation2 + $0x398] sm:$0xff] }
  0x71   :  { %v2508_v42 = vpack.c.bf16 %v409_v39, %v403_v38  ;;  %v2510_v43 = vpack.c.bf16 %v422_v41, %v416_v40  ;;  %v415_v44 = vld [vmem:[#allocation2 + $0x360] sm:$0xff]  ;;  %v421_v45 = vld [vmem:[#allocation2 + $0x390] sm:$0xff]  ;;  %v428_v46 = vld [vmem:[#allocation2 + $0x3c8] sm:$0xff] }
  0x72   :  { %2481 = vmatpush1.bf16.msra.mxu0 %v2480_v63  ;;  %v434_v47 = vld [vmem:[#allocation2 + $0x3f8] sm:$0xff]  ;;  %v2512_v48 = vpack.c.bf16 %v421_v45, %v415_v44  ;;  %v427_v50 = vld [vmem:[#allocation2 + $0x3c0] sm:$0xff]  ;;  %v433_v51 = vld [vmem:[#allocation2 + $0x3f0] sm:$0xff] }
  0x73   :  { %2483 = vmatprep.subr.bf16.mxu0 %v2482_v1  ;;  %v2514_v49 = vpack.c.bf16 %v434_v47, %v428_v46  ;;  %v440_v52 = vld [vmem:[#allocation2 + $0x428] sm:$0xff]  ;;  %v446_v53 = vld [vmem:[#allocation2 + $0x458] sm:$0xff]  ;;  %v2516_v54 = vpack.c.bf16 %v433_v51, %v427_v50  ;;  %v439_v56 = vld [vmem:[#allocation2 + $0x420] sm:$0xff] }
  0x74   :  { %v2518_v55 = vpack.c.bf16 %v446_v53, %v440_v52  ;;  %v445_v57 = vld [vmem:[#allocation2 + $0x450] sm:$0xff]  ;;  %v452_v58 = vld [vmem:[#allocation2 + $0x488] sm:$0xff]  ;;  %v458_v59 = vld [vmem:[#allocation2 + $0x4b8] sm:$0xff] }
  0x75   :  { %v2520_v60 = vpack.c.bf16 %v445_v57, %v439_v56  ;;  %v2522_v61 = vpack.c.bf16 %v458_v59, %v452_v58  ;;  %v451_v62 = vld [vmem:[#allocation2 + $0x480] sm:$0xff]  ;;  %v457_v63 = vld [vmem:[#allocation2 + $0x4b0] sm:$0xff]  ;;  %v464_v1 = vld [vmem:[#allocation2 + $0x4e8] sm:$0xff] }
  0x76   :  { %2485 = vmatpush1.bf16.msra.mxu0 %v2484_v6  ;;  %v470_v2 = vld [vmem:[#allocation2 + $0x518] sm:$0xff]  ;;  %v2524_v3 = vpack.c.bf16 %v457_v63, %v451_v62  ;;  %v463_v5 = vld [vmem:[#allocation2 + $0x4e0] sm:$0xff]  ;;  %v469_v6 = vld [vmem:[#allocation2 + $0x510] sm:$0xff] }
  0x77   :  { %2487 = vmatprep.subr.bf16.mxu0 %v2486_v7  ;;  %v2526_v4 = vpack.c.bf16 %v470_v2, %v464_v1  ;;  %v476_v7 = vld [vmem:[#allocation2 + $0x548] sm:$0xff]  ;;  %v482_v8 = vld [vmem:[#allocation2 + $0x578] sm:$0xff]  ;;  %v2528_v9 = vpack.c.bf16 %v469_v6, %v463_v5  ;;  %v475_v11 = vld [vmem:[#allocation2 + $0x540] sm:$0xff] }
  0x78   :  { %v2530_v10 = vpack.c.bf16 %v482_v8, %v476_v7  ;;  %v488_v14 = vld [vmem:[#allocation2 + $0x5a8] sm:$0xff]  ;;  %v494_v15 = vld [vmem:[#allocation2 + $0x5d8] sm:$0xff]  ;;  %v487_v17 = vld [vmem:[#allocation2 + $0x5a0] sm:$0xff] }
  0x79   :  { %v2534_v16 = vpack.c.bf16 %v494_v15, %v488_v14  ;;  %v502_v20 = vld [vmem:[#allocation2 + $0x618] sm:$0xff]  ;;  %v508_v21 = vld [vmem:[#allocation2 + $0x648] sm:$0xff]  ;;  %v501_v23 = vld [vmem:[#allocation2 + $0x610] sm:$0xff] }
  0x7a   :  { %2489 = vmatpush1.bf16.msra.mxu0 %v2488_v12  ;;  %v481_v12 = vld [vmem:[#allocation2 + $0x570] sm:$0xff]  ;;  %v2666_v22 = vpack.c.bf16 %v508_v21, %v502_v20  ;;  %v500_v26 = vld [vmem:[#allocation2 + $0x608] sm:$0xff]  ;;  %v506_v27 = vld [vmem:[#allocation2 + $0x638] sm:$0xff] }
  0x7b   :  { %2491 = vmatprep.subr.bf16.mxu0 %v2490_v13  ;;  %v2532_v13 = vpack.c.bf16 %v481_v12, %v475_v11  ;;  %v2538_v28 = vpack.c.bf16 %v506_v27, %v500_v26  ;;  %v514_v29 = vld [vmem:[#allocation2 + $0x678] sm:$0xff]  ;;  %v513_v32 = vld [vmem:[#allocation2 + $0x670] sm:$0xff]  ;;  %v519_v33 = vld [vmem:[#allocation2 + $0x6a0] sm:$0xff] }
  0x7c   :  { %2667 = vmatprep.subr.bf16.mxu1 %v2666_v22  ;;  %v2672_v34 = vpack.c.bf16 %v519_v33, %v513_v32  ;;  %v526_v35 = vld [vmem:[#allocation2 + $0x6d8] sm:$0xff]  ;;  %v525_v38 = vld [vmem:[#allocation2 + $0x6d0] sm:$0xff]  ;;  %v531_v39 = vld [vmem:[#allocation2 + $0x700] sm:$0xff] }
  0x7d   :  { %v2676_v40 = vpack.c.bf16 %v531_v39, %v525_v38  ;;  %v538_v41 = vld [vmem:[#allocation2 + $0x738] sm:$0xff]  ;;  %v537_v44 = vld [vmem:[#allocation2 + $0x730] sm:$0xff]  ;;  %v543_v45 = vld [vmem:[#allocation2 + $0x760] sm:$0xff] }
  0x7e   :  { %2493 = vmatpush1.bf16.msra.mxu0 %v2492_v18  ;;  %v493_v18 = vld [vmem:[#allocation2 + $0x5d0] sm:$0xff]  ;;  %v2680_v46 = vpack.c.bf16 %v543_v45, %v537_v44  ;;  %v550_v47 = vld [vmem:[#allocation2 + $0x798] sm:$0xff]  ;;  %v555_v51 = vld [vmem:[#allocation2 + $0x7c0] sm:$0xff] }
  0x7f   :  { %2495 = vmatprep.subr.bf16.mxu0 %v2494_v19  ;;  %v2536_v19 = vpack.c.bf16 %v493_v18, %v487_v17  ;;  %v549_v50 = vld [vmem:[#allocation2 + $0x790] sm:$0xff]  ;;  %v562_v53 = vld [vmem:[#allocation2 + $0x7f8] sm:$0xff]  ;;  %v567_v57 = vld [vmem:[#allocation2 + $0x820] sm:$0xff] }
  0x80   :  { %v2684_v52 = vpack.c.bf16 %v555_v51, %v549_v50  ;;  %v561_v56 = vld [vmem:[#allocation2 + $0x7f0] sm:$0xff]  ;;  %v574_v59 = vld [vmem:[#allocation2 + $0x858] sm:$0xff]  ;;  %v579_v63 = vld [vmem:[#allocation2 + $0x880] sm:$0xff] }
  0x81   :  { %v2688_v58 = vpack.c.bf16 %v567_v57, %v561_v56  ;;  %v573_v62 = vld [vmem:[#allocation2 + $0x850] sm:$0xff]  ;;  %v586_v2 = vld [vmem:[#allocation2 + $0x8b8] sm:$0xff]  ;;  %v591_v6 = vld [vmem:[#allocation2 + $0x8e0] sm:$0xff]  ;;  %v137_v56 = vlaneseq }
  0x82   :  { %2497 = vmatpush1.bf16.msra.mxu0 %v2496_v24  ;;  %v507_v24 = vld [vmem:[#allocation2 + $0x640] sm:$0xff]  ;;  %v2692_v1 = vpack.c.bf16 %v579_v63, %v573_v62  ;;  %v585_v5 = vld [vmem:[#allocation2 + $0x8b0] sm:$0xff]  ;;  %v598_v8 = vld [vmem:[#allocation2 + $0x918] sm:$0xff] }
  0x83   :  { %2499 = vmatprep.subr.bf16.mxu0 %v2498_v25  ;;  %v2668_v25 = vpack.c.bf16 %v507_v24, %v501_v23  ;;  %v2696_v7 = vpack.c.bf16 %v591_v6, %v585_v5  ;;  %v597_v11 = vld [vmem:[#allocation2 + $0x910] sm:$0xff]  ;;  %v603_v12 = vld [vmem:[#allocation2 + $0x940] sm:$0xff]  ;;  %v610_v14 = vld [vmem:[#allocation2 + $0x978] sm:$0xff]  ;;  %v3555_v57 = vshrl.u32 %v137_v56, 7 }
  0x84   :  { %v616_v15 = vld [vmem:[#allocation2 + $0x9a8] sm:$0xff]  ;;  %v609_v17 = vld [vmem:[#allocation2 + $0x970] sm:$0xff]  ;;  %v615_v18 = vld [vmem:[#allocation2 + $0x9a0] sm:$0xff] }
  0x85   :  { %2669 = vmatpush1.bf16.msra.mxu1 %v2668_v25  ;;  %v622_v20 = vld [vmem:[#allocation2 + $0x9d8] sm:$0xff]  ;;  %v628_v21 = vld [vmem:[#allocation2 + $0xa08] sm:$0xff]  ;;  %v621_v23 = vld [vmem:[#allocation2 + $0x9d0] sm:$0xff]  ;;  %v147_v63 = vsub.s32 2, %v3555_v57 }
  0x86   :  { %2501 = vmatpush1.bf16.msra.mxu0 %v2500_v30  ;;  %v520_v30 = vld [vmem:[#allocation2 + $0x6a8] sm:$0xff]  ;;  %v2706_v22 = vpack.c.bf16 %v628_v21, %v622_v20  ;;  %v627_v24 = vld [vmem:[#allocation2 + $0xa00] sm:$0xff]  ;;  %v634_v26 = vld [vmem:[#allocation2 + $0xa38] sm:$0xff] }
  0x87   :  { %2503 = vmatprep.subr.bf16.mxu0 %v2502_v31  ;;  %v2670_v31 = vpack.c.bf16 %v520_v30, %v514_v29  ;;  %v2708_v25 = vpack.c.bf16 %v627_v24, %v621_v23  ;;  %v640_v27 = vld [vmem:[#allocation2 + $0xa68] sm:$0xff]  ;;  %v633_v29 = vld [vmem:[#allocation2 + $0xa30] sm:$0xff]  ;;  %v639_v30 = vld [vmem:[#allocation2 + $0xa60] sm:$0xff] }
  0x88   :  { %v646_v32 = vld [vmem:[#allocation2 + $0xa98] sm:$0xff]  ;;  %v652_v33 = vld [vmem:[#allocation2 + $0xac8] sm:$0xff]  ;;  %v499_v5 = vld [vmem:[#allocation2 + $0x600] sm:$0xff] }
  0x89   :  { %2671 = vmatprep.subr.bf16.mxu1 %v2670_v31  ;;  %v2712_v31 = vpack.c.bf16 %v639_v30, %v633_v29  ;;  %v658_v38 = vld [vmem:[#allocation2 + $0xaf8] sm:$0xff]  ;;  %v664_v39 = vld [vmem:[#allocation2 + $0xb28] sm:$0xff]  ;;  %v505_v6 = vld [vmem:[#allocation2 + $0x630] sm:$0xff] }
  0x8a   :  { %2505 = vmatpush1.bf16.msra.mxu0 %v2504_v36  ;;  %2673 = vmatpush1.bf16.msra.mxu1 %v2672_v34  ;;  %v532_v36 = vld [vmem:[#allocation2 + $0x708] sm:$0xff]  ;;  %v2714_v34 = vpack.c.bf16 %v652_v33, %v646_v32  ;;  %v670_v44 = vld [vmem:[#allocation2 + $0xb58] sm:$0xff]  ;;  %vm2959_vm4 = vmpackc.low %vm1464_vm1, %vm3325_vm3 }
  0x8b   :  { %2507 = vmatprep.subr.bf16.mxu0 %v2506_v37  ;;  %v2674_v37 = vpack.c.bf16 %v532_v36, %v526_v35  ;;  %v645_v35 = vld [vmem:[#allocation2 + $0xa90] sm:$0xff]  ;;  %v651_v36 = vld [vmem:[#allocation2 + $0xac0] sm:$0xff]  ;;  %v676_v45 = vld [vmem:[#allocation2 + $0xb88] sm:$0xff] }
  0x8c   :  { %v682_v50 = vld [vmem:[#allocation2 + $0xbb8] sm:$0xff]  ;;  %v688_v51 = vld [vmem:[#allocation2 + $0xbe8] sm:$0xff]  ;;  %vm2963_vm7 = vmpackc.low %vm1545_vm6, %vm3325_vm3 }
  0x8d   :  { %2675 = vmatprep.subr.bf16.mxu1 %v2674_v37  ;;  %v2716_v37 = vpack.c.bf16 %v651_v36, %v645_v35  ;;  %v536_v29 = vld [vmem:[#allocation2 + $0x728] sm:$0xff]  ;;  %v542_v30 = vld [vmem:[#allocation2 + $0x758] sm:$0xff]  ;;  %v541_v35 = vld [vmem:[#allocation2 + $0x750] sm:$0xff] }
  0x8e   :  { %2509 = vmatpush1.bf16.msra.mxu0 %v2508_v42  ;;  %2677 = vmatpush1.bf16.msra.mxu1 %v2676_v40  ;;  %v544_v42 = vld [vmem:[#allocation2 + $0x768] sm:$0xff]  ;;  %v2718_v40 = vpack.c.bf16 %v664_v39, %v658_v38  ;;  %v2550_v33 = vpack.c.bf16 %v542_v30, %v536_v29  ;;  %v650_v30 = vld [vmem:[#allocation2 + $0xab8] sm:$0xff] }
  0x8f   :  { %2511 = vmatprep.subr.bf16.mxu0 %v2510_v43  ;;  %v2678_v43 = vpack.c.bf16 %v544_v42, %v538_v41  ;;  %v657_v41 = vld [vmem:[#allocation2 + $0xaf0] sm:$0xff]  ;;  %v663_v42 = vld [vmem:[#allocation2 + $0xb20] sm:$0xff]  ;;  %v548_v36 = vld [vmem:[#allocation2 + $0x788] sm:$0xff] }
  0x90   :  { %v644_v29 = vld [vmem:[#allocation2 + $0xa88] sm:$0xff] }
  0x91   :  { %2679 = vmatprep.subr.bf16.mxu1 %v2678_v43  ;;  %v2720_v43 = vpack.c.bf16 %v663_v42, %v657_v41  ;;  %v553_v41 = vld [vmem:[#allocation2 + $0x7b0] sm:$0xff]  ;;  %v560_v42 = vld [vmem:[#allocation2 + $0x7e8] sm:$0xff] }
  0x92   :  { %2513 = vmatpush1.bf16.msra.mxu0 %v2512_v48  ;;  %2681 = vmatpush1.bf16.msra.mxu1 %v2680_v46  ;;  %v556_v48 = vld [vmem:[#allocation2 + $0x7c8] sm:$0xff]  ;;  %v2722_v46 = vpack.c.bf16 %v676_v45, %v670_v44 }
  0x93   :  { %2515 = vmatprep.subr.bf16.mxu0 %v2514_v49  ;;  %v2682_v49 = vpack.c.bf16 %v556_v48, %v550_v47  ;;  %v669_v47 = vld [vmem:[#allocation2 + $0xb50] sm:$0xff]  ;;  %v675_v48 = vld [vmem:[#allocation2 + $0xb80] sm:$0xff] }
  0x95   :  { %2683 = vmatprep.subr.bf16.mxu1 %v2682_v49  ;;  %v2724_v49 = vpack.c.bf16 %v675_v48, %v669_v47  ;;  %v565_v47 = vld [vmem:[#allocation2 + $0x810] sm:$0xff]  ;;  %v572_v48 = vld [vmem:[#allocation2 + $0x848] sm:$0xff] }
  0x96   :  { %2517 = vmatpush1.bf16.msra.mxu0 %v2516_v54  ;;  %2685 = vmatpush1.bf16.msra.mxu1 %v2684_v52  ;;  %v568_v54 = vld [vmem:[#allocation2 + $0x828] sm:$0xff]  ;;  %v2726_v52 = vpack.c.bf16 %v688_v51, %v682_v50 }
  0x97   :  { %2519 = vmatprep.subr.bf16.mxu0 %v2518_v55  ;;  %v2686_v55 = vpack.c.bf16 %v568_v54, %v562_v53  ;;  %v681_v53 = vld [vmem:[#allocation2 + $0xbb0] sm:$0xff]  ;;  %v687_v54 = vld [vmem:[#allocation2 + $0xbe0] sm:$0xff] }
  0x99   :  { %2687 = vmatprep.subr.bf16.mxu1 %v2686_v55  ;;  %v2728_v55 = vpack.c.bf16 %v687_v54, %v681_v53  ;;  %v577_v53 = vld [vmem:[#allocation2 + $0x870] sm:$0xff]  ;;  %v584_v54 = vld [vmem:[#allocation2 + $0x8a8] sm:$0xff] }
  0x9a   :  { %2521 = vmatpush1.bf16.msra.mxu0 %v2520_v60  ;;  %2689 = vmatpush1.bf16.msra.mxu1 %v2688_v58  ;;  %v580_v60 = vld [vmem:[#allocation2 + $0x888] sm:$0xff]  ;;  %v139_v58 = vsub.s32 0, %v3555_v57 }
  0x9b   :  { %2523 = vmatprep.subr.bf16.mxu0 %v2522_v61  ;;  %v2690_v61 = vpack.c.bf16 %v580_v60, %v574_v59  ;;  %v135_v59 = vld [vmem:[%s4549_s4] sm:$0xf]  ;;  %v143_v60 = vsub.s32 1, %v3555_v57 }
  0x9d   :  { %2691 = vmatprep.subr.bf16.mxu1 %v2690_v61  ;;  %v140_v61 = vrot.slane %v135_v59, %v139_v58  ;;  %v144_v62 = vrot.slane %v135_v59, %v143_v60 }
  0x9e   :  { %2525 = vmatpush1.bf16.msra.mxu0 %v2524_v3  ;;  %2693 = vmatpush1.bf16.msra.mxu1 %v2692_v1  ;;  %v592_v3 = vld [vmem:[#allocation2 + $0x8e8] sm:$0xff] }
  0x9f   :  { %2527 = vmatprep.subr.bf16.mxu0 %v2526_v4  ;;  %v2694_v4 = vpack.c.bf16 %v592_v3, %v586_v2  ;;  %v151_v2 = vsub.s32 3, %v3555_v57 }
  0xa1   :  { %2695 = vmatprep.subr.bf16.mxu1 %v2694_v4 }
  0xa2   :  { %2529 = vmatpush1.bf16.msra.mxu0 %v2528_v9  ;;  %2697 = vmatpush1.bf16.msra.mxu1 %v2696_v7  ;;  %v604_v9 = vld [vmem:[#allocation2 + $0x948] sm:$0xff] }
  0xa3   :  { %2531 = vmatprep.subr.bf16.mxu0 %v2530_v10  ;;  %v2698_v10 = vpack.c.bf16 %v604_v9, %v598_v8  ;;  %v512_v8 = vld [vmem:[#allocation2 + $0x668] sm:$0xff]  ;;  %v518_v9 = vld [vmem:[#allocation2 + $0x698] sm:$0xff] }
  0xa5   :  { %2699 = vmatprep.subr.bf16.mxu1 %v2698_v10  ;;  %v148_v10 = vrot.slane %v135_v59, %v147_v63 }
  0xa6   :  { %2533 = vmatpush1.bf16.msra.mxu0 %v2532_v13  ;;  %v2700_v13 = vpack.c.bf16 %v603_v12, %v597_v11  ;;  %v2540_v12 = vpack.c.bf16 %v505_v6, %v499_v5  ;;  %v595_v6 = vld [vmem:[#allocation2 + $0x900] sm:$0xff] }
  0xa7   :  { %2535 = vmatprep.subr.bf16.mxu0 %v2534_v16  ;;  %v2702_v16 = vpack.c.bf16 %v616_v15, %v610_v14  ;;  %v2542_v15 = vpack.c.bf16 %v518_v9, %v512_v8  ;;  %v608_v8 = vld [vmem:[#allocation2 + $0x968] sm:$0xff]  ;;  %v614_v9 = vld [vmem:[#allocation2 + $0x998] sm:$0xff] }
  0xa8   :  { %2701 = vmatpush1.bf16.msra.mxu1 %v2700_v13  ;;  %v152_v13 = vrot.slane %v135_v59, %v151_v2 }
  0xa9   :  { %2703 = vmatprep.subr.bf16.mxu1 %v2702_v16  ;;  %v511_v16 = vld [vmem:[#allocation2 + $0x660] sm:$0xff] }
  0xaa   :  { %2537 = vmatpush1.bf16.msra.mxu0 %v2536_v19  ;;  %v2704_v19 = vpack.c.bf16 %v615_v18, %v609_v17  ;;  %v517_v17 = vld [vmem:[#allocation2 + $0x690] sm:$0xff]  ;;  %v524_v18 = vld [vmem:[#allocation2 + $0x6c8] sm:$0xff] }
  0xab   :  { %2539 = vmatprep.subr.bf16.mxu0 %v2538_v28  ;;  %v2710_v28 = vpack.c.bf16 %v640_v27, %v634_v26  ;;  %v2544_v23 = vpack.c.bf16 %v517_v17, %v511_v16  ;;  %v523_v26 = vld [vmem:[#allocation2 + $0x6c0] sm:$0xff]  ;;  %v529_v27 = vld [vmem:[#allocation2 + $0x6f0] sm:$0xff]  ;;  %v620_v16 = vld [vmem:[#allocation2 + $0x9c8] sm:$0xff] }
  0xac   :  { %2705 = vmatpush1.bf16.msra.mxu1 %v2704_v19  ;;  %v530_v19 = vld [vmem:[#allocation2 + $0x6f8] sm:$0xff]  ;;  %v2548_v32 = vpack.c.bf16 %v529_v27, %v523_v26  ;;  %v631_v26 = vld [vmem:[#allocation2 + $0xa20] sm:$0xff]  ;;  %v637_v27 = vld [vmem:[#allocation2 + $0xa50] sm:$0xff] }
  0xad   :  { %2707 = vmatprep.subr.bf16.mxu1 %v2706_v22  ;;  %v626_v17 = vld [vmem:[#allocation2 + $0x9f8] sm:$0xff] }
  0xb0   :  { %2709 = vmatpush1.bf16.msra.mxu1 %v2708_v25  ;;  %v2546_v25 = vpack.c.bf16 %v530_v19, %v524_v18  ;;  %v2578_v19 = vpack.c.bf16 %v626_v17, %v620_v16  ;;  %v346_v16 = vld [vmem:[#allocation2 + $0x138] sm:$0xff]  ;;  %v352_v17 = vld [vmem:[#allocation2 + $0x168] sm:$0xff] }
  0xb1   :  { %2711 = vmatprep.subr.bf16.mxu1 %v2710_v28 }
  0xb4   :  { %2713 = vmatpush1.bf16.msra.mxu1 %v2712_v31 }
  0xb5   :  { %2715 = vmatprep.subr.bf16.mxu1 %v2714_v34  ;;  %v535_v34 = vld [vmem:[#allocation2 + $0x720] sm:$0xff] }
  0xb6   :  { %v2552_v38 = vpack.c.bf16 %v541_v35, %v535_v34  ;;  %v643_v34 = vld [vmem:[#allocation2 + $0xa80] sm:$0xff]  ;;  %v649_v35 = vld [vmem:[#allocation2 + $0xab0] sm:$0xff] }
  0xb8   :  { %2717 = vmatpush1.bf16.msra.mxu1 %v2716_v37  ;;  %v554_v37 = vld [vmem:[#allocation2 + $0x7b8] sm:$0xff] }
  0xb9   :  { %2719 = vmatprep.subr.bf16.mxu1 %v2718_v40  ;;  %v2554_v39 = vpack.c.bf16 %v554_v37, %v548_v36  ;;  %v547_v40 = vld [vmem:[#allocation2 + $0x780] sm:$0xff]  ;;  %v656_v36 = vld [vmem:[#allocation2 + $0xae8] sm:$0xff]  ;;  %v662_v37 = vld [vmem:[#allocation2 + $0xb18] sm:$0xff] }
  0xba   :  { %v2556_v44 = vpack.c.bf16 %v553_v41, %v547_v40  ;;  %v655_v40 = vld [vmem:[#allocation2 + $0xae0] sm:$0xff]  ;;  %v661_v41 = vld [vmem:[#allocation2 + $0xb10] sm:$0xff] }
  0xbc   :  { %2721 = vmatpush1.bf16.msra.mxu1 %v2720_v43  ;;  %v566_v43 = vld [vmem:[#allocation2 + $0x818] sm:$0xff] }
  0xbd   :  { %2723 = vmatprep.subr.bf16.mxu1 %v2722_v46  ;;  %v2558_v45 = vpack.c.bf16 %v566_v43, %v560_v42  ;;  %v559_v46 = vld [vmem:[#allocation2 + $0x7e0] sm:$0xff]  ;;  %v668_v42 = vld [vmem:[#allocation2 + $0xb48] sm:$0xff]  ;;  %v674_v43 = vld [vmem:[#allocation2 + $0xb78] sm:$0xff] }
  0xbe   :  { %v2560_v50 = vpack.c.bf16 %v565_v47, %v559_v46  ;;  %v667_v46 = vld [vmem:[#allocation2 + $0xb40] sm:$0xff]  ;;  %v673_v47 = vld [vmem:[#allocation2 + $0xb70] sm:$0xff] }
  0xc0   :  { %2725 = vmatpush1.bf16.msra.mxu1 %v2724_v49  ;;  %v578_v49 = vld [vmem:[#allocation2 + $0x878] sm:$0xff] }
  0xc1   :  { %2727 = vmatprep.subr.bf16.mxu1 %v2726_v52  ;;  %v2562_v51 = vpack.c.bf16 %v578_v49, %v572_v48  ;;  %v571_v52 = vld [vmem:[#allocation2 + $0x840] sm:$0xff]  ;;  %v680_v48 = vld [vmem:[#allocation2 + $0xba8] sm:$0xff]  ;;  %v686_v49 = vld [vmem:[#allocation2 + $0xbd8] sm:$0xff] }
  0xc2   :  { %v2564_v56 = vpack.c.bf16 %v577_v53, %v571_v52  ;;  %v679_v52 = vld [vmem:[#allocation2 + $0xba0] sm:$0xff]  ;;  %v685_v53 = vld [vmem:[#allocation2 + $0xbd0] sm:$0xff] }
  0xc4   :  { %2729 = vmatpush1.bf16.msra.mxu1 %v2728_v55  ;;  %v590_v55 = vld [vmem:[#allocation2 + $0x8d8] sm:$0xff] }
  0xc5   :  { %v2566_v59 = vpack.c.bf16 %v590_v55, %v584_v54  ;;  %v310_v54 = vld [vmem:[#allocation2 + $0x18] sm:$0xff]  ;;  %v316_v55 = vld [vmem:[#allocation2 + $0x48] sm:$0xff] }
 0x140   :  { %v227_v1 = vpop.f32.mrb[0].mxu0 }
 0x141   :  { %v228_v3 = vadd.f32 %v227_v1, %v140_v61  ;;  %v229_v4 = vpop.f32.mrb[1].mxu0  ;;  %v583_v61 = vld [vmem:[#allocation2 + $0x8a0] sm:$0xff]  ;;  %v596_v1 = vld [vmem:[#allocation2 + $0x908] sm:$0xff] }
 0x142   :  { %v230_v7 = vadd.f32 %v229_v4, %v144_v62  ;;  %v298_v20 = vpop.f32.mrb[0].mxu1  ;;  %v589_v62 = vld [vmem:[#allocation2 + $0x8d0] sm:$0xff] }
 0x143   :  { %v3574_v14 = vmax.f32 %v228_v3, 0.0  ;;  %v299_v21 = vadd.f32 %v298_v20, %v148_v10  ;;  %v300_v22 = vpop.f32.mrb[1].mxu1  ;;  %v602_v3 = vld [vmem:[#allocation2 + $0x938] sm:$0xff]  ;;  %v2568_v4 = vpack.c.bf16 %v589_v62, %v583_v61  ;;  %v619_v20 = vld [vmem:[#allocation2 + $0x9c0] sm:$0xff]  ;;  %v309_v61 = vld [vmem:[#allocation2 + $0x10] sm:$0xff] }
 0x144   :  { %v3570_v11 = vmax.f32 %v230_v7, 0.0  ;;  %v301_v24 = vadd.f32 %v300_v22, %v152_v13  ;;  %v2570_v5 = vpack.c.bf16 %v602_v3, %v596_v1  ;;  %v601_v7 = vld [vmem:[#allocation2 + $0x930] sm:$0xff]  ;;  %v607_v13 = vld [vmem:[#allocation2 + $0x960] sm:$0xff]  ;;  %v632_v22 = vld [vmem:[#allocation2 + $0xa28] sm:$0xff] }
 0x145   :  { %v3578_v28 = vmax.f32 %v299_v21, 0.0  ;;  %v2572_v10 = vpack.c.bf16 %v601_v7, %v595_v6  ;;  %v625_v21 = vld [vmem:[#allocation2 + $0x9f0] sm:$0xff]  ;;  %v315_v62 = vld [vmem:[#allocation2 + $0x40] sm:$0xff]  ;;  %v322_v1 = vld [vmem:[#allocation2 + $0x78] sm:$0xff] }
 0x146   :  { %787 = vmatprep.mubr.f32.mxu0 %v3570_v11  ;;  %v3580_v31 = vmax.f32 %v301_v24, 0.0  ;;  %v2580_v24 = vpack.c.bf16 %v625_v21, %v619_v20  ;;  %v328_v3 = vld [vmem:[#allocation2 + $0xa8] sm:$0xff]  ;;  %v321_v6 = vld [vmem:[#allocation2 + $0x70] sm:$0xff]  ;;  %v327_v7 = vld [vmem:[#allocation2 + $0xa0] sm:$0xff] }
 0x147   :  { %788 = vmatmul.mubr.f32.vlgmr.msra.gmra.mrb[2].mxu0 %v3574_v14  ;;  %v345_v20 = vld [vmem:[#allocation2 + $0x130] sm:$0xff]  ;;  %v351_v21 = vld [vmem:[#allocation2 + $0x160] sm:$0xff] }
 0x148   :  { %2541 = vmatpush1.bf16.msra.mxu0 %v2540_v12  ;;  %1000 = vmatprep.mubr.f32.mxu1 %v3580_v31  ;;  %v2574_v12 = vpack.c.bf16 %v614_v9, %v608_v8  ;;  %v334_v8 = vld [vmem:[#allocation2 + $0xd8] sm:$0xff]  ;;  %v340_v9 = vld [vmem:[#allocation2 + $0x108] sm:$0xff] }
 0x149   :  { %2543 = vmatprep.subr.bf16.mxu0 %v2542_v15  ;;  %1001 = vmatmul.mubr.f32.vlgmr.msra.gmra.mrb[2].mxu1 %v3578_v28  ;;  %v613_v15 = vld [vmem:[#allocation2 + $0x990] sm:$0xff] }
 0x14a   :  { %858 = vmatprep.mubr.f32.mxu0 %v3580_v31  ;;  %v2576_v18 = vpack.c.bf16 %v613_v15, %v607_v13  ;;  %v333_v13 = vld [vmem:[#allocation2 + $0xd0] sm:$0xff]  ;;  %v339_v15 = vld [vmem:[#allocation2 + $0x100] sm:$0xff] }
 0x14c   :  { %2545 = vmatpush1.bf16.msra.mxu0 %v2544_v23  ;;  %v638_v23 = vld [vmem:[#allocation2 + $0xa58] sm:$0xff] }
 0x14d   :  { %2547 = vmatprep.subr.bf16.mxu0 %v2546_v25  ;;  %v2582_v25 = vpack.c.bf16 %v638_v23, %v632_v22  ;;  %v358_v22 = vld [vmem:[#allocation2 + $0x198] sm:$0xff]  ;;  %v364_v23 = vld [vmem:[#allocation2 + $0x1c8] sm:$0xff] }
 0x150   :  { %2549 = vmatpush1.bf16.msra.mxu0 %v2548_v32  ;;  %v2584_v32 = vpack.c.bf16 %v637_v27, %v631_v26  ;;  %v357_v26 = vld [vmem:[#allocation2 + $0x190] sm:$0xff]  ;;  %v363_v27 = vld [vmem:[#allocation2 + $0x1c0] sm:$0xff] }
 0x151   :  { %2551 = vmatprep.subr.bf16.mxu0 %v2550_v33  ;;  %v2586_v33 = vpack.c.bf16 %v650_v30, %v644_v29  ;;  %v370_v29 = vld [vmem:[#allocation2 + $0x1f8] sm:$0xff]  ;;  %v376_v30 = vld [vmem:[#allocation2 + $0x228] sm:$0xff] }
 0x154   :  { %2553 = vmatpush1.bf16.msra.mxu0 %v2552_v38  ;;  %v2588_v38 = vpack.c.bf16 %v649_v35, %v643_v34  ;;  %v369_v34 = vld [vmem:[#allocation2 + $0x1f0] sm:$0xff]  ;;  %v375_v35 = vld [vmem:[#allocation2 + $0x220] sm:$0xff] }
 0x155   :  { %2555 = vmatprep.subr.bf16.mxu0 %v2554_v39  ;;  %v2590_v39 = vpack.c.bf16 %v662_v37, %v656_v36  ;;  %v382_v36 = vld [vmem:[#allocation2 + $0x258] sm:$0xff]  ;;  %v388_v37 = vld [vmem:[#allocation2 + $0x288] sm:$0xff] }
 0x158   :  { %2557 = vmatpush1.bf16.msra.mxu0 %v2556_v44  ;;  %v2592_v44 = vpack.c.bf16 %v661_v41, %v655_v40  ;;  %v381_v40 = vld [vmem:[#allocation2 + $0x250] sm:$0xff]  ;;  %v387_v41 = vld [vmem:[#allocation2 + $0x280] sm:$0xff] }
 0x159   :  { %2559 = vmatprep.subr.bf16.mxu0 %v2558_v45  ;;  %v2594_v45 = vpack.c.bf16 %v674_v43, %v668_v42  ;;  %v394_v42 = vld [vmem:[#allocation2 + $0x2b8] sm:$0xff]  ;;  %v400_v43 = vld [vmem:[#allocation2 + $0x2e8] sm:$0xff] }
 0x15c   :  { %2561 = vmatpush1.bf16.msra.mxu0 %v2560_v50  ;;  %v2596_v50 = vpack.c.bf16 %v673_v47, %v667_v46  ;;  %v393_v46 = vld [vmem:[#allocation2 + $0x2b0] sm:$0xff]  ;;  %v399_v47 = vld [vmem:[#allocation2 + $0x2e0] sm:$0xff] }
 0x15d   :  { %2563 = vmatprep.subr.bf16.mxu0 %v2562_v51  ;;  %v2598_v51 = vpack.c.bf16 %v686_v49, %v680_v48  ;;  %v406_v48 = vld [vmem:[#allocation2 + $0x318] sm:$0xff]  ;;  %v412_v49 = vld [vmem:[#allocation2 + $0x348] sm:$0xff] }
 0x160   :  { %2565 = vmatpush1.bf16.msra.mxu0 %v2564_v56  ;;  %v2600_v56 = vpack.c.bf16 %v685_v53, %v679_v52  ;;  %v405_v52 = vld [vmem:[#allocation2 + $0x310] sm:$0xff]  ;;  %v411_v53 = vld [vmem:[#allocation2 + $0x340] sm:$0xff] }
 0x161   :  { %2567 = vmatprep.subr.bf16.mxu0 %v2566_v59  ;;  %v2602_v59 = vpack.c.bf16 %v316_v55, %v310_v54  ;;  %v418_v54 = vld [vmem:[#allocation2 + $0x378] sm:$0xff]  ;;  %v424_v55 = vld [vmem:[#allocation2 + $0x3a8] sm:$0xff] }
 0x164   :  { %2569 = vmatpush1.bf16.msra.mxu0 %v2568_v4  ;;  %v2604_v4 = vpack.c.bf16 %v315_v62, %v309_v61  ;;  %v417_v61 = vld [vmem:[#allocation2 + $0x370] sm:$0xff]  ;;  %v423_v62 = vld [vmem:[#allocation2 + $0x3a0] sm:$0xff] }
 0x165   :  { %2571 = vmatprep.subr.bf16.mxu0 %v2570_v5  ;;  %v2606_v5 = vpack.c.bf16 %v328_v3, %v322_v1  ;;  %v430_v1 = vld [vmem:[#allocation2 + $0x3d8] sm:$0xff]  ;;  %v436_v3 = vld [vmem:[#allocation2 + $0x408] sm:$0xff] }
 0x168   :  { %2573 = vmatpush1.bf16.msra.mxu0 %v2572_v10  ;;  %v2608_v10 = vpack.c.bf16 %v327_v7, %v321_v6  ;;  %v429_v6 = vld [vmem:[#allocation2 + $0x3d0] sm:$0xff]  ;;  %v435_v7 = vld [vmem:[#allocation2 + $0x400] sm:$0xff] }
 0x169   :  { %2575 = vmatprep.subr.bf16.mxu0 %v2574_v12  ;;  %v2610_v12 = vpack.c.bf16 %v340_v9, %v334_v8  ;;  %v442_v8 = vld [vmem:[#allocation2 + $0x438] sm:$0xff]  ;;  %v448_v9 = vld [vmem:[#allocation2 + $0x468] sm:$0xff] }
 0x16c   :  { %2577 = vmatpush1.bf16.msra.mxu0 %v2576_v18  ;;  %v2612_v18 = vpack.c.bf16 %v339_v15, %v333_v13  ;;  %v441_v13 = vld [vmem:[#allocation2 + $0x430] sm:$0xff]  ;;  %v447_v15 = vld [vmem:[#allocation2 + $0x460] sm:$0xff] }
 0x16d   :  { %2579 = vmatprep.subr.bf16.mxu0 %v2578_v19  ;;  %v2614_v19 = vpack.c.bf16 %v352_v17, %v346_v16  ;;  %v454_v16 = vld [vmem:[#allocation2 + $0x498] sm:$0xff]  ;;  %v460_v17 = vld [vmem:[#allocation2 + $0x4c8] sm:$0xff] }
 0x170   :  { %2581 = vmatpush1.bf16.msra.mxu0 %v2580_v24  ;;  %v2616_v24 = vpack.c.bf16 %v351_v21, %v345_v20  ;;  %v453_v20 = vld [vmem:[#allocation2 + $0x490] sm:$0xff]  ;;  %v459_v21 = vld [vmem:[#allocation2 + $0x4c0] sm:$0xff] }
 0x171   :  { %2583 = vmatprep.subr.bf16.mxu0 %v2582_v25  ;;  %v2618_v25 = vpack.c.bf16 %v364_v23, %v358_v22  ;;  %v466_v22 = vld [vmem:[#allocation2 + $0x4f8] sm:$0xff]  ;;  %v472_v23 = vld [vmem:[#allocation2 + $0x528] sm:$0xff] }
 0x174   :  { %2585 = vmatpush1.bf16.msra.mxu0 %v2584_v32  ;;  %v2620_v32 = vpack.c.bf16 %v363_v27, %v357_v26  ;;  %v465_v26 = vld [vmem:[#allocation2 + $0x4f0] sm:$0xff]  ;;  %v471_v27 = vld [vmem:[#allocation2 + $0x520] sm:$0xff] }
 0x175   :  { %2587 = vmatprep.subr.bf16.mxu0 %v2586_v33  ;;  %v2622_v33 = vpack.c.bf16 %v376_v30, %v370_v29  ;;  %v478_v29 = vld [vmem:[#allocation2 + $0x558] sm:$0xff]  ;;  %v484_v30 = vld [vmem:[#allocation2 + $0x588] sm:$0xff] }
 0x178   :  { %2589 = vmatpush1.bf16.msra.mxu0 %v2588_v38  ;;  %v2624_v38 = vpack.c.bf16 %v375_v35, %v369_v34  ;;  %v477_v34 = vld [vmem:[#allocation2 + $0x550] sm:$0xff]  ;;  %v483_v35 = vld [vmem:[#allocation2 + $0x580] sm:$0xff] }
 0x179   :  { %2591 = vmatprep.subr.bf16.mxu0 %v2590_v39  ;;  %v2626_v39 = vpack.c.bf16 %v388_v37, %v382_v36  ;;  %v490_v36 = vld [vmem:[#allocation2 + $0x5b8] sm:$0xff]  ;;  %v496_v37 = vld [vmem:[#allocation2 + $0x5e8] sm:$0xff] }
 0x17c   :  { %2593 = vmatpush1.bf16.msra.mxu0 %v2592_v44  ;;  %v2628_v44 = vpack.c.bf16 %v387_v41, %v381_v40  ;;  %v489_v40 = vld [vmem:[#allocation2 + $0x5b0] sm:$0xff]  ;;  %v495_v41 = vld [vmem:[#allocation2 + $0x5e0] sm:$0xff] }
 0x17d   :  { %2595 = vmatprep.subr.bf16.mxu0 %v2594_v45  ;;  %v2630_v45 = vpack.c.bf16 %v400_v43, %v394_v42  ;;  %v312_v42 = vld [vmem:[#allocation2 + $0x28] sm:$0xff]  ;;  %v318_v43 = vld [vmem:[#allocation2 + $0x58] sm:$0xff] }
 0x180   :  { %2597 = vmatpush1.bf16.msra.mxu0 %v2596_v50  ;;  %v2632_v50 = vpack.c.bf16 %v399_v47, %v393_v46  ;;  %v311_v46 = vld [vmem:[#allocation2 + $0x20] sm:$0xff]  ;;  %v317_v47 = vld [vmem:[#allocation2 + $0x50] sm:$0xff] }
 0x181   :  { %2599 = vmatprep.subr.bf16.mxu0 %v2598_v51  ;;  %v2634_v51 = vpack.c.bf16 %v412_v49, %v406_v48  ;;  %v324_v48 = vld [vmem:[#allocation2 + $0x88] sm:$0xff]  ;;  %v330_v49 = vld [vmem:[#allocation2 + $0xb8] sm:$0xff] }
 0x184   :  { %2601 = vmatpush1.bf16.msra.mxu0 %v2600_v56  ;;  %v2636_v56 = vpack.c.bf16 %v411_v53, %v405_v52  ;;  %v323_v52 = vld [vmem:[#allocation2 + $0x80] sm:$0xff]  ;;  %v329_v53 = vld [vmem:[#allocation2 + $0xb0] sm:$0xff] }
 0x185   :  { %2603 = vmatprep.subr.bf16.mxu0 %v2602_v59  ;;  %v2638_v59 = vpack.c.bf16 %v424_v55, %v418_v54  ;;  %v336_v54 = vld [vmem:[#allocation2 + $0xe8] sm:$0xff]  ;;  %v342_v55 = vld [vmem:[#allocation2 + $0x118] sm:$0xff] }
 0x187   :  { %859 = vmatmul.mubr.f32.vlgmr.msra.gmra.mrb[2].mxu0 %v3578_v28 }
 0x188   :  { %2605 = vmatpush1.bf16.msra.mxu0 %v2604_v4  ;;  %929 = vmatprep.mubr.f32.mxu0 %v3570_v11  ;;  %v2640_v4 = vpack.c.bf16 %v423_v62, %v417_v61  ;;  %v335_v61 = vld [vmem:[#allocation2 + $0xe0] sm:$0xff]  ;;  %v341_v62 = vld [vmem:[#allocation2 + $0x110] sm:$0xff] }
 0x189   :  { %2607 = vmatprep.subr.bf16.mxu0 %v2606_v5  ;;  %v2642_v5 = vpack.c.bf16 %v436_v3, %v430_v1  ;;  %v348_v1 = vld [vmem:[#allocation2 + $0x148] sm:$0xff]  ;;  %v354_v3 = vld [vmem:[#allocation2 + $0x178] sm:$0xff] }
 0x18c   :  { %2609 = vmatpush1.bf16.msra.mxu0 %v2608_v10  ;;  %v2644_v10 = vpack.c.bf16 %v435_v7, %v429_v6  ;;  %v347_v6 = vld [vmem:[#allocation2 + $0x140] sm:$0xff]  ;;  %v353_v7 = vld [vmem:[#allocation2 + $0x170] sm:$0xff] }
 0x18d   :  { %2611 = vmatprep.subr.bf16.mxu0 %v2610_v12  ;;  %v2646_v12 = vpack.c.bf16 %v448_v9, %v442_v8  ;;  %v360_v8 = vld [vmem:[#allocation2 + $0x1a8] sm:$0xff]  ;;  %v366_v9 = vld [vmem:[#allocation2 + $0x1d8] sm:$0xff] }
 0x190   :  { %2613 = vmatpush1.bf16.msra.mxu0 %v2612_v18  ;;  %v2648_v18 = vpack.c.bf16 %v447_v15, %v441_v13  ;;  %v365_v13 = vld [vmem:[#allocation2 + $0x1d0] sm:$0xff]  ;;  %v372_v15 = vld [vmem:[#allocation2 + $0x208] sm:$0xff] }
 0x191   :  { %2615 = vmatprep.subr.bf16.mxu0 %v2614_v19  ;;  %v2650_v19 = vpack.c.bf16 %v460_v17, %v454_v16  ;;  %v378_v16 = vld [vmem:[#allocation2 + $0x238] sm:$0xff] }
 0x194   :  { %2617 = vmatpush1.bf16.msra.mxu0 %v2616_v24  ;;  %v2652_v24 = vpack.c.bf16 %v459_v21, %v453_v20  ;;  %v377_v20 = vld [vmem:[#allocation2 + $0x230] sm:$0xff]  ;;  %v384_v21 = vld [vmem:[#allocation2 + $0x268] sm:$0xff] }
 0x195   :  { %2619 = vmatprep.subr.bf16.mxu0 %v2618_v25  ;;  %v2654_v25 = vpack.c.bf16 %v472_v23, %v466_v22  ;;  %v390_v22 = vld [vmem:[#allocation2 + $0x298] sm:$0xff] }
 0x198   :  { %2621 = vmatpush1.bf16.msra.mxu0 %v2620_v32  ;;  %v2656_v32 = vpack.c.bf16 %v471_v27, %v465_v26  ;;  %v389_v26 = vld [vmem:[#allocation2 + $0x290] sm:$0xff]  ;;  %v396_v27 = vld [vmem:[#allocation2 + $0x2c8] sm:$0xff] }
 0x199   :  { %2623 = vmatprep.subr.bf16.mxu0 %v2622_v33  ;;  %v2658_v33 = vpack.c.bf16 %v484_v30, %v478_v29  ;;  %v402_v29 = vld [vmem:[#allocation2 + $0x2f8] sm:$0xff] }
 0x19c   :  { %2625 = vmatpush1.bf16.msra.mxu0 %v2624_v38  ;;  %v2660_v38 = vpack.c.bf16 %v483_v35, %v477_v34  ;;  %v401_v34 = vld [vmem:[#allocation2 + $0x2f0] sm:$0xff]  ;;  %v408_v35 = vld [vmem:[#allocation2 + $0x328] sm:$0xff] }
 0x19d   :  { %2627 = vmatprep.subr.bf16.mxu0 %v2626_v39  ;;  %v2662_v39 = vpack.c.bf16 %v496_v37, %v490_v36  ;;  %v414_v36 = vld [vmem:[#allocation2 + $0x358] sm:$0xff] }
 0x1a0   :  { %2629 = vmatpush1.bf16.msra.mxu0 %v2628_v44  ;;  %v2664_v44 = vpack.c.bf16 %v495_v41, %v489_v40  ;;  %v413_v40 = vld [vmem:[#allocation2 + $0x350] sm:$0xff]  ;;  %v420_v41 = vld [vmem:[#allocation2 + $0x388] sm:$0xff] }
 0x1a1   :  { %2631 = vmatprep.subr.bf16.mxu0 %v2630_v45  ;;  %v2730_v45 = vpack.c.bf16 %v318_v43, %v312_v42  ;;  %v426_v42 = vld [vmem:[#allocation2 + $0x3b8] sm:$0xff] }
 0x1a4   :  { %2633 = vmatpush1.bf16.msra.mxu0 %v2632_v50  ;;  %v2732_v50 = vpack.c.bf16 %v317_v47, %v311_v46  ;;  %v425_v46 = vld [vmem:[#allocation2 + $0x3b0] sm:$0xff]  ;;  %v432_v47 = vld [vmem:[#allocation2 + $0x3e8] sm:$0xff] }
 0x1a5   :  { %2635 = vmatprep.subr.bf16.mxu0 %v2634_v51  ;;  %v2734_v51 = vpack.c.bf16 %v330_v49, %v324_v48  ;;  %v438_v48 = vld [vmem:[#allocation2 + $0x418] sm:$0xff]  ;;  %v431_v49 = vld [vmem:[#allocation2 + $0x3e0] sm:$0xff] }
 0x1a8   :  { %2637 = vmatpush1.bf16.msra.mxu0 %v2636_v56  ;;  %v2736_v56 = vpack.c.bf16 %v329_v53, %v323_v52  ;;  %v1198_v52 = vld [vmem:[%s4552_s7 + $0x188] sm:$0xff]  ;;  %v1181_v53 = vld [vmem:[%s4552_s7 + $0x100] sm:$0xff] }
 0x1a9   :  { %2639 = vmatprep.subr.bf16.mxu0 %v2638_v59  ;;  %v2738_v59 = vpack.c.bf16 %v342_v55, %v336_v54 }
 0x1ac   :  { %2641 = vmatpush1.bf16.msra.mxu0 %v2640_v4  ;;  %v2740_v4 = vpack.c.bf16 %v341_v62, %v335_v61  ;;  %v1200_v61 = vld [vmem:[%s4552_s7 + $0x198] sm:$0xff]  ;;  %v2770_v62 = vpack.c.bf16 %v438_v48, %v432_v47  ;;  %v480_v47 = vld [vmem:[#allocation2 + $0x568] sm:$0xff]  ;;  %v486_v48 = vld [vmem:[#allocation2 + $0x598] sm:$0xff] }
 0x1ad   :  { %2643 = vmatprep.subr.bf16.mxu0 %v2642_v5  ;;  %v2742_v5 = vpack.c.bf16 %v354_v3, %v348_v1 }
 0x1b0   :  { %2645 = vmatpush1.bf16.msra.mxu0 %v2644_v10  ;;  %v2744_v10 = vpack.c.bf16 %v353_v7, %v347_v6  ;;  %v1201_v6 = vld [vmem:[%s4552_s7 + $0x1a0] sm:$0xff]  ;;  %v444_v7 = vld [vmem:[#allocation2 + $0x448] sm:$0xff] }
 0x1b1   :  { %2647 = vmatprep.subr.bf16.mxu0 %v2646_v12  ;;  %v2746_v12 = vpack.c.bf16 %v366_v9, %v360_v8  ;;  %v450_v8 = vld [vmem:[#allocation2 + $0x478] sm:$0xff]  ;;  %v1202_v9 = vld [vmem:[%s4552_s7 + $0x1a8] sm:$0xff] }
 0x1b4   :  { %2649 = vmatpush1.bf16.msra.mxu0 %v2648_v18  ;;  %v2750_v18 = vpack.c.bf16 %v378_v16, %v372_v15  ;;  %v1185_v15 = vld [vmem:[%s4552_s7 + $0x120] sm:$0xff]  ;;  %v1186_v16 = vld [vmem:[%s4552_s7 + $0x128] sm:$0xff] }
 0x1b5   :  { %2651 = vmatprep.subr.bf16.mxu0 %v2650_v19  ;;  %v371_v19 = vld [vmem:[#allocation2 + $0x200] sm:$0xff] }
 0x1b6   :  { %v2752_v23 = vpack.c.bf16 %v377_v20, %v371_v19  ;;  %v1203_v19 = vld [vmem:[%s4552_s7 + $0x1b0] sm:$0xff]  ;;  %v1204_v20 = vld [vmem:[%s4552_s7 + $0x1b8] sm:$0xff] }
 0x1b8   :  { %2653 = vmatpush1.bf16.msra.mxu0 %v2652_v24  ;;  %v2754_v24 = vpack.c.bf16 %v390_v22, %v384_v21  ;;  %v456_v21 = vld [vmem:[#allocation2 + $0x4a8] sm:$0xff]  ;;  %v462_v22 = vld [vmem:[#allocation2 + $0x4d8] sm:$0xff] }
 0x1b9   :  { %2655 = vmatprep.subr.bf16.mxu0 %v2654_v25  ;;  %v383_v25 = vld [vmem:[#allocation2 + $0x260] sm:$0xff] }
 0x1ba   :  { %v2756_v30 = vpack.c.bf16 %v389_v26, %v383_v25  ;;  %v455_v25 = vld [vmem:[#allocation2 + $0x4a0] sm:$0xff]  ;;  %v2902_v26 = vpack.c.bf16 %v1204_v20, %v1203_v19 }
 0x1bb   :  { %v515_v20 = vld [vmem:[#allocation2 + $0x680] sm:$0xff] }
 0x1bc   :  { %2657 = vmatpush1.bf16.msra.mxu0 %v2656_v32  ;;  %v2758_v32 = vpack.c.bf16 %v402_v29, %v396_v27  ;;  %v1187_v27 = vld [vmem:[%s4552_s7 + $0x130] sm:$0xff]  ;;  %v1188_v29 = vld [vmem:[%s4552_s7 + $0x138] sm:$0xff] }
 0x1bd   :  { %2659 = vmatprep.subr.bf16.mxu0 %v2658_v33  ;;  %v395_v33 = vld [vmem:[#allocation2 + $0x2c0] sm:$0xff] }
 0x1be   :  { %v2760_v37 = vpack.c.bf16 %v401_v34, %v395_v33  ;;  %v1205_v33 = vld [vmem:[%s4552_s7 + $0x1c0] sm:$0xff]  ;;  %v1206_v34 = vld [vmem:[%s4552_s7 + $0x1c8] sm:$0xff] }
 0x1c0   :  { %2661 = vmatpush1.bf16.msra.mxu0 %v2660_v38  ;;  %v2762_v38 = vpack.c.bf16 %v414_v36, %v408_v35  ;;  %v468_v35 = vld [vmem:[#allocation2 + $0x508] sm:$0xff]  ;;  %v474_v36 = vld [vmem:[#allocation2 + $0x538] sm:$0xff] }
 0x1c1   :  { %2663 = vmatprep.subr.bf16.mxu0 %v2662_v39  ;;  %v407_v39 = vld [vmem:[#allocation2 + $0x320] sm:$0xff] }
 0x1c2   :  { %v2764_v43 = vpack.c.bf16 %v413_v40, %v407_v39  ;;  %v467_v39 = vld [vmem:[#allocation2 + $0x500] sm:$0xff]  ;;  %v2906_v40 = vpack.c.bf16 %v1206_v34, %v1205_v33 }
 0x1c3   :  { %v539_v34 = vld [vmem:[#allocation2 + $0x740] sm:$0xff] }
 0x1c4   :  { %2665 = vmatpush1.bf16.msra.mxu0 %v2664_v44  ;;  %v2766_v44 = vpack.c.bf16 %v426_v42, %v420_v41  ;;  %v1189_v41 = vld [vmem:[%s4552_s7 + $0x140] sm:$0xff]  ;;  %v1190_v42 = vld [vmem:[%s4552_s7 + $0x148] sm:$0xff] }
 0x1c5   :  { %2731 = vmatprep.subr.bf16.mxu0 %v2730_v45  ;;  %v419_v45 = vld [vmem:[#allocation2 + $0x380] sm:$0xff] }
 0x1c6   :  { %v2768_v54 = vpack.c.bf16 %v425_v46, %v419_v45  ;;  %v1207_v45 = vld [vmem:[%s4552_s7 + $0x1d0] sm:$0xff]  ;;  %v1208_v46 = vld [vmem:[%s4552_s7 + $0x1d8] sm:$0xff] }
 0x1c7   :  { %930 = vmatmul.mubr.f32.vlgmr.msra.gmra.mrb[4].mxu0 %v3574_v14 }
 0x1c8   :  { %2733 = vmatpush1.bf16.msra.mxu0 %v2732_v50  ;;  %1071 = vmatprep.mubr.f32.mxu0 %v3570_v11  ;;  %v359_v11 = vld [vmem:[#allocation2 + $0x1a0] sm:$0xff]  ;;  %v437_v50 = vld [vmem:[#allocation2 + $0x410] sm:$0xff] }
 0x1c9   :  { %2735 = vmatprep.subr.bf16.mxu0 %v2734_v51  ;;  %v2748_v17 = vpack.c.bf16 %v365_v13, %v359_v11  ;;  %v1197_v51 = vld [vmem:[%s4552_s7 + $0x180] sm:$0xff]  ;;  %v443_v11 = vld [vmem:[#allocation2 + $0x440] sm:$0xff]  ;;  %v2898_v13 = vpack.c.bf16 %v1202_v9, %v1201_v6  ;;  %v504_v9 = vld [vmem:[#allocation2 + $0x628] sm:$0xff] }
 0x1ca   :  { %v2890_v55 = vpack.c.bf16 %v1198_v52, %v1197_v51  ;;  %v479_v51 = vld [vmem:[#allocation2 + $0x560] sm:$0xff]  ;;  %v2910_v52 = vpack.c.bf16 %v1208_v46, %v1207_v45  ;;  %v569_v45 = vld [vmem:[#allocation2 + $0x830] sm:$0xff]  ;;  %v576_v46 = vld [vmem:[#allocation2 + $0x868] sm:$0xff] }
 0x1cc   :  { %2737 = vmatpush1.bf16.msra.mxu0 %v2736_v56  ;;  %v1182_v56 = vld [vmem:[%s4552_s7 + $0x108] sm:$0xff]  ;;  %2891 = vmatprep.subr.bf16.mxu1 %v2890_v55  ;;  %v2786_v55 = vpack.c.bf16 %v486_v48, %v480_v47  ;;  %v582_v47 = vld [vmem:[#allocation2 + $0x898] sm:$0xff] }
 0x1cd   :  { %2739 = vmatprep.subr.bf16.mxu0 %v2738_v59  ;;  %v1199_v59 = vld [vmem:[%s4552_s7 + $0x190] sm:$0xff]  ;;  %v2892_v1 = vpack.c.bf16 %v1182_v56, %v1181_v53  ;;  %v485_v56 = vld [vmem:[#allocation2 + $0x590] sm:$0xff]  ;;  %v1193_v48 = vld [vmem:[%s4552_s7 + $0x160] sm:$0xff] }
 0x1ce   :  { %v2894_v3 = vpack.c.bf16 %v1200_v61, %v1199_v59  ;;  %v1191_v53 = vld [vmem:[%s4552_s7 + $0x150] sm:$0xff]  ;;  %v1209_v59 = vld [vmem:[%s4552_s7 + $0x1e0] sm:$0xff]  ;;  %v1210_v61 = vld [vmem:[%s4552_s7 + $0x1e8] sm:$0xff] }
 0x1cf   :  { %2893 = vmatpush3.bf16.msra.mxu1 %v2892_v1  ;;  %v498_v1 = vld [vmem:[#allocation2 + $0x5f8] sm:$0xff] }
 0x1d0   :  { %2741 = vmatpush1.bf16.msra.mxu0 %v2740_v4  ;;  %v1183_v4 = vld [vmem:[%s4552_s7 + $0x110] sm:$0xff]  ;;  %2895 = vmatprep.subr.bf16.mxu1 %v2894_v3 }
 0x1d1   :  { %2743 = vmatprep.subr.bf16.mxu0 %v2742_v5  ;;  %v1184_v5 = vld [vmem:[%s4552_s7 + $0x118] sm:$0xff] }
 0x1d4   :  { %2745 = vmatpush1.bf16.msra.mxu0 %v2744_v10  ;;  %v2896_v10 = vpack.c.bf16 %v1184_v5, %v1183_v4  ;;  %v2788_v4 = vpack.c.bf16 %v485_v56, %v479_v51  ;;  %v2914_v5 = vpack.c.bf16 %v1210_v61, %v1209_v59  ;;  %v594_v56 = vld [vmem:[#allocation2 + $0x8f8] sm:$0xff]  ;;  %v1211_v59 = vld [vmem:[%s4552_s7 + $0x1f0] sm:$0xff]  ;;  %v1212_v61 = vld [vmem:[%s4552_s7 + $0x1f8] sm:$0xff] }
 0x1d5   :  { %2747 = vmatprep.subr.bf16.mxu0 %v2746_v12  ;;  %v2772_v12 = vpack.c.bf16 %v437_v50, %v431_v49  ;;  %v2908_v49 = vpack.c.bf16 %v1190_v42, %v1189_v41  ;;  %v570_v41 = vld [vmem:[#allocation2 + $0x838] sm:$0xff] }
 0x1d6   :  { %2897 = vmatpush3.bf16.msra.mxu1 %v2896_v10  ;;  %v510_v10 = vld [vmem:[#allocation2 + $0x658] sm:$0xff] }
 0x1d7   :  { %2899 = vmatprep.subr.bf16.mxu1 %v2898_v13  ;;  %v503_v13 = vld [vmem:[#allocation2 + $0x620] sm:$0xff] }
 0x1d8   :  { %2749 = vmatpush1.bf16.msra.mxu0 %v2748_v17  ;;  %v2774_v17 = vpack.c.bf16 %v450_v8, %v444_v7  ;;  %v491_v7 = vld [vmem:[#allocation2 + $0x5c0] sm:$0xff]  ;;  %v497_v8 = vld [vmem:[#allocation2 + $0x5f0] sm:$0xff] }
 0x1d9   :  { %2751 = vmatprep.subr.bf16.mxu0 %v2750_v18  ;;  %v449_v18 = vld [vmem:[#allocation2 + $0x470] sm:$0xff] }
 0x1dc   :  { %2753 = vmatpush1.bf16.msra.mxu0 %v2752_v23  ;;  %v2900_v23 = vpack.c.bf16 %v1186_v16, %v1185_v15  ;;  %v509_v15 = vld [vmem:[#allocation2 + $0x650] sm:$0xff]  ;;  %v516_v16 = vld [vmem:[#allocation2 + $0x688] sm:$0xff] }
 0x1dd   :  { %2755 = vmatprep.subr.bf16.mxu0 %v2754_v24  ;;  %v2776_v24 = vpack.c.bf16 %v449_v18, %v443_v11  ;;  %v2794_v11 = vpack.c.bf16 %v510_v10, %v504_v9  ;;  %v2796_v18 = vpack.c.bf16 %v509_v15, %v503_v13  ;;  %v600_v9 = vld [vmem:[#allocation2 + $0x928] sm:$0xff]  ;;  %v606_v10 = vld [vmem:[#allocation2 + $0x958] sm:$0xff] }
 0x1de   :  { %2901 = vmatpush3.bf16.msra.mxu1 %v2900_v23  ;;  %v534_v23 = vld [vmem:[#allocation2 + $0x718] sm:$0xff]  ;;  %v2826_v15 = vpack.c.bf16 %v606_v10, %v600_v9  ;;  %v1150_v10 = vld [vmem:[%s4552_s7 + $0x8] sm:$0xff] }
 0x1df   :  { %2903 = vmatprep.subr.bf16.mxu1 %v2902_v26  ;;  %v527_v26 = vld [vmem:[#allocation2 + $0x6e0] sm:$0xff]  ;;  %v1149_v9 = vld [vmem:[%s4552_s7] sm:$0xff] }
 0x1e0   :  { %2757 = vmatpush1.bf16.msra.mxu0 %v2756_v30  ;;  %v2778_v30 = vpack.c.bf16 %v462_v22, %v456_v21  ;;  %v521_v21 = vld [vmem:[#allocation2 + $0x6b0] sm:$0xff]  ;;  %v528_v22 = vld [vmem:[#allocation2 + $0x6e8] sm:$0xff] }
 0x1e1   :  { %2759 = vmatprep.subr.bf16.mxu0 %v2758_v32  ;;  %v461_v32 = vld [vmem:[#allocation2 + $0x4d0] sm:$0xff] }
 0x1e4   :  { %2761 = vmatpush1.bf16.msra.mxu0 %v2760_v37  ;;  %v2904_v37 = vpack.c.bf16 %v1188_v29, %v1187_v27  ;;  %v533_v27 = vld [vmem:[#allocation2 + $0x710] sm:$0xff]  ;;  %v540_v29 = vld [vmem:[#allocation2 + $0x748] sm:$0xff] }
 0x1e5   :  { %2763 = vmatprep.subr.bf16.mxu0 %v2762_v38  ;;  %v2780_v38 = vpack.c.bf16 %v461_v32, %v455_v25  ;;  %v2802_v25 = vpack.c.bf16 %v534_v23, %v528_v22  ;;  %v2804_v32 = vpack.c.bf16 %v533_v27, %v527_v26  ;;  %v617_v26 = vld [vmem:[#allocation2 + $0x9b0] sm:$0xff]  ;;  %v624_v27 = vld [vmem:[#allocation2 + $0x9e8] sm:$0xff] }
 0x1e6   :  { %2905 = vmatpush3.bf16.msra.mxu1 %v2904_v37  ;;  %v558_v37 = vld [vmem:[#allocation2 + $0x7d8] sm:$0xff] }
 0x1e7   :  { %2907 = vmatprep.subr.bf16.mxu1 %v2906_v40  ;;  %v564_v40 = vld [vmem:[#allocation2 + $0x808] sm:$0xff] }
 0x1e8   :  { %2765 = vmatpush1.bf16.msra.mxu0 %v2764_v43  ;;  %v2782_v43 = vpack.c.bf16 %v474_v36, %v468_v35  ;;  %v545_v35 = vld [vmem:[#allocation2 + $0x770] sm:$0xff]  ;;  %v552_v36 = vld [vmem:[#allocation2 + $0x7a8] sm:$0xff] }
 0x1e9   :  { %2767 = vmatprep.subr.bf16.mxu0 %v2766_v44  ;;  %v473_v44 = vld [vmem:[#allocation2 + $0x530] sm:$0xff] }
 0x1ea   :  { %v2784_v50 = vpack.c.bf16 %v473_v44, %v467_v39  ;;  %2909 = vmatpush3.bf16.msra.mxu1 %v2908_v49  ;;  %v557_v39 = vld [vmem:[#allocation2 + $0x7d0] sm:$0xff]  ;;  %v563_v44 = vld [vmem:[#allocation2 + $0x800] sm:$0xff] }
 0x1eb   :  { %2911 = vmatprep.subr.bf16.mxu1 %v2910_v52  ;;  %v1194_v49 = vld [vmem:[%s4552_s7 + $0x168] sm:$0xff]  ;;  %v2818_v52 = vpack.c.bf16 %v582_v47, %v576_v46  ;;  %v666_v46 = vld [vmem:[#allocation2 + $0xb38] sm:$0xff] }
 0x1ec   :  { %2769 = vmatpush1.bf16.msra.mxu0 %v2768_v54  ;;  %v1192_v54 = vld [vmem:[%s4552_s7 + $0x158] sm:$0xff]  ;;  %v2916_v51 = vpack.c.bf16 %v1194_v49, %v1193_v48  ;;  %v659_v49 = vld [vmem:[#allocation2 + $0xb00] sm:$0xff] }
 0x1ed   :  { %2771 = vmatprep.subr.bf16.mxu0 %v2770_v62  ;;  %v492_v62 = vld [vmem:[#allocation2 + $0x5c8] sm:$0xff]  ;;  %v2912_v3 = vpack.c.bf16 %v1192_v54, %v1191_v53  ;;  %v575_v53 = vld [vmem:[#allocation2 + $0x860] sm:$0xff]  ;;  %v581_v54 = vld [vmem:[#allocation2 + $0x890] sm:$0xff] }
 0x1ee   :  { %v2790_v6 = vpack.c.bf16 %v498_v1, %v492_v62  ;;  %v2918_v62 = vpack.c.bf16 %v1212_v61, %v1211_v59  ;;  %v1195_v1 = vld [vmem:[%s4552_s7 + $0x170] sm:$0xff]  ;;  %v690_v61 = vld [vmem:[#allocation2 + $0xbf8] sm:$0xff] }
 0x1ef   :  { %2913 = vmatpush3.bf16.msra.mxu1 %v2912_v3  ;;  %v1196_v3 = vld [vmem:[%s4552_s7 + $0x178] sm:$0xff]  ;;  %v684_v59 = vld [vmem:[#allocation2 + $0xbc8] sm:$0xff] }
 0x1f0   :  { %2773 = vmatpush1.bf16.msra.mxu0 %v2772_v12  ;;  %v2792_v12 = vpack.c.bf16 %v497_v8, %v491_v7  ;;  %2915 = vmatprep.subr.bf16.mxu1 %v2914_v5  ;;  %v2920_v5 = vpack.c.bf16 %v1196_v3, %v1195_v1  ;;  %v587_v7 = vld [vmem:[#allocation2 + $0x8c0] sm:$0xff]  ;;  %v593_v8 = vld [vmem:[#allocation2 + $0x8f0] sm:$0xff]  ;;  %v2854_v1 = vpack.c.bf16 %v690_v61, %v684_v59  ;;  %v1163_v59 = vld [vmem:[%s4552_s7 + $0x70] sm:$0xff] }
 0x1f1   :  { %2775 = vmatprep.subr.bf16.mxu0 %v2774_v17  ;;  %v522_v17 = vld [vmem:[#allocation2 + $0x6b8] sm:$0xff]  ;;  %v683_v3 = vld [vmem:[#allocation2 + $0xbc0] sm:$0xff]  ;;  %v1164_v61 = vld [vmem:[%s4552_s7 + $0x78] sm:$0xff] }
 0x1f2   :  { %v2798_v19 = vpack.c.bf16 %v522_v17, %v516_v16  ;;  %v605_v16 = vld [vmem:[#allocation2 + $0x950] sm:$0xff] }
 0x1f3   :  { %2917 = vmatpush3.bf16.msra.mxu1 %v2916_v51  ;;  %v672_v51 = vld [vmem:[#allocation2 + $0xb68] sm:$0xff] }
 0x1f4   :  { %2777 = vmatpush1.bf16.msra.mxu0 %v2776_v24  ;;  %v2800_v24 = vpack.c.bf16 %v521_v21, %v515_v20  ;;  %2919 = vmatprep.subr.bf16.mxu1 %v2918_v62  ;;  %v612_v20 = vld [vmem:[#allocation2 + $0x988] sm:$0xff]  ;;  %v618_v21 = vld [vmem:[#allocation2 + $0x9b8] sm:$0xff] }
 0x1f5   :  { %2779 = vmatprep.subr.bf16.mxu0 %v2778_v30  ;;  %v546_v30 = vld [vmem:[#allocation2 + $0x778] sm:$0xff] }
 0x1f6   :  { %v2806_v33 = vpack.c.bf16 %v546_v30, %v540_v29  ;;  %v630_v29 = vld [vmem:[#allocation2 + $0xa18] sm:$0xff] }
 0x1f7   :  { %2921 = vmatpush3.bf16.msra.mxu1 %v2920_v5  ;;  %v1165_v5 = vld [vmem:[%s4552_s7 + $0x80] sm:$0xff] }
 0x1f8   :  { %2781 = vmatpush1.bf16.msra.mxu0 %v2780_v38  ;;  %v2810_v38 = vpack.c.bf16 %v558_v37, %v552_v36  ;;  %v642_v36 = vld [vmem:[#allocation2 + $0xa78] sm:$0xff] }
 0x1f9   :  { %2783 = vmatprep.subr.bf16.mxu0 %v2782_v43  ;;  %v2814_v43 = vpack.c.bf16 %v570_v41, %v564_v40  ;;  %v654_v40 = vld [vmem:[#allocation2 + $0xad8] sm:$0xff] }
 0x1fc   :  { %2785 = vmatpush1.bf16.msra.mxu0 %v2784_v50  ;;  %v2816_v50 = vpack.c.bf16 %v569_v45, %v563_v44  ;;  %v653_v44 = vld [vmem:[#allocation2 + $0xad0] sm:$0xff]  ;;  %v660_v45 = vld [vmem:[#allocation2 + $0xb08] sm:$0xff] }
 0x1fd   :  { %2787 = vmatprep.subr.bf16.mxu0 %v2786_v55  ;;  %v588_v55 = vld [vmem:[#allocation2 + $0x8c8] sm:$0xff]  ;;  %v2846_v48 = vpack.c.bf16 %v666_v46, %v660_v45  ;;  %v1178_v45 = vld [vmem:[%s4552_s7 + $0xe8] sm:$0xff] }
 0x200   :  { %2789 = vmatpush1.bf16.msra.mxu0 %v2788_v4  ;;  %v2820_v4 = vpack.c.bf16 %v581_v54, %v575_v53 }
 0x201   :  { %2791 = vmatprep.subr.bf16.mxu0 %v2790_v6  ;;  %v2822_v6 = vpack.c.bf16 %v594_v56, %v588_v55  ;;  %v671_v55 = vld [vmem:[#allocation2 + $0xb60] sm:$0xff]  ;;  %v677_v56 = vld [vmem:[#allocation2 + $0xb90] sm:$0xff] }
 0x202   :  { %v2852_v62 = vpack.c.bf16 %v677_v56, %v671_v55 }
 0x204   :  { %2793 = vmatpush1.bf16.msra.mxu0 %v2792_v12  ;;  %v2824_v12 = vpack.c.bf16 %v593_v8, %v587_v7 }
 0x205   :  { %2795 = vmatprep.subr.bf16.mxu0 %v2794_v11  ;;  %v599_v11 = vld [vmem:[#allocation2 + $0x920] sm:$0xff] }
 0x206   :  { %v2828_v23 = vpack.c.bf16 %v605_v16, %v599_v11  ;;  %v1168_v11 = vld [vmem:[%s4552_s7 + $0x98] sm:$0xff] }
 0x207   :  { %1072 = vmatmul.mubr.f32.vlgmr.msra.gmra.mrb[6].mxu0 %v3574_v14  ;;  %v2808_v14 = vpack.c.bf16 %v545_v35, %v539_v34  ;;  %v629_v34 = vld [vmem:[#allocation2 + $0xa10] sm:$0xff]  ;;  %v636_v35 = vld [vmem:[#allocation2 + $0xa48] sm:$0xff] }
 0x208   :  { %2797 = vmatpush1.bf16.msra.mxu0 %v2796_v18  ;;  %1142 = vmatprep.mubr.f32.mxu0 %v3580_v31  ;;  %v551_v31 = vld [vmem:[#allocation2 + $0x7a0] sm:$0xff]  ;;  %v1229_v18 = vld [vmem:[%s4552_s7 + $0x280] sm:$0xff] }
 0x209   :  { %2799 = vmatprep.subr.bf16.mxu0 %v2798_v19  ;;  %v2812_v42 = vpack.c.bf16 %v557_v39, %v551_v31  ;;  %v1230_v19 = vld [vmem:[%s4552_s7 + $0x288] sm:$0xff]  ;;  %v641_v31 = vld [vmem:[#allocation2 + $0xa70] sm:$0xff]  ;;  %v648_v39 = vld [vmem:[#allocation2 + $0xaa8] sm:$0xff] }
 0x20a   :  { %v2922_v22 = vpack.c.bf16 %v1230_v19, %v1229_v18  ;;  %v1151_v18 = vld [vmem:[%s4552_s7 + $0x10] sm:$0xff]  ;;  %v1152_v19 = vld [vmem:[%s4552_s7 + $0x18] sm:$0xff] }
 0x20c   :  { %2801 = vmatpush1.bf16.msra.mxu0 %v2800_v24  ;;  %2923 = vmatprep.subr.bf16.mxu1 %v2922_v22  ;;  %v2830_v24 = vpack.c.bf16 %v618_v21, %v612_v20  ;;  %v1169_v20 = vld [vmem:[%s4552_s7 + $0xa0] sm:$0xff]  ;;  %v1170_v21 = vld [vmem:[%s4552_s7 + $0xa8] sm:$0xff]  ;;  %v2864_v22 = vpack.c.bf16 %v1152_v19, %v1151_v18  ;;  %v1215_v18 = vld [vmem:[%s4552_s7 + $0x210] sm:$0xff] }
 0x20d   :  { %2803 = vmatprep.subr.bf16.mxu0 %v2802_v25  ;;  %v611_v25 = vld [vmem:[#allocation2 + $0x980] sm:$0xff]  ;;  %v1216_v19 = vld [vmem:[%s4552_s7 + $0x218] sm:$0xff] }
 0x20e   :  { %v2832_v30 = vpack.c.bf16 %v617_v26, %v611_v25  ;;  %v1154_v25 = vld [vmem:[%s4552_s7 + $0x28] sm:$0xff]  ;;  %v1171_v26 = vld [vmem:[%s4552_s7 + $0xb0] sm:$0xff] }
 0x210   :  { %2805 = vmatpush1.bf16.msra.mxu0 %v2804_v32  ;;  %v2834_v32 = vpack.c.bf16 %v630_v29, %v624_v27 }
 0x211   :  { %2807 = vmatprep.subr.bf16.mxu0 %v2806_v33  ;;  %v623_v33 = vld [vmem:[#allocation2 + $0x9e0] sm:$0xff] }
 0x212   :  { %v2836_v37 = vpack.c.bf16 %v629_v34, %v623_v33  ;;  %v1173_v33 = vld [vmem:[%s4552_s7 + $0xc0] sm:$0xff]  ;;  %v1174_v34 = vld [vmem:[%s4552_s7 + $0xc8] sm:$0xff] }
 0x214   :  { %2809 = vmatpush1.bf16.msra.mxu0 %v2808_v14  ;;  %v2838_v14 = vpack.c.bf16 %v642_v36, %v636_v35  ;;  %v2874_v36 = vpack.c.bf16 %v1174_v34, %v1173_v33 }
 0x215   :  { %2811 = vmatprep.subr.bf16.mxu0 %v2810_v38  ;;  %v635_v38 = vld [vmem:[#allocation2 + $0xa40] sm:$0xff] }
 0x216   :  { %v2840_v41 = vpack.c.bf16 %v641_v31, %v635_v38  ;;  %v1175_v38 = vld [vmem:[%s4552_s7 + $0xd0] sm:$0xff]  ;;  %v1176_v31 = vld [vmem:[%s4552_s7 + $0xd8] sm:$0xff] }
 0x218   :  { %2813 = vmatpush1.bf16.msra.mxu0 %v2812_v42  ;;  %v2842_v42 = vpack.c.bf16 %v654_v40, %v648_v39  ;;  %v3764_v40 = vld [vmem:[#allocation4] sm:$0x3f] }
 0x219   :  { %2815 = vmatprep.subr.bf16.mxu0 %v2814_v43  ;;  %v647_v43 = vld [vmem:[#allocation2 + $0xaa0] sm:$0xff]  ;;  %v700_v46 = vrot.slane %v3764_v40, %v143_v60  ;;  %v1180_v60 = vld [vmem:[%s4552_s7 + $0xf8] sm:$0xff] }
 0x21a   :  { %v2844_v47 = vpack.c.bf16 %v653_v44, %v647_v43  ;;  %v1160_v43 = vld [vmem:[%s4552_s7 + $0x58] sm:$0xff]  ;;  %v1177_v44 = vld [vmem:[%s4552_s7 + $0xe0] sm:$0xff] }
 0x21c   :  { %2817 = vmatpush1.bf16.msra.mxu0 %v2816_v50  ;;  %v3687_v13 = vpop.f32.mrb[2].mxu1  ;;  %v665_v50 = vld [vmem:[#allocation2 + $0xb30] sm:$0xff] }
 0x21d   :  { %2819 = vmatprep.subr.bf16.mxu0 %v2818_v52  ;;  %v3689_v17 = vpop.f32.mrb[3].mxu1  ;;  %v678_v52 = vld [vmem:[#allocation2 + $0xb98] sm:$0xff]  ;;  %v2848_v53 = vpack.c.bf16 %v665_v50, %v659_v49  ;;  %v1162_v50 = vld [vmem:[%s4552_s7 + $0x68] sm:$0xff] }
 0x21e   :  { %v2850_v54 = vpack.c.bf16 %v678_v52, %v672_v51  ;;  %v1161_v49 = vld [vmem:[%s4552_s7 + $0x60] sm:$0xff]  ;;  %v1179_v52 = vld [vmem:[%s4552_s7 + $0xf0] sm:$0xff] }
 0x21f   :  { %v2884_v55 = vpack.c.bf16 %v1162_v50, %v1161_v49  ;;  %v2886_v56 = vpack.c.bf16 %v1180_v60, %v1179_v52  ;;  %v1244_v49 = vld [vmem:[%s4552_s7 + $0x2f8] sm:$0xff]  ;;  %v1227_v52 = vld [vmem:[%s4552_s7 + $0x270] sm:$0xff] }
 0x220   :  { %2821 = vmatpush1.bf16.msra.mxu0 %v2820_v4  ;;  %v689_v4 = vld [vmem:[#allocation2 + $0xbf0] sm:$0xff] }
 0x221   :  { %2823 = vmatprep.subr.bf16.mxu0 %v2822_v6  ;;  %v1166_v6 = vld [vmem:[%s4552_s7 + $0x88] sm:$0xff]  ;;  %v2856_v7 = vpack.c.bf16 %v689_v4, %v683_v3  ;;  %v704_v4 = vrot.slane %v3764_v40, %v147_v63  ;;  %v1231_v63 = vld [vmem:[%s4552_s7 + $0x290] sm:$0xff]  ;;  %v1228_v60 = vld [vmem:[%s4552_s7 + $0x278] sm:$0xff] }
 0x222   :  { %v2858_v8 = vpack.c.bf16 %v1166_v6, %v1165_v5  ;;  %v708_v5 = vrot.slane %v3764_v40, %v151_v2  ;;  %v1232_v2 = vld [vmem:[%s4552_s7 + $0x298] sm:$0xff] }
 0x224   :  { %2825 = vmatpush1.bf16.msra.mxu0 %v2824_v12  ;;  %v1167_v12 = vld [vmem:[%s4552_s7 + $0x90] sm:$0xff] }
 0x225   :  { %2827 = vmatprep.subr.bf16.mxu0 %v2826_v15  ;;  %v2860_v15 = vpack.c.bf16 %v1150_v10, %v1149_v9  ;;  %v2862_v16 = vpack.c.bf16 %v1168_v11, %v1167_v12  ;;  %v1214_v9 = vld [vmem:[%s4552_s7 + $0x208] sm:$0xff] }
 0x228   :  { %2829 = vmatpush1.bf16.msra.mxu0 %v2828_v23  ;;  %v2866_v23 = vpack.c.bf16 %v1170_v21, %v1169_v20  ;;  %v2928_v20 = vpack.c.bf16 %v1216_v19, %v1215_v18  ;;  %v1539_v18 = vld [vmem:[#allocation7] sm:$0xff]  ;;  %v1540_v19 = vld [vmem:[#allocation7 + $0x8] sm:$0xf] }
 0x229   :  { %2831 = vmatprep.subr.bf16.mxu0 %v2830_v24  ;;  %v1153_v24 = vld [vmem:[%s4552_s7 + $0x20] sm:$0xff] }
 0x22a   :  { %v2868_v27 = vpack.c.bf16 %v1154_v25, %v1153_v24  ;;  %v1235_v24 = vld [vmem:[%s4552_s7 + $0x2b0] sm:$0xff]  ;;  %v1236_v25 = vld [vmem:[%s4552_s7 + $0x2b8] sm:$0xff] }
 0x22c   :  { %2833 = vmatpush1.bf16.msra.mxu0 %v2832_v30  ;;  %v1155_v30 = vld [vmem:[%s4552_s7 + $0x30] sm:$0xff] }
 0x22d   :  { %2835 = vmatprep.subr.bf16.mxu0 %v2834_v32  ;;  %v1156_v32 = vld [vmem:[%s4552_s7 + $0x38] sm:$0xff] }
 0x22e   :  { %v2872_v35 = vpack.c.bf16 %v1156_v32, %v1155_v30  ;;  %v1237_v30 = vld [vmem:[%s4552_s7 + $0x2c0] sm:$0xff]  ;;  %v1238_v32 = vld [vmem:[%s4552_s7 + $0x2c8] sm:$0xff] }
 0x22f   :  { %v2938_v34 = vpack.c.bf16 %v1238_v32, %v1237_v30 }
 0x230   :  { %2837 = vmatpush1.bf16.msra.mxu0 %v2836_v37  ;;  %v1157_v37 = vld [vmem:[%s4552_s7 + $0x40] sm:$0xff] }
 0x231   :  { %2839 = vmatprep.subr.bf16.mxu0 %v2838_v14  ;;  %v1158_v14 = vld [vmem:[%s4552_s7 + $0x48] sm:$0xff] }
 0x232   :  { %v2876_v39 = vpack.c.bf16 %v1158_v14, %v1157_v37  ;;  %v1239_v37 = vld [vmem:[%s4552_s7 + $0x2d0] sm:$0xff]  ;;  %v1240_v14 = vld [vmem:[%s4552_s7 + $0x2d8] sm:$0xff] }
 0x234   :  { %2841 = vmatpush1.bf16.msra.mxu0 %v2840_v41  ;;  %v2878_v41 = vpack.c.bf16 %v1176_v31, %v1175_v38  ;;  %v2942_v31 = vpack.c.bf16 %v1240_v14, %v1239_v37 }
 0x235   :  { %2843 = vmatprep.subr.bf16.mxu0 %v2842_v42  ;;  %v1159_v42 = vld [vmem:[%s4552_s7 + $0x50] sm:$0xff] }
 0x238   :  { %2845 = vmatpush1.bf16.msra.mxu0 %v2844_v47  ;;  %v2880_v47 = vpack.c.bf16 %v1160_v43, %v1159_v42  ;;  %v1241_v42 = vld [vmem:[%s4552_s7 + $0x2e0] sm:$0xff]  ;;  %v1242_v43 = vld [vmem:[%s4552_s7 + $0x2e8] sm:$0xff] }
 0x239   :  { %2847 = vmatprep.subr.bf16.mxu0 %v2846_v48  ;;  %v2882_v48 = vpack.c.bf16 %v1178_v45, %v1177_v44  ;;  %v2946_v45 = vpack.c.bf16 %v1242_v43, %v1241_v42 }
 0x23c   :  { %2849 = vmatpush1.bf16.msra.mxu0 %v2848_v53 }
 0x23d   :  { %2851 = vmatprep.subr.bf16.mxu0 %v2850_v54 }
 0x240   :  { %2853 = vmatpush1.bf16.msra.mxu0 %v2852_v62  ;;  %v2888_v62 = vpack.c.bf16 %v1164_v61, %v1163_v59  ;;  %v711_v59 = vsub.s32 4, %v3555_v57 }
 0x241   :  { %2855 = vmatprep.subr.bf16.mxu0 %v2854_v1  ;;  %v696_v1 = vrot.slane %v3764_v40, %v139_v58  ;;  %v1213_v58 = vld [vmem:[%s4552_s7 + $0x200] sm:$0xff] }
 0x244   :  { %2857 = vmatpush1.bf16.msra.mxu0 %v2856_v7 }
 0x245   :  { %2859 = vmatprep.subr.bf16.mxu0 %v2858_v8 }
 0x247   :  { %1143 = vmatmul.mubr.f32.vlgmr.msra.gmra.mrb[6].mxu0 %v3578_v28  ;;  %v1172_v28 = vld [vmem:[%s4552_s7 + $0xb8] sm:$0xff] }
 0x248   :  { %2861 = vmatpush3.bf16.msra.mxu0 %v2860_v15  ;;  %v2870_v29 = vpack.c.bf16 %v1172_v28, %v1171_v26  ;;  %v2924_v15 = vpack.c.bf16 %v1214_v9, %v1213_v58  ;;  %v2934_v28 = vpack.c.bf16 %v1236_v25, %v1235_v24  ;;  %v1458_v9 = vld [vmem:[#allocation6 + $0x10] sm:$0xff] }
 0x249   :  { %2863 = vmatprep.subr.bf16.mxu0 %v2862_v16  ;;  %v2926_v16 = vpack.c.bf16 %v1232_v2, %v1231_v63 }
 0x24c   :  { %2865 = vmatpush3.bf16.msra.mxu0 %v2864_v22  ;;  %v1217_v22 = vld [vmem:[%s4552_s7 + $0x220] sm:$0xff] }
 0x24d   :  { %2867 = vmatprep.subr.bf16.mxu0 %v2866_v23  ;;  %v1218_v23 = vld [vmem:[%s4552_s7 + $0x228] sm:$0xff] }
 0x24e   :  { %v2932_v26 = vpack.c.bf16 %v1218_v23, %v1217_v22 }
 0x250   :  { %2869 = vmatpush3.bf16.msra.mxu0 %v2868_v27  ;;  %v1219_v27 = vld [vmem:[%s4552_s7 + $0x230] sm:$0xff] }
 0x251   :  { %2871 = vmatprep.subr.bf16.mxu0 %v2870_v29  ;;  %v1220_v29 = vld [vmem:[%s4552_s7 + $0x238] sm:$0xff] }
 0x252   :  { %v2936_v33 = vpack.c.bf16 %v1220_v29, %v1219_v27 }
 0x254   :  { %2873 = vmatpush3.bf16.msra.mxu0 %v2872_v35  ;;  %v1221_v35 = vld [vmem:[%s4552_s7 + $0x240] sm:$0xff] }
 0x255   :  { %2875 = vmatprep.subr.bf16.mxu0 %v2874_v36  ;;  %v1222_v36 = vld [vmem:[%s4552_s7 + $0x248] sm:$0xff] }
 0x256   :  { %v2940_v38 = vpack.c.bf16 %v1222_v36, %v1221_v35 }
 0x258   :  { %2877 = vmatpush3.bf16.msra.mxu0 %v2876_v39  ;;  %v1223_v39 = vld [vmem:[%s4552_s7 + $0x250] sm:$0xff] }
 0x259   :  { %2879 = vmatprep.subr.bf16.mxu0 %v2878_v41  ;;  %v1224_v41 = vld [vmem:[%s4552_s7 + $0x258] sm:$0xff] }
 0x25a   :  { %v860_v51 = vpop.f32.mrb[2].mxu0  ;;  %v2944_v44 = vpack.c.bf16 %v1224_v41, %v1223_v39  ;;  %v1639_v39 = vld [vmem:[#allocation9 + $0x8] sm:$0xff] }
 0x25b   :  { %v862_v53 = vpop.f32.mrb[3].mxu0  ;;  %v3805_v3 = vadd.f32 %v860_v51, %v696_v1  ;;  %v1456_v1 = vld [vmem:[#allocation6] sm:$0xff]  ;;  %v1645_v41 = vcombine.high %v1639_v39, %v1639_v39 }
 0x25c   :  { %v3793_v54 = vadd.f32 %v862_v53, %v700_v46  ;;  %2881 = vmatpush3.bf16.msra.mxu0 %v2880_v47  ;;  %v1225_v46 = vld [vmem:[%s4552_s7 + $0x260] sm:$0xff]  ;;  %v1226_v47 = vld [vmem:[%s4552_s7 + $0x268] sm:$0xff]  ;;  %v2952_v53 = vpack.c.bf16 %v1228_v60, %v1227_v52  ;;  %v1884_v60 = vld [vmem:[%s4555_s10 + $0x18] sm:$0xff] }
 0x25d   :  { %2883 = vmatprep.subr.bf16.mxu0 %v2882_v48  ;;  %v1243_v48 = vld [vmem:[%s4552_s7 + $0x2f0] sm:$0xff]  ;;  %v2948_v50 = vpack.c.bf16 %v1226_v47, %v1225_v46  ;;  %v1882_v52 = vld [vmem:[%s4555_s10 + $0x8] sm:$0xff] }
 0x25e   :  { %1309 = vmatprep.mubr.f32.mxu0 %v3793_v54  ;;  %v2950_v51 = vpack.c.bf16 %v1244_v49, %v1243_v48  ;;  %v1640_v47 = vld [vmem:[#allocation9 + $0x10] sm:$0xff] }
 0x260   :  { %2885 = vmatpush3.bf16.msra.mxu0 %v2884_v55  ;;  %v3323_v55 = vmov 0.0|0.0  }
 0x261   :  { %2887 = vmatprep.subr.bf16.mxu0 %v2886_v56  ;;  %v715_v56 = vsub.s32 5, %v3555_v57 }
 0x263   :  { %v716_v61 = vrot.slane %v3764_v40, %v715_v56  ;;  %v1883_v56 = vld [vmem:[%s4555_s10 + $0x10] sm:$0xff] }
 0x264   :  { %2889 = vmatpush3.bf16.msra.mxu0 %v2888_v62  ;;  %v712_v62 = vrot.slane %v3764_v40, %v711_v59  ;;  %v1455_v40 = vld [vmem:[%s4546_s1] sm:$0xff]  ;;  %v1886_v59 = vld [vmem:[%s4555_s10 + $0x28] sm:$0xff] }
 0x267   :  { %1310 = vmatmul.mubr.f32.vlgmr.msra.gmra.mrb[8].mxu0 %v3805_v3 }
 0x29a   :  { %v931_v6 = vpop.f32.mrb[4].mxu0 }
 0x29b   :  { %v932_v7 = vadd.f32 %v931_v6, %v704_v4  ;;  %v933_v8 = vpop.f32.mrb[5].mxu0  ;;  %v1457_v4 = vld [vmem:[#allocation6 + $0x8] sm:$0xff] }
 0x29c   :  { %v934_v10 = vadd.f32 %v933_v8, %v708_v5  ;;  %v2955_v8 = vpack.c.bf16 %v1457_v4, %v1456_v1  ;;  %v1885_v4 = vld [vmem:[%s4555_s10 + $0x20] sm:$0xff] }
 0x29d   :  { %v3827_v12 = vadd.f32 %v3687_v13, %v932_v7  ;;  %v1233_v13 = vld [vmem:[%s4552_s7 + $0x2a0] sm:$0xff] }
 0x29e   :  { %v3830_v11 = vadd.f32 %v3689_v17, %v934_v10  ;;  %v1234_v17 = vld [vmem:[%s4552_s7 + $0x2a8] sm:$0xff] }
 0x29f   :  { %v2930_v21 = vpack.c.bf16 %v1234_v17, %v1233_v13  ;;  %v1459_v10 = vld [vmem:[#allocation6 + $0x18] sm:$0x7]  ;;  %v2962_v17 = vpack.c.bf16 %v1540_v19, %v1539_v18  ;;  %v1895_v18 = vld [vmem:[%s4555_s10 + $0x70] sm:$0xff] }
 0x2a0   :  { %1379 = vmatprep.mubr.f32.mxu1 %v3830_v11  ;;  %v2958_v57 = vpack.c.bf16 %v1459_v10, %v1458_v9  ;;  %v1889_v10 = vld [vmem:[%s4555_s10 + $0x40] sm:$0xff]  ;;  %v1898_v19 = vld [vmem:[%s4555_s10 + $0x88] sm:$0xff] }
 0x2a1   :  { %1380 = vmatmul.mubr.f32.vlgmr.msra.gmra.mrb[4].mxu1 %v3827_v12 }
 0x2a2   :  { %2925 = vmatpush3.bf16.msra.mxu1 %v2924_v15 }
 0x2a3   :  { %2927 = vmatprep.subr.bf16.mxu1 %v2926_v16 }
 0x2a6   :  { %2929 = vmatpush3.bf16.msra.mxu1 %v2928_v20 }
 0x2a7   :  { %2931 = vmatprep.subr.bf16.mxu1 %v2930_v21 }
 0x2aa   :  { %2933 = vmatpush3.bf16.msra.mxu1 %v2932_v26 }
 0x2ab   :  { %2935 = vmatprep.subr.bf16.mxu1 %v2934_v28 }
 0x2ae   :  { %2937 = vmatpush3.bf16.msra.mxu1 %v2936_v33 }
 0x2af   :  { %2939 = vmatprep.subr.bf16.mxu1 %v2938_v34 }
 0x2b2   :  { %2941 = vmatpush3.bf16.msra.mxu1 %v2940_v38  ;;  %v1638_v38 = vld [vmem:[#allocation9] sm:$0xff] }
 0x2b3   :  { %2943 = vmatprep.subr.bf16.mxu1 %v2942_v31  ;;  %v1644_v31 = vcombine.high %v1638_v38, %v1638_v38 }
 0x2b6   :  { %2945 = vmatpush3.bf16.msra.mxu1 %v2944_v44 }
 0x2b7   :  { %2947 = vmatprep.subr.bf16.mxu1 %v2946_v45 }
 0x2ba   :  { %2949 = vmatpush3.bf16.msra.mxu1 %v2948_v50  ;;  %v1646_v50 = vcombine.high %v1640_v47, %v1640_v47 }
 0x2bb   :  { %2951 = vmatprep.subr.bf16.mxu1 %v2950_v51 }
 0x2be   :  { %2953 = vmatpush3.bf16.msra.mxu1 %v2952_v53  ;;  %v2965_v53 = vpack.c.bf16 %v1884_v60, %v1882_v52  ;;  %v1917_v52 = vld [vmem:[%s4555_s10 + $0x120] sm:$0xff]  ;;  %v1919_v60 = vld [vmem:[%s4555_s10 + $0x130] sm:$0xff] }
 0x2bf   :  { %2954 = vmatprep.subr.bf16.mxu1 %v3323_v55 }
 0x31a   :  { %v1144_v5 = vpop.f32.mrb[6].mxu0 }
 0x31b   :  { %v1146_v6 = vpop.f32.mrb[7].mxu0  ;;  %v3918_v58 = vadd.f32 %v1144_v5, %v712_v62  ;;  %v1887_v5 = vld [vmem:[%s4555_s10 + $0x30] sm:$0xff] }
 0x31c   :  { %v3916_v7 = vadd.f32 %v1146_v6, %v716_v61  ;;  %v1888_v61 = vld [vmem:[%s4555_s10 + $0x38] sm:$0xff]  ;;  %v1890_v6 = vld [vmem:[%s4555_s10 + $0x48] sm:$0xff] }
 0x31d   :  { %v2969_v1 = vpack.c.bf16 %v1888_v61, %v1886_v59  ;;  %v1921_v61 = vld [vmem:[%s4555_s10 + $0x140] sm:$0xff] }
 0x31e   :  { %1449 = vmatprep.mubr.f32.mxu1 %v3916_v7 }
 0x31f   :  { %1450 = vmatmul.mubr.f32.vlgmr.msra.gmra.mrb[6].mxu1 %v3918_v58 }
 0x320   :  { %2956 = vmatpush3.bf16.msra.mxu1 %v2955_v8  ;;  %2432 = vmatprep.mubr.msk.f32.mxu1 %vm3324_vm2, %v3322_v0  ;;  %v1892_v8 = vld [vmem:[%s4555_s10 + $0x58] sm:$0xff] }
 0x321   :  { %2957 = vmatprep.subr.bf16.mxu1 %v3323_v55  ;;  %v2973_v9 = vpack.c.bf16 %v1892_v8, %v1890_v6  ;;  %v1925_v8 = vld [vmem:[%s4555_s10 + $0x160] sm:$0xff] }
 0x324   :  { %2960 = vmatpush3.bf16.msk.msra.mxu1 %vm2959_vm4, %v2958_v57  ;;  %v1891_v57 = vld [vmem:[%s4555_s10 + $0x50] sm:$0xff] }
 0x325   :  { %2961 = vmatprep.subr.bf16.mxu1 %v3323_v55  ;;  %v1881_v55 = vld [vmem:[%s4555_s10] sm:$0xff] }
 0x326   :  { %v2967_v62 = vpack.c.bf16 %v1883_v56, %v1881_v55  ;;  %v1924_v55 = vld [vmem:[%s4555_s10 + $0x158] sm:$0xff]  ;;  %v3003_v56 = vpack.c.bf16 %v1919_v60, %v1917_v52 }
 0x327   :  { %2433 = vmatmul.mubr.msk.f32.vlgmr.msra.gmra.mrb[8].mxu1 %vm1460_vm5, %v1455_v40  ;;  %v1894_v40 = vld [vmem:[%s4555_s10 + $0x68] sm:$0xff] }
 0x328   :  { %2439 = vmatprep.mubr.msk.f32.mxu1 %vm3324_vm2, %v3322_v0  ;;  %2964 = vmatpush3.bf16.msk.msra.mxu1 %vm2963_vm7, %v2962_v17 }
 0x329   :  { %2302 = vmatprep.subr.msk.mxu1 %vm1545_vm6, %v1644_v31  ;;  %v1909_v31 = vld [vmem:[%s4555_s10 + $0xe0] sm:$0xff] }
 0x33a   :  { %v2343_v63 = vpop.f32.mrb[8].mxu0 }
 0x33b   :  { %v2344_v2 = vpop.f32.mrb[9].mxu0 }
 0x33c   :  { %v2345_v15 = vadd.f32 %v2344_v2, %v2343_v63  ;;  %v1896_v63 = vld [vmem:[%s4555_s10 + $0x78] sm:$0xff]  ;;  %v2975_v2 = vpack.c.bf16 %v1891_v57, %v1889_v10 }
 0x33d   :  { %v1932_v10 = vld [vmem:[%s4555_s10 + $0x198] sm:$0xff] }
 0x374   :  { %v2378_v16 = vpop.f32.mrb[4].mxu1 }
 0x375   :  { %v2379_v13 = vpop.f32.mrb[5].mxu1 }
 0x376   :  { %v2380_v20 = vadd.f32 %v2379_v13, %v2378_v16  ;;  %v1893_v16 = vld [vmem:[%s4555_s10 + $0x60] sm:$0xff]  ;;  %v1900_v13 = vld [vmem:[%s4555_s10 + $0x98] sm:$0xff] }
 0x377   :  { %v2979_v17 = vpack.c.bf16 %v1895_v18, %v1893_v16  ;;  %v1936_v16 = vld [vmem:[%s4555_s10 + $0x1b8] sm:$0xff] }
 0x378   :  { %v1382_v21 = vadd.f32 %v2380_v20, %v2345_v15  ;;  %v2977_v15 = vpack.c.bf16 %v1896_v63, %v1894_v40  ;;  %v2981_v20 = vpack.c.bf16 %v1900_v13, %v1898_v19  ;;  %v1929_v63 = vld [vmem:[%s4555_s10 + $0x180] sm:$0xff] }
 0x379   :  { %v1933_v13 = vld [vmem:[%s4555_s10 + $0x1a0] sm:$0xff] }
 0x3f2   :  { %v2413_v22 = vpop.f32.mrb[6].mxu1 }
 0x3f3   :  { %v2414_v23 = vpop.f32.mrb[7].mxu1 }
 0x3f4   :  { %v2415_v24 = vadd.f32 %v2414_v23, %v2413_v22  ;;  %v1899_v22 = vld [vmem:[%s4555_s10 + $0x90] sm:$0xff]  ;;  %v1902_v23 = vld [vmem:[%s4555_s10 + $0xa8] sm:$0xff] }
 0x3f6   :  { %v1452_v25 = vadd.f32 %v2415_v24, %v1382_v21  ;;  %v1897_v21 = vld [vmem:[%s4555_s10 + $0x80] sm:$0xff]  ;;  %v1904_v24 = vld [vmem:[%s4555_s10 + $0xb8] sm:$0xff] }
 0x3fa   :  { %v1534_v26 = vpop.f32.mrb[8].mxu1 }
 0x3fb   :  { %v1538_v28 = vmul.f32 %v1534_v26, %v1452_v25  ;;  %v2434_v27 = vpop.f32.mrb[9].mxu1  ;;  %v2983_v25 = vpack.c.bf16 %v1899_v22, %v1897_v21  ;;  %v2985_v26 = vpack.c.bf16 %v1904_v24, %v1902_v23  ;;  %v1940_v21 = vld [vmem:[%s4555_s10 + $0x1d8] sm:$0xff]  ;;  %v1937_v24 = vld [vmem:[%s4555_s10 + $0x1c0] sm:$0xff] }
 0x3fc   :  { %v1903_v27 = vld [vmem:[%s4555_s10 + $0xb0] sm:$0xff] }
 0x3fd   :  { %2440 = vmatmul.mubr.msk.f32.vlgmr.msra.gmra.mrb[10].mxu1 %vm1541_vm8, %v1538_v28  ;;  %v1901_v28 = vld [vmem:[%s4555_s10 + $0xa0] sm:$0xff] }
 0x3fe   :  { %1726 = vmatprep.mubr.f32.mxu1 %v3322_v0  ;;  %2303 = vmatpush1.msk.msra.mxu1 %vm1545_vm6, %v1638_v38 }
 0x3ff   :  { %2305 = vmatprep.subr.msk.mxu1 %vm1545_vm6, %v1645_v41  ;;  %v1914_v41 = vld [vmem:[%s4555_s10 + $0x108] sm:$0xff] }
 0x4d0   :  { %v1615_v29 = vpop.f32.mrb[10].mxu1 }
 0x4d1   :  { %v2441_v30 = vpop.f32.mrb[11].mxu1  ;;  %v1620_v32 = vsel %vm1619_vm9, %v1615_v29, -inf }
 0x4d2   :  { %1621 = vmax.xlane.f32.xlu0 %v1620_v32  ;;  %v1908_v30 = vld [vmem:[%s4555_s10 + $0xd8] sm:$0xff]  ;;  %v2987_v32 = vpack.c.bf16 %v1903_v27, %v1901_v28  ;;  %v1942_v28 = vld [vmem:[%s4555_s10 + $0x1e8] sm:$0xff] }
 0x4d3   :  { %v1944_v27 = vld [vmem:[%s4555_s10 + $0x1f8] sm:$0xff] }
 0x55f   :  { %v1622_v33 = vpop.xlane.xlu0 %1621 }
 0x560   :  { %v1623_v34 = vmax.f32 %v1622_v33, 0.0 }
 0x562   :  { %v1624_v35 = vsub.f32 %v1615_v29, %v1623_v34  ;;  %v1627_v42 = vsub.f32 0.0, %v1623_v34  ;;  %v1906_v29 = vld [vmem:[%s4555_s10 + $0xc8] sm:$0xff]  ;;  %v1905_v34 = vld [vmem:[%s4555_s10 + $0xc0] sm:$0xff] }
 0x563   :  { %v2989_v33 = vpack.c.bf16 %v1908_v30, %v1906_v29  ;;  %v3025_v29 = vpack.c.bf16 %v1944_v27, %v1942_v28  ;;  %v1941_v30 = vld [vmem:[%s4555_s10 + $0x1e0] sm:$0xff]  ;;  %v1975_v27 = vld [vmem:[%s4555_s10 + $0x2f0] sm:$0xff] }
 0x564   :  { %v1625_v36 = vmul.f32 1.442695, %v1624_v35  ;;  %v1628_v43 = vmul.f32 1.442695, %v1627_v42  ;;  %v1907_v35 = vld [vmem:[%s4555_s10 + $0xd0] sm:$0xff]  ;;  %v1916_v42 = vld [vmem:[%s4555_s10 + $0x118] sm:$0xff] }
 0x565   :  { %v1973_v28 = vld [vmem:[%s4555_s10 + $0x2e0] sm:$0xff] }
 0x566   :  { %3191 = vpow2.f32 %v1625_v36  ;;  %v1910_v36 = vld [vmem:[%s4555_s10 + $0xe8] sm:$0xff] }
 0x567   :  { %3193 = vpow2.f32 %v1628_v43 }
 0x570   :  { %v3192_v37 = vpop.eup %3191 }
 0x571   :  { %v1630_v14 = vsel %vm1619_vm9, %v3192_v37, 0.0  ;;  %v3194_v44 = vpop.eup %3193 }
 0x572   :  { %1631 = vadd.xlane.f32.xlu0 %v1630_v14  ;;  %v2991_v14 = vpack.c.bf16 %v1907_v35, %v1905_v34  ;;  %v1946_v34 = vld [vmem:[%s4555_s10 + $0x208] sm:$0xff]  ;;  %v1948_v35 = vld [vmem:[%s4555_s10 + $0x218] sm:$0xff] }
 0x5ff   :  { %v1632_v45 = vpop.xlane.xlu0 %1631 }
 0x600   :  { %v1633_v46 = vadd.f32 %v3194_v44, %v1632_v45  ;;  %v1913_v45 = vld [vmem:[%s4555_s10 + $0x100] sm:$0xff] }
 0x602   :  { %3195 = vrcp.f32 %v1633_v46  ;;  %v1915_v46 = vld [vmem:[%s4555_s10 + $0x110] sm:$0xff] }
 0x60c   :  { %v3196_v48 = vpop.eup %3195 }
 0x60d   :  { %v1636_v49 = vmul.f32 %v3196_v48, %v3192_v37  ;;  %v3936_v51 = vmul.f32 %v3196_v48, %v3194_v44  ;;  %v1912_v37 = vld [vmem:[%s4555_s10 + $0xf8] sm:$0xff]  ;;  %v2997_v44 = vpack.c.bf16 %v1916_v42, %v1914_v41 }
 0x60e   :  { %v2993_v38 = vpack.c.bf16 %v1912_v37, %v1910_v36  ;;  %v1920_v48 = vld [vmem:[%s4555_s10 + $0x138] sm:$0xff]  ;;  %v3029_v36 = vpack.c.bf16 %v1948_v35, %v1946_v34  ;;  %v1945_v37 = vld [vmem:[%s4555_s10 + $0x200] sm:$0xff]  ;;  %v1979_v35 = vld [vmem:[%s4555_s10 + $0x310] sm:$0xff] }
 0x60f   :  { %2304 = vmatmul.mubr.msk.f32.vlgmr.msra.gmra.mrb[12].mxu1 %vm1619_vm9, %v1636_v49  ;;  %v1977_v34 = vld [vmem:[%s4555_s10 + $0x300] sm:$0xff] }
 0x610   :  { %2306 = vmatpush1.msk.msra.mxu1 %vm1545_vm6, %v1639_v39  ;;  %1797 = vmatprep.mubr.f32.mxu1 %v3322_v0  ;;  %v1911_v39 = vld [vmem:[%s4555_s10 + $0xf0] sm:$0xff] }
 0x611   :  { %2308 = vmatprep.subr.msk.mxu1 %vm1545_vm6, %v1646_v50  ;;  %v2995_v43 = vpack.c.bf16 %v1911_v39, %v1909_v31  ;;  %v1950_v31 = vld [vmem:[%s4555_s10 + $0x228] sm:$0xff]  ;;  %v1952_v39 = vld [vmem:[%s4555_s10 + $0x238] sm:$0xff] }
 0x613   :  { %2307 = vmatmul.mubr.msk.f32.vlgmr.msra.gmra.mrb[14].mxu1 %vm1619_vm9, %v1636_v49 }
 0x614   :  { %2309 = vmatpush1.msk.msra.mxu1 %vm1545_vm6, %v1640_v47  ;;  %1868 = vmatprep.mubr.f32.mxu1 %v3322_v0  ;;  %v2971_v0 = vpack.c.bf16 %v1887_v5, %v1885_v4  ;;  %v1918_v47 = vld [vmem:[%s4555_s10 + $0x128] sm:$0xff]  ;;  %v1928_v4 = vld [vmem:[%s4555_s10 + $0x178] sm:$0xff] }
 0x615   :  { %2966 = vmatprep.subr.bf16.mxu1 %v2965_v53  ;;  %v3001_v50 = vpack.c.bf16 %v1920_v48, %v1918_v47  ;;  %v1922_v53 = vld [vmem:[%s4555_s10 + $0x148] sm:$0xff]  ;;  %v1951_v47 = vld [vmem:[%s4555_s10 + $0x230] sm:$0xff] }
 0x616   :  { %v3005_v59 = vpack.c.bf16 %v1924_v55, %v1922_v53  ;;  %v1953_v53 = vld [vmem:[%s4555_s10 + $0x240] sm:$0xff]  ;;  %v1955_v55 = vld [vmem:[%s4555_s10 + $0x250] sm:$0xff] }
 0x617   :  { %2310 = vmatmul.mubr.msk.f32.vlgmr.msra.gmra.mrb[16].mxu1 %vm1619_vm9, %v1636_v49  ;;  %v2999_v49 = vpack.c.bf16 %v1915_v46, %v1913_v45  ;;  %v3033_v45 = vpack.c.bf16 %v1952_v39, %v1950_v31  ;;  %v1949_v46 = vld [vmem:[%s4555_s10 + $0x220] sm:$0xff]  ;;  %v1983_v39 = vld [vmem:[%s4555_s10 + $0x330] sm:$0xff] }
 0x618   :  { %2968 = vmatpush1.bf16.msra.mxu1 %v2967_v62  ;;  %v1923_v62 = vld [vmem:[%s4555_s10 + $0x150] sm:$0xff]  ;;  %v3035_v52 = vpack.c.bf16 %v1951_v47, %v1949_v46  ;;  %v1981_v31 = vld [vmem:[%s4555_s10 + $0x320] sm:$0xff]  ;;  %v1990_v47 = vld [vmem:[%s4555_s10 + $0x368] sm:$0xff] }
 0x619   :  { %2970 = vmatprep.subr.bf16.mxu1 %v2969_v1  ;;  %v1926_v1 = vld [vmem:[%s4555_s10 + $0x168] sm:$0xff]  ;;  %v3007_v5 = vpack.c.bf16 %v1923_v62, %v1921_v61  ;;  %v3039_v62 = vpack.c.bf16 %v1955_v55, %v1953_v53  ;;  %v1987_v46 = vld [vmem:[%s4555_s10 + $0x350] sm:$0xff]  ;;  %v1996_v53 = vld [vmem:[%s4555_s10 + $0x398] sm:$0xff] }
 0x61a   :  { %v3009_v6 = vpack.c.bf16 %v1928_v4, %v1926_v1  ;;  %v1957_v4 = vld [vmem:[%s4555_s10 + $0x260] sm:$0xff] }
 0x61c   :  { %2972 = vmatpush1.bf16.msra.mxu1 %v2971_v0  ;;  %v1927_v0 = vld [vmem:[%s4555_s10 + $0x170] sm:$0xff] }
 0x61d   :  { %2974 = vmatprep.subr.bf16.mxu1 %v2973_v9  ;;  %v1930_v9 = vld [vmem:[%s4555_s10 + $0x188] sm:$0xff]  ;;  %v3011_v57 = vpack.c.bf16 %v1927_v0, %v1925_v8  ;;  %v1964_v8 = vld [vmem:[%s4555_s10 + $0x298] sm:$0xff] }
 0x61e   :  { %v3013_v40 = vpack.c.bf16 %v1932_v10, %v1930_v9  ;;  %v1961_v10 = vld [vmem:[%s4555_s10 + $0x280] sm:$0xff] }
 0x620   :  { %2976 = vmatpush1.bf16.msra.mxu1 %v2975_v2  ;;  %v1931_v2 = vld [vmem:[%s4555_s10 + $0x190] sm:$0xff] }
 0x621   :  { %2978 = vmatprep.subr.bf16.mxu1 %v2977_v15  ;;  %v1934_v15 = vld [vmem:[%s4555_s10 + $0x1a8] sm:$0xff]  ;;  %v3015_v18 = vpack.c.bf16 %v1931_v2, %v1929_v63  ;;  %v1968_v63 = vld [vmem:[%s4555_s10 + $0x2b8] sm:$0xff] }
 0x622   :  { %v3017_v19 = vpack.c.bf16 %v1936_v16, %v1934_v15  ;;  %v1965_v16 = vld [vmem:[%s4555_s10 + $0x2a0] sm:$0xff] }
 0x624   :  { %2980 = vmatpush1.bf16.msra.mxu1 %v2979_v17  ;;  %v1935_v17 = vld [vmem:[%s4555_s10 + $0x1b0] sm:$0xff] }
 0x625   :  { %2982 = vmatprep.subr.bf16.mxu1 %v2981_v20  ;;  %v1938_v20 = vld [vmem:[%s4555_s10 + $0x1c8] sm:$0xff]  ;;  %v3019_v22 = vpack.c.bf16 %v1935_v17, %v1933_v13  ;;  %v1972_v13 = vld [vmem:[%s4555_s10 + $0x2d8] sm:$0xff] }
 0x626   :  { %v3021_v23 = vpack.c.bf16 %v1940_v21, %v1938_v20  ;;  %v1969_v21 = vld [vmem:[%s4555_s10 + $0x2c0] sm:$0xff] }
 0x628   :  { %2984 = vmatpush1.bf16.msra.mxu1 %v2983_v25  ;;  %v1939_v25 = vld [vmem:[%s4555_s10 + $0x1d0] sm:$0xff] }
 0x629   :  { %2986 = vmatprep.subr.bf16.mxu1 %v2985_v26  ;;  %v3023_v26 = vpack.c.bf16 %v1939_v25, %v1937_v24  ;;  %v1976_v24 = vld [vmem:[%s4555_s10 + $0x2f8] sm:$0xff] }
 0x62c   :  { %2988 = vmatpush1.bf16.msra.mxu1 %v2987_v32  ;;  %v1943_v32 = vld [vmem:[%s4555_s10 + $0x1f0] sm:$0xff] }
 0x62d   :  { %2990 = vmatprep.subr.bf16.mxu1 %v2989_v33  ;;  %v3027_v33 = vpack.c.bf16 %v1943_v32, %v1941_v30  ;;  %v1980_v30 = vld [vmem:[%s4555_s10 + $0x318] sm:$0xff]  ;;  %v3059_v32 = vpack.c.bf16 %v1975_v27, %v1973_v28 }
 0x62e   :  { %v2016_v28 = vld [vmem:[%s4555_s10 + $0x438] sm:$0xff] }
 0x630   :  { %2992 = vmatpush1.bf16.msra.mxu1 %v2991_v14  ;;  %v1947_v14 = vld [vmem:[%s4555_s10 + $0x210] sm:$0xff] }
 0x631   :  { %2994 = vmatprep.subr.bf16.mxu1 %v2993_v38 }
 0x634   :  { %2996 = vmatpush1.bf16.msra.mxu1 %v2995_v43  ;;  %v3031_v43 = vpack.c.bf16 %v1947_v14, %v1945_v37  ;;  %v1984_v37 = vld [vmem:[%s4555_s10 + $0x338] sm:$0xff]  ;;  %v3063_v14 = vpack.c.bf16 %v1979_v35, %v1977_v34  ;;  %v2018_v35 = vld [vmem:[%s4555_s10 + $0x448] sm:$0xff] }
 0x635   :  { %2998 = vmatprep.subr.bf16.mxu1 %v2997_v44 }
 0x638   :  { %3000 = vmatpush1.bf16.msra.mxu1 %v2999_v49  ;;  %v1954_v49 = vld [vmem:[%s4555_s10 + $0x248] sm:$0xff] }
 0x639   :  { %3002 = vmatprep.subr.bf16.mxu1 %v3001_v50 }
 0x63c   :  { %3004 = vmatpush1.bf16.msra.mxu1 %v3003_v56 }
 0x63d   :  { %3006 = vmatprep.subr.bf16.mxu1 %v3005_v59  ;;  %v1958_v59 = vld [vmem:[%s4555_s10 + $0x268] sm:$0xff] }
 0x640   :  { %3008 = vmatpush1.bf16.msra.mxu1 %v3007_v5  ;;  %v1959_v5 = vld [vmem:[%s4555_s10 + $0x270] sm:$0xff] }
 0x641   :  { %3010 = vmatprep.subr.bf16.mxu1 %v3009_v6  ;;  %v1962_v6 = vld [vmem:[%s4555_s10 + $0x288] sm:$0xff]  ;;  %v3043_v0 = vpack.c.bf16 %v1959_v5, %v1957_v4  ;;  %v2000_v4 = vld [vmem:[%s4555_s10 + $0x3b8] sm:$0xff] }
 0x642   :  { %v3045_v9 = vpack.c.bf16 %v1964_v8, %v1962_v6  ;;  %v1997_v8 = vld [vmem:[%s4555_s10 + $0x3a0] sm:$0xff] }
 0x644   :  { %3012 = vmatpush1.bf16.msra.mxu1 %v3011_v57  ;;  %v1963_v57 = vld [vmem:[%s4555_s10 + $0x290] sm:$0xff] }
 0x645   :  { %3014 = vmatprep.subr.bf16.mxu1 %v3013_v40  ;;  %v1966_v40 = vld [vmem:[%s4555_s10 + $0x2a8] sm:$0xff]  ;;  %v3047_v2 = vpack.c.bf16 %v1963_v57, %v1961_v10  ;;  %v2004_v10 = vld [vmem:[%s4555_s10 + $0x3d8] sm:$0xff] }
 0x646   :  { %v3049_v15 = vpack.c.bf16 %v1968_v63, %v1966_v40  ;;  %v2001_v63 = vld [vmem:[%s4555_s10 + $0x3c0] sm:$0xff] }
 0x648   :  { %3016 = vmatpush1.bf16.msra.mxu1 %v3015_v18  ;;  %v1967_v18 = vld [vmem:[%s4555_s10 + $0x2b0] sm:$0xff] }
 0x649   :  { %3018 = vmatprep.subr.bf16.mxu1 %v3017_v19  ;;  %v1970_v19 = vld [vmem:[%s4555_s10 + $0x2c8] sm:$0xff]  ;;  %v3051_v17 = vpack.c.bf16 %v1967_v18, %v1965_v16  ;;  %v2008_v16 = vld [vmem:[%s4555_s10 + $0x3f8] sm:$0xff] }
 0x64a   :  { %v3053_v20 = vpack.c.bf16 %v1972_v13, %v1970_v19  ;;  %v2005_v13 = vld [vmem:[%s4555_s10 + $0x3e0] sm:$0xff] }
 0x64c   :  { %3020 = vmatpush1.bf16.msra.mxu1 %v3019_v22  ;;  %v1971_v22 = vld [vmem:[%s4555_s10 + $0x2d0] sm:$0xff] }
 0x64d   :  { %3022 = vmatprep.subr.bf16.mxu1 %v3021_v23  ;;  %v1974_v23 = vld [vmem:[%s4555_s10 + $0x2e8] sm:$0xff]  ;;  %v3055_v25 = vpack.c.bf16 %v1971_v22, %v1969_v21  ;;  %v2012_v21 = vld [vmem:[%s4555_s10 + $0x418] sm:$0xff] }
 0x650   :  { %3024 = vmatpush1.bf16.msra.mxu1 %v3023_v26  ;;  %v3057_v26 = vpack.c.bf16 %v1976_v24, %v1974_v23  ;;  %v2009_v24 = vld [vmem:[%s4555_s10 + $0x400] sm:$0xff] }
 0x651   :  { %3026 = vmatprep.subr.bf16.mxu1 %v3025_v29  ;;  %v1978_v29 = vld [vmem:[%s4555_s10 + $0x308] sm:$0xff] }
 0x654   :  { %3028 = vmatpush1.bf16.msra.mxu1 %v3027_v33  ;;  %v3061_v33 = vpack.c.bf16 %v1980_v30, %v1978_v29 }
 0x655   :  { %3030 = vmatprep.subr.bf16.mxu1 %v3029_v36  ;;  %v1982_v36 = vld [vmem:[%s4555_s10 + $0x328] sm:$0xff] }
 0x6e2   :  { %v1728_v38 = vpop.f32.mrb[12].mxu1 }
 0x6e3   :  { %v1730_v41 = vpop.f32.mrb[13].mxu1  ;;  %v1875_v44 = vmul.f32 %v3805_v3, %v1728_v38  ;;  %v3065_v38 = vpack.c.bf16 %v1984_v37, %v1982_v36  ;;  %v2017_v37 = vld [vmem:[%s4555_s10 + $0x440] sm:$0xff] }
 0x6e4   :  { %v1876_v42 = vmul.f32 %v3793_v54, %v1730_v41  ;;  %v1956_v54 = vld [vmem:[%s4555_s10 + $0x258] sm:$0xff]  ;;  %v1986_v41 = vld [vmem:[%s4555_s10 + $0x348] sm:$0xff] }
 0x6e5   :  { %v3037_v60 = vpack.c.bf16 %v1956_v54, %v1954_v49  ;;  %v1992_v49 = vld [vmem:[%s4555_s10 + $0x378] sm:$0xff] }
 0x6e6   :  { %v4164_v48 = vpop.f32.mrb[14].mxu1  ;;  %2138 = vmatprep.mubr.f32.mxu1 %v1876_v42  ;;  %v1988_v42 = vld [vmem:[%s4555_s10 + $0x358] sm:$0xff] }
 0x6e7   :  { %v1801_v3 = vpop.f32.mrb[15].mxu1  ;;  %2139 = vmatmul.mubr.f32.vlgmr.msra.gmra.mrb[18].mxu1 %v1875_v44  ;;  %v3069_v44 = vpack.c.bf16 %v1988_v42, %v1986_v41  ;;  %v1877_v29 = vmul.f32 %v4164_v48, %v3827_v12  ;;  %v2020_v12 = vld [vmem:[%s4555_s10 + $0x458] sm:$0xff]  ;;  %v2023_v41 = vld [vmem:[%s4555_s10 + $0x470] sm:$0xff]  ;;  %v2026_v42 = vld [vmem:[%s4555_s10 + $0x488] sm:$0xff] }
 0x6e8   :  { %v1878_v50 = vmul.f32 %v1801_v3, %v3830_v11  ;;  %3032 = vmatpush1.bf16.msra.mxu1 %v3031_v43  ;;  %v1960_v11 = vld [vmem:[%s4555_s10 + $0x278] sm:$0xff]  ;;  %v3067_v43 = vpack.c.bf16 %v1983_v39, %v1981_v31  ;;  %v3073_v3 = vpack.c.bf16 %v1992_v49, %v1990_v47  ;;  %v3101_v36 = vpack.c.bf16 %v2020_v12, %v2018_v35  ;;  %v2021_v39 = vld [vmem:[%s4555_s10 + $0x460] sm:$0xff]  ;;  %v2027_v47 = vld [vmem:[%s4555_s10 + $0x490] sm:$0xff] }
 0x6e9   :  { %3034 = vmatprep.subr.bf16.mxu1 %v3033_v45  ;;  %v3041_v1 = vpack.c.bf16 %v1960_v11, %v1958_v59  ;;  %v1985_v45 = vld [vmem:[%s4555_s10 + $0x340] sm:$0xff]  ;;  %v2030_v49 = vld [vmem:[%s4555_s10 + $0x4a8] sm:$0xff]  ;;  %v2060_v35 = vld [vmem:[%s4555_s10 + $0x598] sm:$0xff] }
 0x6ea   :  { %v4179_v56 = vpop.f32.mrb[16].mxu1  ;;  %2209 = vmatprep.mubr.f32.mxu1 %v1878_v50  ;;  %v3071_v54 = vpack.c.bf16 %v1987_v46, %v1985_v45  ;;  %v1989_v50 = vld [vmem:[%s4555_s10 + $0x360] sm:$0xff] }
 0x6eb   :  { %v4187_v61 = vpop.f32.mrb[17].mxu1  ;;  %v1993_v11 = vld [vmem:[%s4555_s10 + $0x380] sm:$0xff] }
 0x6ec   :  { %3036 = vmatpush1.bf16.msra.mxu1 %v3035_v52  ;;  %v1991_v52 = vld [vmem:[%s4555_s10 + $0x370] sm:$0xff]  ;;  %v1880_v34 = vmul.f32 %v3916_v7, %v4187_v61  ;;  %v2022_v61 = vld [vmem:[%s4555_s10 + $0x468] sm:$0xff]  ;;  %v2025_v46 = vld [vmem:[%s4555_s10 + $0x480] sm:$0xff] }
 0x6ed   :  { %3038 = vmatprep.subr.bf16.mxu1 %v3037_v60  ;;  %v1994_v60 = vld [vmem:[%s4555_s10 + $0x388] sm:$0xff]  ;;  %v3075_v55 = vpack.c.bf16 %v1991_v52, %v1989_v50  ;;  %v2019_v7 = vld [vmem:[%s4555_s10 + $0x450] sm:$0xff]  ;;  %v2029_v52 = vld [vmem:[%s4555_s10 + $0x4a0] sm:$0xff] }
 0x6ee   :  { %v3077_v59 = vpack.c.bf16 %v1996_v53, %v1994_v60  ;;  %v2031_v60 = vld [vmem:[%s4555_s10 + $0x4b0] sm:$0xff]  ;;  %v2034_v53 = vld [vmem:[%s4555_s10 + $0x4c8] sm:$0xff] }
 0x6f0   :  { %3040 = vmatpush1.bf16.msra.mxu1 %v3039_v62  ;;  %v1995_v62 = vld [vmem:[%s4555_s10 + $0x390] sm:$0xff] }
 0x6f1   :  { %3042 = vmatprep.subr.bf16.mxu1 %v3041_v1  ;;  %v1998_v1 = vld [vmem:[%s4555_s10 + $0x3a8] sm:$0xff]  ;;  %v3079_v5 = vpack.c.bf16 %v1995_v62, %v1993_v11  ;;  %v2033_v62 = vld [vmem:[%s4555_s10 + $0x4c0] sm:$0xff] }
 0x6f2   :  { %v3081_v6 = vpack.c.bf16 %v2000_v4, %v1998_v1  ;;  %v2035_v1 = vld [vmem:[%s4555_s10 + $0x4d0] sm:$0xff]  ;;  %v2038_v4 = vld [vmem:[%s4555_s10 + $0x4e8] sm:$0xff] }
 0x6f4   :  { %3044 = vmatpush1.bf16.msra.mxu1 %v3043_v0  ;;  %v1999_v0 = vld [vmem:[%s4555_s10 + $0x3b0] sm:$0xff] }
 0x6f5   :  { %3046 = vmatprep.subr.bf16.mxu1 %v3045_v9  ;;  %v2002_v9 = vld [vmem:[%s4555_s10 + $0x3c8] sm:$0xff]  ;;  %v3083_v57 = vpack.c.bf16 %v1999_v0, %v1997_v8  ;;  %v2037_v0 = vld [vmem:[%s4555_s10 + $0x4e0] sm:$0xff] }
 0x6f6   :  { %v3085_v40 = vpack.c.bf16 %v2004_v10, %v2002_v9  ;;  %v2039_v9 = vld [vmem:[%s4555_s10 + $0x4f0] sm:$0xff]  ;;  %v2042_v10 = vld [vmem:[%s4555_s10 + $0x508] sm:$0xff] }
 0x6f8   :  { %3048 = vmatpush1.bf16.msra.mxu1 %v3047_v2  ;;  %v2003_v2 = vld [vmem:[%s4555_s10 + $0x3d0] sm:$0xff] }
 0x6f9   :  { %3050 = vmatprep.subr.bf16.mxu1 %v3049_v15  ;;  %v2006_v15 = vld [vmem:[%s4555_s10 + $0x3e8] sm:$0xff]  ;;  %v3087_v18 = vpack.c.bf16 %v2003_v2, %v2001_v63  ;;  %v2041_v2 = vld [vmem:[%s4555_s10 + $0x500] sm:$0xff] }
 0x6fa   :  { %v3089_v19 = vpack.c.bf16 %v2008_v16, %v2006_v15  ;;  %v2043_v15 = vld [vmem:[%s4555_s10 + $0x510] sm:$0xff]  ;;  %v2046_v16 = vld [vmem:[%s4555_s10 + $0x528] sm:$0xff] }
 0x6fc   :  { %3052 = vmatpush1.bf16.msra.mxu1 %v3051_v17  ;;  %v2007_v17 = vld [vmem:[%s4555_s10 + $0x3f0] sm:$0xff] }
 0x6fd   :  { %3054 = vmatprep.subr.bf16.mxu1 %v3053_v20  ;;  %v2010_v20 = vld [vmem:[%s4555_s10 + $0x408] sm:$0xff]  ;;  %v3091_v22 = vpack.c.bf16 %v2007_v17, %v2005_v13  ;;  %v2045_v17 = vld [vmem:[%s4555_s10 + $0x520] sm:$0xff] }
 0x6fe   :  { %v3093_v23 = vpack.c.bf16 %v2012_v21, %v2010_v20  ;;  %v2047_v20 = vld [vmem:[%s4555_s10 + $0x530] sm:$0xff]  ;;  %v2050_v21 = vld [vmem:[%s4555_s10 + $0x548] sm:$0xff] }
 0x700   :  { %3056 = vmatpush1.bf16.msra.mxu1 %v3055_v25  ;;  %v2011_v25 = vld [vmem:[%s4555_s10 + $0x410] sm:$0xff] }
 0x701   :  { %3058 = vmatprep.subr.bf16.mxu1 %v3057_v26  ;;  %v2014_v26 = vld [vmem:[%s4555_s10 + $0x428] sm:$0xff]  ;;  %v3095_v27 = vpack.c.bf16 %v2011_v25, %v2009_v24  ;;  %v2049_v25 = vld [vmem:[%s4555_s10 + $0x540] sm:$0xff] }
 0x702   :  { %v3097_v30 = vpack.c.bf16 %v2016_v28, %v2014_v26  ;;  %v2051_v26 = vld [vmem:[%s4555_s10 + $0x550] sm:$0xff]  ;;  %v2054_v28 = vld [vmem:[%s4555_s10 + $0x568] sm:$0xff] }
 0x704   :  { %3060 = vmatpush1.bf16.msra.mxu1 %v3059_v32  ;;  %v2013_v32 = vld [vmem:[%s4555_s10 + $0x420] sm:$0xff] }
 0x705   :  { %3062 = vmatprep.subr.bf16.mxu1 %v3061_v33  ;;  %v2015_v33 = vld [vmem:[%s4555_s10 + $0x430] sm:$0xff] }
 0x706   :  { %v3099_v48 = vpack.c.bf16 %v2015_v33, %v2013_v32  ;;  %v2053_v32 = vld [vmem:[%s4555_s10 + $0x560] sm:$0xff]  ;;  %v2055_v33 = vld [vmem:[%s4555_s10 + $0x570] sm:$0xff] }
 0x707   :  { %v3139_v12 = vpack.c.bf16 %v2055_v33, %v2053_v32 }
 0x708   :  { %3064 = vmatpush1.bf16.msra.mxu1 %v3063_v14  ;;  %v2024_v14 = vld [vmem:[%s4555_s10 + $0x478] sm:$0xff] }
 0x709   :  { %3066 = vmatprep.subr.bf16.mxu1 %v3065_v38  ;;  %v3103_v38 = vpack.c.bf16 %v2019_v7, %v2017_v37  ;;  %v3105_v31 = vpack.c.bf16 %v2024_v14, %v2022_v61  ;;  %v2059_v37 = vld [vmem:[%s4555_s10 + $0x590] sm:$0xff]  ;;  %v2062_v7 = vld [vmem:[%s4555_s10 + $0x5a8] sm:$0xff]  ;;  %v2064_v61 = vld [vmem:[%s4555_s10 + $0x5b8] sm:$0xff] }
 0x70c   :  { %3068 = vmatpush1.bf16.msra.mxu1 %v3067_v43  ;;  %v2028_v43 = vld [vmem:[%s4555_s10 + $0x498] sm:$0xff] }
 0x70d   :  { %3070 = vmatprep.subr.bf16.mxu1 %v3069_v44  ;;  %v3107_v44 = vpack.c.bf16 %v2023_v41, %v2021_v39  ;;  %v3109_v45 = vpack.c.bf16 %v2028_v43, %v2026_v42  ;;  %v2063_v39 = vld [vmem:[%s4555_s10 + $0x5b0] sm:$0xff]  ;;  %v2066_v41 = vld [vmem:[%s4555_s10 + $0x5c8] sm:$0xff]  ;;  %v2068_v42 = vld [vmem:[%s4555_s10 + $0x5d8] sm:$0xff] }
 0x710   :  { %3072 = vmatpush1.bf16.msra.mxu1 %v3071_v54  ;;  %v2032_v54 = vld [vmem:[%s4555_s10 + $0x4b8] sm:$0xff] }
 0x711   :  { %3074 = vmatprep.subr.bf16.mxu1 %v3073_v3  ;;  %v3111_v3 = vpack.c.bf16 %v2027_v47, %v2025_v46  ;;  %v3113_v50 = vpack.c.bf16 %v2032_v54, %v2030_v49  ;;  %v2067_v46 = vld [vmem:[%s4555_s10 + $0x5d0] sm:$0xff]  ;;  %v2070_v47 = vld [vmem:[%s4555_s10 + $0x5e8] sm:$0xff]  ;;  %v2072_v49 = vld [vmem:[%s4555_s10 + $0x5f8] sm:$0xff] }
 0x714   :  { %3076 = vmatpush1.bf16.msra.mxu1 %v3075_v55  ;;  %v2036_v55 = vld [vmem:[%s4555_s10 + $0x4d8] sm:$0xff] }
 0x715   :  { %3078 = vmatprep.subr.bf16.mxu1 %v3077_v59  ;;  %v3115_v59 = vpack.c.bf16 %v2031_v60, %v2029_v52  ;;  %v3117_v11 = vpack.c.bf16 %v2036_v55, %v2034_v53  ;;  %v2071_v52 = vld [vmem:[%s4555_s10 + $0x5f0] sm:$0xff]  ;;  %v1879_v53 = vmul.f32 %v3918_v58, %v4179_v56  ;;  %v2073_v55 = vmul.f32 -10.0, %v3936_v51 }
 0x718   :  { %3080 = vmatpush1.bf16.msra.mxu1 %v3079_v5  ;;  %v2040_v5 = vld [vmem:[%s4555_s10 + $0x4f8] sm:$0xff] }
 0x719   :  { %3082 = vmatprep.subr.bf16.mxu1 %v3081_v6  ;;  %v3119_v6 = vpack.c.bf16 %v2035_v1, %v2033_v62  ;;  %v3121_v8 = vpack.c.bf16 %v2040_v5, %v2038_v4 }
 0x71c   :  { %3084 = vmatpush1.bf16.msra.mxu1 %v3083_v57  ;;  %v2044_v57 = vld [vmem:[%s4555_s10 + $0x518] sm:$0xff] }
 0x71d   :  { %3086 = vmatprep.subr.bf16.mxu1 %v3085_v40  ;;  %v3123_v40 = vpack.c.bf16 %v2039_v9, %v2037_v0  ;;  %v3125_v63 = vpack.c.bf16 %v2044_v57, %v2042_v10 }
 0x720   :  { %3088 = vmatpush1.bf16.msra.mxu1 %v3087_v18  ;;  %v2048_v18 = vld [vmem:[%s4555_s10 + $0x538] sm:$0xff] }
 0x721   :  { %3090 = vmatprep.subr.bf16.mxu1 %v3089_v19  ;;  %v3127_v19 = vpack.c.bf16 %v2043_v15, %v2041_v2  ;;  %v3129_v13 = vpack.c.bf16 %v2048_v18, %v2046_v16 }
 0x724   :  { %3092 = vmatpush1.bf16.msra.mxu1 %v3091_v22  ;;  %v2052_v22 = vld [vmem:[%s4555_s10 + $0x558] sm:$0xff] }
 0x725   :  { %3094 = vmatprep.subr.bf16.mxu1 %v3093_v23  ;;  %v3131_v23 = vpack.c.bf16 %v2047_v20, %v2045_v17  ;;  %v3133_v24 = vpack.c.bf16 %v2052_v22, %v2050_v21 }
 0x727   :  { %2210 = vmatmul.mubr.f32.vlgmr.msra.gmra.mrb[18].mxu1 %v1877_v29  ;;  %v3135_v29 = vpack.c.bf16 %v2051_v26, %v2049_v25 }
 0x728   :  { %3096 = vmatpush1.bf16.msra.mxu1 %v3095_v27  ;;  %2280 = vmatprep.mubr.f32.mxu1 %v1880_v34  ;;  %v2056_v27 = vld [vmem:[%s4555_s10 + $0x578] sm:$0xff]  ;;  %v2058_v34 = vld [vmem:[%s4555_s10 + $0x588] sm:$0xff] }
 0x729   :  { %3098 = vmatprep.subr.bf16.mxu1 %v3097_v30  ;;  %v3137_v30 = vpack.c.bf16 %v2056_v27, %v2054_v28 }
 0x72c   :  { %3100 = vmatpush1.bf16.msra.mxu1 %v3099_v48  ;;  %v3141_v48 = vpack.c.bf16 %v2060_v35, %v2058_v34 }
 0x72d   :  { %3102 = vmatprep.subr.bf16.mxu1 %v3101_v36  ;;  %v2057_v36 = vld [vmem:[%s4555_s10 + $0x580] sm:$0xff] }
 0x72e   :  { %v3143_v14 = vpack.c.bf16 %v2059_v37, %v2057_v36 }
 0x730   :  { %3104 = vmatpush1.bf16.msra.mxu1 %v3103_v38  ;;  %v3145_v38 = vpack.c.bf16 %v2064_v61, %v2062_v7 }
 0x731   :  { %3106 = vmatprep.subr.bf16.mxu1 %v3105_v31  ;;  %v2061_v31 = vld [vmem:[%s4555_s10 + $0x5a0] sm:$0xff] }
 0x732   :  { %v3147_v43 = vpack.c.bf16 %v2063_v39, %v2061_v31 }
 0x734   :  { %3108 = vmatpush1.bf16.msra.mxu1 %v3107_v44  ;;  %v3149_v44 = vpack.c.bf16 %v2068_v42, %v2066_v41 }
 0x735   :  { %3110 = vmatprep.subr.bf16.mxu1 %v3109_v45  ;;  %v2065_v45 = vld [vmem:[%s4555_s10 + $0x5c0] sm:$0xff] }
 0x736   :  { %v3151_v54 = vpack.c.bf16 %v2067_v46, %v2065_v45 }
 0x738   :  { %3112 = vmatpush1.bf16.msra.mxu1 %v3111_v3  ;;  %v3153_v3 = vpack.c.bf16 %v2072_v49, %v2070_v47 }
 0x739   :  { %3114 = vmatprep.subr.bf16.mxu1 %v3113_v50  ;;  %v2069_v50 = vld [vmem:[%s4555_s10 + $0x5e0] sm:$0xff] }
 0x73a   :  { %v3155_v60 = vpack.c.bf16 %v2071_v52, %v2069_v50 }
 0x73c   :  { %3116 = vmatpush1.bf16.msra.mxu1 %v3115_v59 }
 0x73d   :  { %3118 = vmatprep.subr.bf16.mxu1 %v3117_v11 }
 0x740   :  { %3120 = vmatpush1.bf16.msra.mxu1 %v3119_v6 }
 0x741   :  { %3122 = vmatprep.subr.bf16.mxu1 %v3121_v8 }
 0x744   :  { %3124 = vmatpush1.bf16.msra.mxu1 %v3123_v40 }
 0x745   :  { %3126 = vmatprep.subr.bf16.mxu1 %v3125_v63 }
 0x748   :  { %3128 = vmatpush1.bf16.msra.mxu1 %v3127_v19 }
 0x749   :  { %3130 = vmatprep.subr.bf16.mxu1 %v3129_v13 }
 0x74c   :  { %3132 = vmatpush1.bf16.msra.mxu1 %v3131_v23 }
 0x74d   :  { %3134 = vmatprep.subr.bf16.mxu1 %v3133_v24 }
 0x750   :  { %3136 = vmatpush1.bf16.msra.mxu1 %v3135_v29 }
 0x751   :  { %3138 = vmatprep.subr.bf16.mxu1 %v3137_v30 }
 0x754   :  { %3140 = vmatpush1.bf16.msra.mxu1 %v3139_v12 }
 0x755   :  { %3142 = vmatprep.subr.bf16.mxu1 %v3141_v48 }
 0x758   :  { %3144 = vmatpush1.bf16.msra.mxu1 %v3143_v14 }
 0x759   :  { %3146 = vmatprep.subr.bf16.mxu1 %v3145_v38 }
 0x75c   :  { %3148 = vmatpush1.bf16.msra.mxu1 %v3147_v43 }
 0x75d   :  { %3150 = vmatprep.subr.bf16.mxu1 %v3149_v44 }
 0x760   :  { %3152 = vmatpush1.bf16.msra.mxu1 %v3151_v54 }
 0x761   :  { %3154 = vmatprep.subr.bf16.mxu1 %v3153_v3 }
 0x764   :  { %3156 = vmatpush1.bf16.msra.mxu1 %v3155_v60 }
 0x767   :  { %2281 = vmatmul.mubr.f32.vlgmr.msra.gmra.mrb[18].mxu1 %v1879_v53 }
 0x83a   :  { %v2282_v59 = vpop.f32.mrb[18].mxu1 }
 0x83b   :  { %v3165_v11 = vadd.f32 %v2282_v59, %v2073_v55  ;;  %v2284_v62 = vpop.f32.mrb[19].mxu1 }
 0x83c   :  { %v3166_v1 = vadd.f32 %v2284_v62, %v2073_v55 }
 0x83d   :  { %2287 = vst [vmem:[%s4556_s11] sm:$0xff] %v3165_v11 }
 0x83e   :  { %2288 = vst.msk [vmem:[%s4556_s11 + $0x8] sm:$0xff] %vm157_vm0, %v3166_v1 }
 0x83f   :  { %2293 = vsyncpa [#allocation3], 1 }
 0x840   :  { %2294 = vsyncpa [#allocation5], 1 }
 0x841   :  { %2295 = vsyncpa [#allocation8], 1 }

</bundles_post_ra>
